<compile_context>
chip_gen: v5e
topology: v5e:2x2
jax: 0.10.0
libtpu: 0.0.40
codegen_flags: <defaults>
</compile_context>

<pallas_src>
import math

import jax
import jax.numpy as jnp
from jax.experimental import pallas as pl
from jax.experimental.pallas import tpu as pltpu


def _round_up(n, m):
    return ((n + m - 1) // m) * m


# ---------------------------------------------------------------------------
# Pallas kernel: attention core for one query-lane tile.
#   qT : (H, hd, TQ)  bf16   streamed query tile (queries on the lane axis)
#   k  : (H, Nk, hd)  bf16   resident keys
#   uvT: (H, 2,  Nk)  bf16   row 0 = gated value (fc_out folded), row 1 = ones
#   out: (1, TQ)      f32    lane-dense output row (fc_out bias added outside)
# ---------------------------------------------------------------------------
def mhca_kernel(qT_ref, k_ref, uvT_ref, out_ref):
    f32 = jnp.float32

    qT = qT_ref[...]                                   # (H, hd, TQ)
    k = k_ref[...]                                     # (H, Nk, hd)
    uvT = uvT_ref[...]                                 # (H, 2, Nk)

    # scores[h, j, i] = <k_j, q_i>  -- bf16 operands, f32 accumulation on MXU.
    s = jax.lax.dot_general(k, qT, (((2,), (1,)), ((0,), (0,))),
                            preferred_element_type=f32)          # (H, Nk, TQ)

    # Softmax over the key axis j (sublanes); normalization deferred below.
    m = jnp.max(s, axis=1, keepdims=True)                         # (H, 1, TQ)
    e = jnp.exp(s - m)                                            # (H, Nk, TQ)

    # Fused numerator / denominator: one MXU pass per head, 2-row output.
    #   r[h, 0, i] = sum_j u[h, j] * e[h, j, i]   (numerator)
    #   r[h, 1, i] = sum_j          e[h, j, i]    (denominator)
    r = jax.lax.dot_general(uvT, e.astype(jnp.bfloat16),
                            (((2,), (1,)), ((0,), (0,))),
                            preferred_element_type=f32)           # (H, 2, TQ)

    # Normalize the (1, TQ) results, not the (Nk, TQ) tile, then sum heads.
    ratio = r[:, 0:1, :] * pl.reciprocal(r[:, 1:2, :], approx=True)  # (H,1,TQ)
    out_ref[...] = jnp.sum(ratio, axis=0)                         # (1, TQ)


# ---------------------------------------------------------------------------
# Wrapper: one-shot projections / folds + query-lane tiling.
# ---------------------------------------------------------------------------
def mhca_forward(x, rel_pos, rel_vel, rel_angle, params, num_heads, *, tq_max=512):
    # rel_pos is unused: the spatial bias it feeds is constant over the softmax
    # (key) axis and cancels exactly in the softmax.
    del rel_pos
    N, _ = x.shape
    output_dim = params["wq"].shape[1]
    H = num_heads
    hd = output_dim // H
    f32, bf16 = jnp.float32, jnp.bfloat16
    hp = jax.lax.Precision.HIGHEST

    # ---- one-shot projections / folds (plain JAX, O(N) -- not per tile) -----
    inv_sqrt = 1.0 / math.sqrt(hd)
    q = ((jnp.dot(x, params["wq"], precision=hp) + params["bq"]) * inv_sqrt
         ).reshape(N, H, hd)
    k = (jnp.dot(x, params["wk"], precision=hp) + params["bk"]).reshape(N, H, hd)
    v = (jnp.dot(x, params["wv"], precision=hp) + params["bv"]).reshape(N, H, hd)

    motion = jnp.concatenate([rel_vel, rel_angle], axis=-1)              # (N, 2)
    g1 = jax.nn.relu(jnp.dot(motion, params["wm1"], precision=hp) + params["bm1"])
    mg = jax.nn.sigmoid(jnp.dot(g1, params["wm2"], precision=hp)
                        + params["bm2"])                                 # (N, 1)

    # u[h, j] = mg[j] * <V[j, h, :], wf[h, :]>  (value proj + fc_out folded)
    wf_r = params["wf"].reshape(H, hd)
    u = (mg * jnp.einsum("nhd,hd->nh", v, wf_r, precision=hp)).T         # (H, N)
    uvT = jnp.stack([u, jnp.ones_like(u)], axis=1)                       # (H, 2, N)

    qT = jnp.transpose(q, (1, 2, 0))                                     # (H, hd, N)
    kh = jnp.transpose(k, (1, 0, 2))                                     # (H, N, hd)

    # ---- per-generation VMEM budget & query-lane tile size ------------------
    vmem_cap = 64 * 1024 * 1024
    try:
        vmem_cap = int(getattr(pltpu.get_tpu_info(), "vmem_capacity_bytes", vmem_cap))
    except Exception:
        pass  # fall back to the most conservative (v7x) capacity
    vmem_limit = max(32 * 1024 * 1024, min(vmem_cap * 3 // 4, 100 * 1024 * 1024))

    def vmem_estimate(t):
        resident = 2 * H * N * hd + 2 * H * 2 * N           # bf16 keys + [u;1]
        streamed = 2 * (2 * H * hd * t) + 2 * (4 * t)       # 2x-buffered qT + out
        temps = (4 + 4 + 2) * H * N * t + 4 * H * 2 * t     # s, e, e_bf16, r
        return resident + streamed + temps

    # tq is always a multiple of 128 (lane-dense blocks & stores).
    tq = min(_round_up(N, 128), max(128, (tq_max // 128) * 128))
    while tq > 128 and vmem_estimate(tq) > (vmem_limit * 3) // 5:
        tq = max(128, _round_up(tq // 2, 128))
    # TODO(synk): if vmem_estimate(128) still exceeds the budget (huge N), switch
    #             to flash-style key tiling with an online softmax.
    n_pad = _round_up(N, tq)

    qT_pad = jnp.pad(qT, ((0, 0), (0, 0), (0, n_pad - N))).astype(bf16)
    kh = kh.astype(bf16)
    uvT = uvT.astype(bf16)

    def _resident_spec(shape):
        idx = lambda i: (0,) * len(shape)
        try:   # resident arrays never re-DMA: single-buffer them if supported
            return pl.BlockSpec(shape, idx, pipeline_mode=pl.Buffered(1))
        except Exception:
            return pl.BlockSpec(shape, idx)

    out = pl.pallas_call(
        mhca_kernel,
        out_shape=jax.ShapeDtypeStruct((n_pad // tq, tq), f32),
        grid=(n_pad // tq,),
        in_specs=[
            pl.BlockSpec((H, hd, tq), lambda i: (0, 0, i)),   # queries (streamed)
            _resident_spec((H, N, hd)),                       # keys   (resident)
            _resident_spec((H, 2, N)),                        # [u ; 1] (resident)
        ],
        out_specs=pl.BlockSpec((1, tq), lambda i: (i, 0)),    # lane-dense rows
        compiler_params=pltpu.CompilerParams(
            # v7x: the two TensorCores split the query-tile axis (no per-tile
            # recompute left, so splitting is free).  No-op on v5e/v6e.
            dimension_semantics=("parallel",),
            vmem_limit_bytes=int(vmem_limit)),
    )(qT_pad, kh, uvT)

    # fc_out bias folded here; drop padded query lanes.
    return out.reshape(-1)[:N] + params["bf"][0, 0]


# ---------------------------------------------------------------------------
# Pure-JAX reference (mirrors the PyTorch forward exactly, f32 HIGHEST).
# ---------------------------------------------------------------------------
def mhca_reference(x, rel_pos, rel_vel, rel_angle, params, num_heads):
    hp = jax.lax.Precision.HIGHEST
    N = x.shape[0]
    output_dim = params["wq"].shape[1]
    hd = output_dim // num_heads

    Q = (jnp.dot(x, params["wq"], precision=hp) + params["bq"]).reshape(N, num_heads, hd)
    K = (jnp.dot(x, params["wk"], precision=hp) + params["bk"]).reshape(N, num_heads, hd)
    V = (jnp.dot(x, params["wv"], precision=hp) + params["bv"]).reshape(N, num_heads, hd)

    scores = jnp.einsum("ihd,jhd->ijh", Q, K, precision=hp) / math.sqrt(hd)

    h1 = jnp.maximum(jnp.dot(rel_pos, params["ws1"], precision=hp) + params["bs1"], 0.0)
    sb = (jnp.dot(h1, params["ws2"], precision=hp) + params["bs2"]).reshape(N, 1, 1)
    scores = scores + sb

    attn = jax.nn.softmax(scores, axis=1)

    motion = jnp.concatenate([rel_vel, rel_angle], axis=-1)
    g1 = jnp.maximum(jnp.dot(motion, params["wm1"], precision=hp) + params["bm1"], 0.0)
    mg = jax.nn.sigmoid(jnp.dot(g1, params["wm2"], precision=hp)
                        + params["bm2"]).reshape(1, N, 1)
    attn = attn * mg

    out = jnp.einsum("ijh,jhd->ihd", attn, V, precision=hp).reshape(N, output_dim)
    return (jnp.dot(out, params["wf"], precision=hp) + params["bf"])[:, 0]


# ---------------------------------------------------------------------------
# Deterministic parameter init (shapes from the module __init__).
# ---------------------------------------------------------------------------
def init_params(key, input_dim, output_dim, num_heads):
    head_dim = output_dim // num_heads
    ks = jax.random.split(key, 16)

    def w(k, shape):
        fan_in = shape[0]
        return jax.random.normal(k, shape, dtype=jnp.float32) / math.sqrt(fan_in)

    def b(k, n):
        return 0.01 * jax.random.normal(k, (1, n), dtype=jnp.float32)

    return {
        "wq": w(ks[0], (input_dim, output_dim)), "bq": b(ks[1], output_dim),
        "wk": w(ks[2], (input_dim, output_dim)), "bk": b(ks[3], output_dim),
        "wv": w(ks[4], (input_dim, output_dim)), "bv": b(ks[5], output_dim),
        "ws1": w(ks[6], (2, head_dim)),          "bs1": b(ks[7], head_dim),
        "ws2": w(ks[8], (head_dim, 1)),          "bs2": b(ks[9], 1),
        "wm1": w(ks[10], (2, head_dim)),         "bm1": b(ks[11], head_dim),
        "wm2": w(ks[12], (head_dim, 1)),         "bm2": b(ks[13], 1),
        "wf": w(ks[14], (output_dim, 1)),        "bf": b(ks[15], 1),
    }


if __name__ == "__main__":
    N, input_dim, output_dim, num_heads = 200, 16, 32, 4

    key = jax.random.PRNGKey(0)
    kp, kx, krp, krv, kra = jax.random.split(key, 5)

    params = init_params(kp, input_dim, output_dim, num_heads)
    x = jax.random.normal(kx, (N, input_dim), dtype=jnp.float32)
    rel_pos = jax.random.normal(krp, (N, 2), dtype=jnp.float32)
    rel_vel = jax.random.normal(krv, (N, 1), dtype=jnp.float32)
    rel_angle = jax.random.normal(kra, (N, 1), dtype=jnp.float32)

    ref = mhca_reference(x, rel_pos, rel_vel, rel_angle, params, num_heads)

    # Single query-lane tile (tq = 256 covers all 200 queries).
    out = jax.block_until_ready(
        mhca_forward(x, rel_pos, rel_vel, rel_angle, params, num_heads))
    assert out.shape == (N,)
    # Kernel runs its matmuls with bf16 operands / f32 accumulation on the MXU
    # and normalizes with pl.reciprocal(approx=True); reference is f32 HIGHEST.
    assert jnp.allclose(out, ref, atol=5e-2, rtol=5e-2), (out, ref)

    # Multi-tile path (two 128-wide query-lane tiles) exercises the pipelined
    # grid, the resident key/u buffers across steps, and the padded last tile.
    out_tiled = jax.block_until_ready(
        mhca_forward(x, rel_pos, rel_vel, rel_angle, params, num_heads, tq_max=128))
    assert jnp.allclose(out_tiled, ref, atol=5e-2, rtol=5e-2), (out_tiled, ref)

    print("KERNEL_OK")
</pallas_src>

<mosaic_0001>
module attributes {stable_mosaic.version = 11 : i64} {
  func.func @mhca_kernel(%arg0: i32, %arg1: memref<4x8x256xbf16, #tpu.memory_space<vmem>>, %arg2: memref<4x200x8xbf16, #tpu.memory_space<vmem>>, %arg3: memref<4x2x200xbf16, #tpu.memory_space<vmem>>, %arg4: memref<1x256xf32, #tpu.memory_space<vmem>>) attributes {dimension_semantics = [#tpu.dimension_semantics<parallel>], iteration_bounds = array<i64: 1>, scalar_prefetch = 0 : i64, scratch_operands = 0 : i64, tpu.core_type = #tpu.core_type<tc>, window_params = [{transform_indices = @transform_0, window_bounds = array<i64: 4, 8, 256>}, {pipeline_mode = #tpu.pipeline_mode<synchronous>, transform_indices = @transform_1, window_bounds = array<i64: 4, 200, 8>}, {pipeline_mode = #tpu.pipeline_mode<synchronous>, transform_indices = @transform_2, window_bounds = array<i64: 4, 2, 200>}, {transform_indices = @transform_3, window_bounds = array<i64: 1, 256>}]} {
    %c0 = arith.constant 0 : index
    %c0_0 = arith.constant 0 : index
    %c0_1 = arith.constant 0 : index
    %0 = vector.load %arg1[%c0, %c0_0, %c0_1] : memref<4x8x256xbf16, #tpu.memory_space<vmem>>, vector<4x8x256xbf16>
    %c0_2 = arith.constant 0 : index
    %c0_3 = arith.constant 0 : index
    %c0_4 = arith.constant 0 : index
    %1 = vector.load %arg2[%c0_2, %c0_3, %c0_4] : memref<4x200x8xbf16, #tpu.memory_space<vmem>>, vector<4x200x8xbf16>
    %c0_5 = arith.constant 0 : index
    %c0_6 = arith.constant 0 : index
    %c0_7 = arith.constant 0 : index
    %2 = vector.load %arg3[%c0_5, %c0_6, %c0_7] : memref<4x2x200xbf16, #tpu.memory_space<vmem>>, vector<4x2x200xbf16>
    %cst = arith.constant dense<0.000000e+00> : vector<4x200x256xf32>
    %3 = tpu.matmul %1, %0, %cst {dimension_numbers = #tpu.dot_dimension_numbers<[2], [1], [1], [2], [0, 0, 0, 1, 1, 2], [0], [0]>} : vector<4x200x8xbf16>, vector<4x8x256xbf16>, vector<4x200x256xf32> -> vector<4x200x256xf32>
    %cst_8 = arith.constant dense<0xFF800000> : vector<4x256xf32>
    %4 = vector.multi_reduction <maximumf>, %3, %cst_8 [1] : vector<4x200x256xf32> to vector<4x256xf32>
    %5 = vector.shape_cast %4 : vector<4x256xf32> to vector<4x1x256xf32>
    %6 = vector.broadcast %5 : vector<4x1x256xf32> to vector<4x200x256xf32>
    %7 = arith.subf %3, %6 : vector<4x200x256xf32>
    %8 = math.exp %7 : vector<4x200x256xf32>
    %9 = arith.truncf %8 : vector<4x200x256xf32> to vector<4x200x256xbf16>
    %cst_9 = arith.constant dense<0.000000e+00> : vector<4x2x256xf32>
    %10 = tpu.matmul %2, %9, %cst_9 {dimension_numbers = #tpu.dot_dimension_numbers<[2], [1], [1], [2], [0, 0, 0, 1, 1, 2], [0], [0]>} : vector<4x2x200xbf16>, vector<4x200x256xbf16>, vector<4x2x256xf32> -> vector<4x2x256xf32>
    %11 = vector.extract_strided_slice %10 {offsets = [0, 0, 0], sizes = [4, 1, 256], strides = [1, 1, 1]} : vector<4x2x256xf32> to vector<4x1x256xf32>
    %12 = vector.extract_strided_slice %10 {offsets = [0, 1, 0], sizes = [4, 1, 256], strides = [1, 1, 1]} : vector<4x2x256xf32> to vector<4x1x256xf32>
    %13 = tpu.reciprocal %12 {approx = true} : vector<4x1x256xf32> -> vector<4x1x256xf32>
    %14 = arith.mulf %11, %13 : vector<4x1x256xf32>
    %cst_10 = arith.constant dense<0.000000e+00> : vector<1x256xf32>
    %15 = vector.multi_reduction <add>, %14, %cst_10 [0] : vector<4x1x256xf32> to vector<1x256xf32>
    %c0_11 = arith.constant 0 : index
    %c0_12 = arith.constant 0 : index
    %16 = vector.load %arg4[%c0_11, %c0_12] : memref<1x256xf32, #tpu.memory_space<vmem>>, vector<1x256xf32>
    tpu.vector_store %arg4[%c0_11, %c0_12], %15 {strides = array<i32>} : memref<1x256xf32, #tpu.memory_space<vmem>>, vector<1x256xf32>,
    return
  }
  func.func @transform_0(%arg0: i32) -> (i32, i32, i32) {
    %c0_i32 = arith.constant 0 : i32
    %c0_i32_0 = arith.constant 0 : i32
    %c0_i32_1 = arith.constant 0 : i32
    return %c0_i32, %c0_i32_0, %arg0 : i32, i32, i32
  }
  func.func @transform_1(%arg0: i32) -> (i32, i32, i32) {
    %c0_i32 = arith.constant 0 : i32
    %c0_i32_0 = arith.constant 0 : i32
    %c0_i32_1 = arith.constant 0 : i32
    %c0_i32_2 = arith.constant 0 : i32
    return %c0_i32, %c0_i32_0, %c0_i32_1 : i32, i32, i32
  }
  func.func @transform_2(%arg0: i32) -> (i32, i32, i32) {
    %c0_i32 = arith.constant 0 : i32
    %c0_i32_0 = arith.constant 0 : i32
    %c0_i32_1 = arith.constant 0 : i32
    %c0_i32_2 = arith.constant 0 : i32
    return %c0_i32, %c0_i32_0, %c0_i32_1 : i32, i32, i32
  }
  func.func @transform_3(%arg0: i32) -> (i32, i32) {
    %c0_i32 = arith.constant 0 : i32
    %c0_i32_0 = arith.constant 0 : i32
    return %arg0, %c0_i32 : i32, i32
  }
}

</mosaic_0001>

<bundles_post_ra>
// kernel: tpu_custom_call.1
= control target key start
LH: loop header
LB: loop body
LE: loop exit
PB: predicated region body
PF: predicated region fallthrough
CT: control target
= control target key end

     0   :  { %vm232_vm0 = vcmask 1043456   ;;  %s5092_s0 = inlined_call_operand.vmem [shape: bf16[4,8,256], index: 0, kind: input, shape index: {}]   ;;  %s5093_s1 = inlined_call_operand.vmem [shape: bf16[4,200,8], index: 1, kind: input, shape index: {}]   ;;  %s5094_s2 = inlined_call_operand.vmem [shape: bf16[4,2,200], index: 2, kind: input, shape index: {}]   ;;  %s5095_s3 = inlined_call_operand.hbm [shape: f32[1,256], index: 3, kind: output, shape index: {}]  }
   0x1   :  { %v16_v0 = vld [vmem:[%s5092_s0] sm:$0xff]  ;;  %v17_v1 = vld [vmem:[%s5092_s0 + $0x8] sm:$0xff]  ;;  %v18_v6 = vld [vmem:[%s5092_s0 + $0x10] sm:$0xff] }
   0x2   :  { %v188_v2 = vunpack.c.l.b16 %v16_v0  ;;  %v189_v3 = vunpack.c.h.b16 %v16_v0  ;;  %v449_v4 = vunpack.c.l.b16 %v17_v1  ;;  %v450_v5 = vunpack.c.h.b16 %v17_v1  ;;  %v19_v7 = vld [vmem:[%s5092_s0 + $0x18] sm:$0xff] }
   0x3   :  { %v708_v8 = vunpack.c.l.b16 %v18_v6  ;;  %v709_v9 = vunpack.c.h.b16 %v18_v6  ;;  %v967_v10 = vunpack.c.l.b16 %v19_v7  ;;  %v968_v11 = vunpack.c.h.b16 %v19_v7 }
   0x4   :  { %v190_v12 = vpack.c.b16 %v188_v2, %v188_v2  ;;  %v191_v13 = vpack.c.b16 %v189_v3, %v189_v3  ;;  %v451_v14 = vpack.c.b16 %v449_v4, %v449_v4  ;;  %v452_v15 = vpack.c.b16 %v450_v5, %v450_v5 }
   0x5   :  { %8 = vsyncpa [#allocation3], 0  ;;  %v710_v16 = vpack.c.b16 %v708_v8, %v708_v8  ;;  %v711_v17 = vpack.c.b16 %v709_v9, %v709_v9  ;;  %v969_v18 = vpack.c.b16 %v967_v10, %v967_v10  ;;  %v970_v19 = vpack.c.b16 %v968_v11, %v968_v11  ;;  %v3248_v24 = vld [vmem:[%s5093_s1] sm:$0xff]  ;;  %v3249_v30 = vld [vmem:[%s5093_s1 + $0x8] sm:$0xff]  ;;  %s2935_s21 = sshll.u32 %s5095_s3, 4  ;;  %s2936_s21 = int_to_ptr.hbm [resolvable:$true] %s2935_s21 }
   0x6   :  { %v234_v20 = vsel %vm232_vm0, %v190_v12, 0  ;;  %v237_v21 = vsel %vm232_vm0, %v191_v13, 0  ;;  %v493_v22 = vsel %vm232_vm0, %v451_v14, 0  ;;  %v496_v23 = vsel %vm232_vm0, %v452_v15, 0  ;;  %v3260_v25 = vld [vmem:[%s5093_s1 + $0x64] sm:$0xff]  ;;  %v3261_v31 = vld [vmem:[%s5093_s1 + $0x6c] sm:$0xff] }
   0x7   :  { %246 = vmatpush.bf16.msra.mxu0 %v234_v20  ;;  %319 = vmatpush.bf16.msra.mxu1 %v237_v21  ;;  %vm192_vm1 = vcmask 64512   ;;  %v752_v26 = vsel %vm232_vm0, %v710_v16, 0  ;;  %v755_v27 = vsel %vm232_vm0, %v711_v17, 0  ;;  %v1011_v28 = vsel %vm232_vm0, %v969_v18, 0  ;;  %v3250_v32 = vld [vmem:[%s5093_s1 + $0x10] sm:$0xff]  ;;  %v3251_v34 = vld [vmem:[%s5093_s1 + $0x18] sm:$0xff] }
   0x8   :  { %505 = vmatpush.bf16.msra.mxu2 %v493_v22  ;;  %578 = vmatpush.bf16.msra.mxu3 %v496_v23  ;;  %v1014_v29 = vsel %vm232_vm0, %v970_v19, 0  ;;  %v3262_v33 = vld [vmem:[%s5093_s1 + $0x74] sm:$0xff]  ;;  %v3263_v35 = vld [vmem:[%s5093_s1 + $0x7c] sm:$0xff]  ;;  %v3264_v37 = vld [vmem:[%s5093_s1 + $0x84] sm:$0xff]  ;;  %vm2232_vm2 = vcmask 588800   ;;  %vm2903_vm3 = vcmask 1040384  }
   0x9   :  { %v3252_v36 = vld [vmem:[%s5093_s1 + $0x20] sm:$0xff]  ;;  %v3253_v38 = vld [vmem:[%s5093_s1 + $0x28] sm:$0xff]  ;;  %v3254_v40 = vld [vmem:[%s5093_s1 + $0x30] sm:$0xff] }
   0xa   :  { %2992 = vmatmul.msk.bf16.vlgmr.msra.gmra.mxu0 %vm192_vm1, %v3248_v24  ;;  %3005 = vmatmul.msk.bf16.vlgmr.msra.gmra.mxu1 %vm192_vm1, %v3248_v24  ;;  %v3265_v39 = vld [vmem:[%s5093_s1 + $0x8c] sm:$0xff]  ;;  %v3266_v41 = vld [vmem:[%s5093_s1 + $0x94] sm:$0xff]  ;;  %v3267_v43 = vld [vmem:[%s5093_s1 + $0x9c] sm:$0xff] }
   0xb   :  { %764 = vmatpush.bf16.msrb.mxu0 %v752_v26  ;;  %837 = vmatpush.bf16.msrb.mxu1 %v755_v27  ;;  %v3255_v42 = vld [vmem:[%s5093_s1 + $0x38] sm:$0xff]  ;;  %v3256_v44 = vld [vmem:[%s5093_s1 + $0x40] sm:$0xff]  ;;  %v3257_v54 = vld [vmem:[%s5093_s1 + $0x48] sm:$0xff] }
   0xc   :  { %3066 = vmatmul.msk.bf16.vlgmr.msra.gmra.mxu2 %vm192_vm1, %v3260_v25  ;;  %3079 = vmatmul.msk.bf16.vlgmr.msra.gmra.mxu3 %vm192_vm1, %v3260_v25  ;;  %v3268_v47 = vld [vmem:[%s5093_s1 + $0xa4] sm:$0xff]  ;;  %v3269_v57 = vld [vmem:[%s5093_s1 + $0xac] sm:$0xff]  ;;  %v3270_v3 = vld [vmem:[%s5093_s1 + $0xb4] sm:$0xff] }
   0xd   :  { %1023 = vmatpush.bf16.msrb.mxu2 %v1011_v28  ;;  %1096 = vmatpush.bf16.msrb.mxu3 %v1014_v29  ;;  %v3258_v0 = vld [vmem:[%s5093_s1 + $0x50] sm:$0xff]  ;;  %v3259_v10 = vld [vmem:[%s5093_s1 + $0x58] sm:$0xff]  ;;  %v44_v18 = vld [vmem:[%s5093_s1 + $0x60] sm:$0xf] }
   0xe   :  { %v3271_v13 = vld [vmem:[%s5093_s1 + $0xbc] sm:$0xff]  ;;  %v69_v19 = vld [vmem:[%s5093_s1 + $0xc4] sm:$0xf]  ;;  %v173_v20 = vunpack.c.l.b16 %v44_v18 }
   0xf   :  { %v434_v21 = vunpack.c.l.b16 %v69_v19 }
  0x10   :  { %v186_v24 = vpack.c.b16 %v173_v20, %v173_v20  ;;  %v3274_v20 = vld [vmem:[%s5093_s1 + $0xd8] sm:$0xff] }
  0x11   :  { %v447_v27 = vpack.c.b16 %v434_v21, %v434_v21 }
  0x1a   :  { %2993 = vmatmul.msk.bf16.gmra.mxu0 %vm192_vm1, %v3249_v30  ;;  %3006 = vmatmul.msk.bf16.gmra.mxu1 %vm192_vm1, %v3249_v30 }
  0x1c   :  { %3067 = vmatmul.msk.bf16.gmra.mxu2 %vm192_vm1, %v3261_v31  ;;  %3080 = vmatmul.msk.bf16.gmra.mxu3 %vm192_vm1, %v3261_v31 }
  0x2a   :  { %2994 = vmatmul.msk.bf16.gmra.mxu0 %vm192_vm1, %v3250_v32  ;;  %3007 = vmatmul.msk.bf16.gmra.mxu1 %vm192_vm1, %v3250_v32 }
  0x2c   :  { %3068 = vmatmul.msk.bf16.gmra.mxu2 %vm192_vm1, %v3262_v33  ;;  %3081 = vmatmul.msk.bf16.gmra.mxu3 %vm192_vm1, %v3262_v33 }
  0x3a   :  { %2995 = vmatmul.msk.bf16.gmra.mxu0 %vm192_vm1, %v3251_v34  ;;  %3008 = vmatmul.msk.bf16.gmra.mxu1 %vm192_vm1, %v3251_v34  ;;  %v3272_v34 = vld [vmem:[%s5093_s1 + $0xc8] sm:$0xff] }
  0x3c   :  { %3069 = vmatmul.msk.bf16.gmra.mxu2 %vm192_vm1, %v3263_v35  ;;  %3082 = vmatmul.msk.bf16.gmra.mxu3 %vm192_vm1, %v3263_v35 }
  0x4a   :  { %2996 = vmatmul.msk.bf16.gmra.mxu0 %vm192_vm1, %v3252_v36  ;;  %3009 = vmatmul.msk.bf16.gmra.mxu1 %vm192_vm1, %v3252_v36 }
  0x4c   :  { %3070 = vmatmul.msk.bf16.gmra.mxu2 %vm192_vm1, %v3264_v37  ;;  %3083 = vmatmul.msk.bf16.gmra.mxu3 %vm192_vm1, %v3264_v37  ;;  %v3284_v37 = vld [vmem:[%s5093_s1 + $0x12c] sm:$0xff] }
  0x5a   :  { %2997 = vmatmul.msk.bf16.gmra.mxu0 %vm192_vm1, %v3253_v38  ;;  %3010 = vmatmul.msk.bf16.gmra.mxu1 %vm192_vm1, %v3253_v38 }
  0x5c   :  { %3071 = vmatmul.msk.bf16.gmra.mxu2 %vm192_vm1, %v3265_v39  ;;  %3084 = vmatmul.msk.bf16.gmra.mxu3 %vm192_vm1, %v3265_v39 }
  0x6a   :  { %2998 = vmatmul.msk.bf16.gmra.mxu0 %vm192_vm1, %v3254_v40  ;;  %3011 = vmatmul.msk.bf16.gmra.mxu1 %vm192_vm1, %v3254_v40 }
  0x6c   :  { %3072 = vmatmul.msk.bf16.gmra.mxu2 %vm192_vm1, %v3266_v41  ;;  %3085 = vmatmul.msk.bf16.gmra.mxu3 %vm192_vm1, %v3266_v41 }
  0x7a   :  { %2999 = vmatmul.msk.bf16.gmra.mxu0 %vm192_vm1, %v3255_v42  ;;  %3012 = vmatmul.msk.bf16.gmra.mxu1 %vm192_vm1, %v3255_v42 }
  0x7c   :  { %3073 = vmatmul.msk.bf16.gmra.mxu2 %vm192_vm1, %v3267_v43  ;;  %3086 = vmatmul.msk.bf16.gmra.mxu3 %vm192_vm1, %v3267_v43 }
  0x87   :  { %v3863_v45 = vpop.f32.mrf.mxu0  ;;  %v3865_v46 = vpop.f32.mrf.mxu1 }
  0x88   :  { %5227 = vst [vmem:[#allocation5_spill] sm:$0xff] %v3863_v45 }
  0x89   :  { %5228 = vst [vmem:[#allocation6_spill] sm:$0xff] %v3865_v46 }
  0x8a   :  { %3000 = vmatmul.msk.bf16.gmra.mxu0 %vm192_vm1, %v3256_v44  ;;  %3013 = vmatmul.msk.bf16.gmra.mxu1 %vm192_vm1, %v3256_v44  ;;  %v3273_v44 = vld [vmem:[%s5093_s1 + $0xd0] sm:$0xff] }
  0x8c   :  { %3074 = vmatmul.msk.bf16.gmra.mxu2 %vm192_vm1, %v3268_v47  ;;  %3087 = vmatmul.msk.bf16.gmra.mxu3 %vm192_vm1, %v3268_v47 }
  0x8f   :  { %v3874_v48 = vpop.f32.mrf.mxu2  ;;  %v3876_v49 = vpop.f32.mrf.mxu3 }
  0x90   :  { %5229 = vst [vmem:[#allocation7_spill] sm:$0xff] %v3874_v48  ;;  %v3878_v50 = vpop.f32.mrf.mxu0  ;;  %v3880_v51 = vpop.f32.mrf.mxu1 }
  0x91   :  { %5230 = vst [vmem:[#allocation8_spill] sm:$0xff] %v3876_v49 }
  0x92   :  { %5231 = vst [vmem:[#allocation9_spill] sm:$0xff] %v3878_v50 }
  0x93   :  { %5232 = vst [vmem:[#allocation10_spill] sm:$0xff] %v3880_v51 }
  0x97   :  { %v3882_v52 = vpop.f32.mrf.mxu2  ;;  %v3884_v53 = vpop.f32.mrf.mxu3 }
  0x98   :  { %5233 = vst [vmem:[#allocation11_spill] sm:$0xff] %v3882_v52  ;;  %v3889_v55 = vpop.f32.mrf.mxu0  ;;  %v3891_v56 = vpop.f32.mrf.mxu1 }
  0x99   :  { %5234 = vst [vmem:[#allocation12_spill] sm:$0xff] %v3884_v53 }
  0x9a   :  { %5235 = vst [vmem:[#allocation13_spill] sm:$0xff] %v3889_v55  ;;  %3001 = vmatmul.msk.bf16.gmra.mxu0 %vm192_vm1, %v3257_v54  ;;  %3014 = vmatmul.msk.bf16.gmra.mxu1 %vm192_vm1, %v3257_v54 }
  0x9b   :  { %5236 = vst [vmem:[#allocation14_spill] sm:$0xff] %v3891_v56 }
  0x9c   :  { %3075 = vmatmul.msk.bf16.gmra.mxu2 %vm192_vm1, %v3269_v57  ;;  %3088 = vmatmul.msk.bf16.gmra.mxu3 %vm192_vm1, %v3269_v57  ;;  %v3285_v57 = vld [vmem:[%s5093_s1 + $0x134] sm:$0xff] }
  0x9f   :  { %v3900_v58 = vpop.f32.mrf.mxu2  ;;  %v3902_v59 = vpop.f32.mrf.mxu3 }
  0xa0   :  { %5237 = vst [vmem:[#allocation15_spill] sm:$0xff] %v3900_v58  ;;  %v3904_v60 = vpop.f32.mrf.mxu0  ;;  %v3906_v61 = vpop.f32.mrf.mxu1 }
  0xa1   :  { %5238 = vst [vmem:[#allocation16_spill] sm:$0xff] %v3902_v59 }
  0xa2   :  { %5239 = vst [vmem:[#allocation17_spill] sm:$0xff] %v3904_v60 }
  0xa3   :  { %5240 = vst [vmem:[#allocation18_spill] sm:$0xff] %v3906_v61 }
  0xa7   :  { %v3908_v62 = vpop.f32.mrf.mxu2  ;;  %v3910_v63 = vpop.f32.mrf.mxu3 }
  0xa8   :  { %5241 = vst [vmem:[#allocation19_spill] sm:$0xff] %v3908_v62  ;;  %v3915_v1 = vpop.f32.mrf.mxu0  ;;  %v3917_v2 = vpop.f32.mrf.mxu1 }
  0xa9   :  { %5242 = vst [vmem:[#allocation20_spill] sm:$0xff] %v3910_v63 }
  0xaa   :  { %5243 = vst [vmem:[#allocation21_spill] sm:$0xff] %v3915_v1  ;;  %3002 = vmatmul.msk.bf16.gmra.mxu0 %vm192_vm1, %v3258_v0  ;;  %3015 = vmatmul.msk.bf16.gmra.mxu1 %vm192_vm1, %v3258_v0 }
  0xab   :  { %5244 = vst [vmem:[#allocation22_spill] sm:$0xff] %v3917_v2 }
  0xac   :  { %3076 = vmatmul.msk.bf16.gmra.mxu2 %vm192_vm1, %v3270_v3  ;;  %3089 = vmatmul.msk.bf16.gmra.mxu3 %vm192_vm1, %v3270_v3 }
  0xaf   :  { %v3926_v4 = vpop.f32.mrf.mxu2  ;;  %v3928_v5 = vpop.f32.mrf.mxu3 }
  0xb0   :  { %5245 = vst [vmem:[#allocation23_spill] sm:$0xff] %v3926_v4  ;;  %v3930_v6 = vpop.f32.mrf.mxu0  ;;  %v3932_v7 = vpop.f32.mrf.mxu1 }
  0xb1   :  { %5246 = vst [vmem:[#allocation24_spill] sm:$0xff] %v3928_v5 }
  0xb2   :  { %5247 = vst [vmem:[#allocation25_spill] sm:$0xff] %v3930_v6 }
  0xb3   :  { %5248 = vst [vmem:[#allocation26_spill] sm:$0xff] %v3932_v7 }
  0xb7   :  { %v3934_v8 = vpop.f32.mrf.mxu2  ;;  %v3936_v9 = vpop.f32.mrf.mxu3 }
  0xb8   :  { %5249 = vst [vmem:[#allocation27_spill] sm:$0xff] %v3934_v8  ;;  %v3941_v11 = vpop.f32.mrf.mxu0  ;;  %v3943_v12 = vpop.f32.mrf.mxu1 }
  0xb9   :  { %5250 = vst [vmem:[#allocation28_spill] sm:$0xff] %v3936_v9 }
  0xba   :  { %3003 = vmatmul.msk.bf16.gmra.mxu0 %vm192_vm1, %v3259_v10  ;;  %3016 = vmatmul.msk.bf16.gmra.mxu1 %vm192_vm1, %v3259_v10 }
  0xbc   :  { %3077 = vmatmul.msk.bf16.gmra.mxu2 %vm192_vm1, %v3271_v13  ;;  %3090 = vmatmul.msk.bf16.gmra.mxu3 %vm192_vm1, %v3271_v13 }
  0xbf   :  { %v3952_v14 = vpop.f32.mrf.mxu2  ;;  %v3954_v15 = vpop.f32.mrf.mxu3 }
  0xc0   :  { %5251 = vst [vmem:[#allocation29_spill] sm:$0xff] %v3952_v14  ;;  %v3956_v16 = vpop.f32.mrf.mxu0  ;;  %v3958_v17 = vpop.f32.mrf.mxu1 }
  0xc1   :  { %5252 = vst [vmem:[#allocation30_spill] sm:$0xff] %v3954_v15 }
  0xc7   :  { %v3966_v22 = vpop.f32.mrf.mxu2  ;;  %v3968_v23 = vpop.f32.mrf.mxu3 }
  0xc8   :  { %5253 = vst [vmem:[#allocation31_spill] sm:$0xff] %v3966_v22  ;;  %v3970_v25 = vpop.f32.mrf.mxu0  ;;  %v3972_v26 = vpop.f32.mrf.mxu1 }
  0xc9   :  { %5254 = vst [vmem:[#allocation32_spill] sm:$0xff] %v3968_v23 }
  0xca   :  { %3004 = vmatmul.msk.bf16.gmra.mxu0 %vm192_vm1, %v186_v24  ;;  %3017 = vmatmul.msk.bf16.gmra.mxu1 %vm192_vm1, %v186_v24 }
  0xcc   :  { %3078 = vmatmul.msk.bf16.gmra.mxu2 %vm192_vm1, %v447_v27  ;;  %3091 = vmatmul.msk.bf16.gmra.mxu3 %vm192_vm1, %v447_v27  ;;  %v3286_v27 = vld [vmem:[%s5093_s1 + $0x13c] sm:$0xff] }
  0xcf   :  { %v3978_v28 = vpop.f32.mrf.mxu2  ;;  %v3980_v29 = vpop.f32.mrf.mxu3 }
  0xd0   :  { %5255 = vst [vmem:[#allocation33_spill] sm:$0xff] %v3978_v28  ;;  %v3982_v30 = vpop.f32.mrf.mxu0  ;;  %v3984_v31 = vpop.f32.mrf.mxu1 }
  0xd1   :  { %5256 = vst [vmem:[#allocation34_spill] sm:$0xff] %v3980_v29 }
  0xd7   :  { %v3986_v32 = vpop.f32.mrf.mxu2  ;;  %v3988_v33 = vpop.f32.mrf.mxu3 }
  0xd8   :  { %5257 = vst [vmem:[#allocation35_spill] sm:$0xff] %v3986_v32  ;;  %v3993_v35 = vpop.f32.mrf.mxu0  ;;  %v3995_v36 = vpop.f32.mrf.mxu1 }
  0xd9   :  { %5258 = vst [vmem:[#allocation36_spill] sm:$0xff] %v3988_v33 }
  0xda   :  { %3140 = vmatmul.msk.bf16.vlgmr.msrb.gmra.mxu0 %vm192_vm1, %v3272_v34  ;;  %3153 = vmatmul.msk.bf16.vlgmr.msrb.gmra.mxu1 %vm192_vm1, %v3272_v34 }
  0xdc   :  { %3214 = vmatmul.msk.bf16.vlgmr.msrb.gmra.mxu2 %vm192_vm1, %v3284_v37  ;;  %3227 = vmatmul.msk.bf16.vlgmr.msrb.gmra.mxu3 %vm192_vm1, %v3284_v37 }
  0xdf   :  { %v4004_v38 = vpop.f32.mrf.mxu2  ;;  %v4006_v39 = vpop.f32.mrf.mxu3 }
  0xe0   :  { %5259 = vst [vmem:[#allocation37_spill] sm:$0xff] %v4004_v38  ;;  %v4008_v40 = vpop.f32.mrf.mxu0  ;;  %v4010_v41 = vpop.f32.mrf.mxu1 }
  0xe1   :  { %5260 = vst [vmem:[#allocation38_spill] sm:$0xff] %v4006_v39 }
  0xe7   :  { %v4012_v42 = vpop.f32.mrf.mxu2  ;;  %v4014_v43 = vpop.f32.mrf.mxu3 }
  0xe8   :  { %5261 = vst [vmem:[#allocation39_spill] sm:$0xff] %v4012_v42  ;;  %v4019_v47 = vpop.f32.mrf.mxu0  ;;  %v4021_v54 = vpop.f32.mrf.mxu1 }
  0xe9   :  { %5262 = vst [vmem:[#allocation40_spill] sm:$0xff] %v4014_v43 }
  0xea   :  { %3141 = vmatmul.msk.bf16.gmra.mxu0 %vm192_vm1, %v3273_v44  ;;  %3154 = vmatmul.msk.bf16.gmra.mxu1 %vm192_vm1, %v3273_v44 }
  0xec   :  { %3215 = vmatmul.msk.bf16.gmra.mxu2 %vm192_vm1, %v3285_v57  ;;  %3228 = vmatmul.msk.bf16.gmra.mxu3 %vm192_vm1, %v3285_v57 }
  0xef   :  { %v4030_v0 = vpop.f32.mrf.mxu2  ;;  %v4032_v3 = vpop.f32.mrf.mxu3 }
  0xf0   :  { %5263 = vst [vmem:[#allocation41_spill] sm:$0xff] %v4030_v0  ;;  %v4034_v10 = vpop.f32.mrf.mxu0  ;;  %v4036_v13 = vpop.f32.mrf.mxu1 }
  0xf1   :  { %5264 = vst [vmem:[#allocation42_spill] sm:$0xff] %v4032_v3 }
  0xf7   :  { %v4038_v18 = vpop.f32.mrf.mxu2  ;;  %v4040_v19 = vpop.f32.mrf.mxu3 }
  0xf8   :  { %5265 = vst [vmem:[#allocation43_spill] sm:$0xff] %v4038_v18  ;;  %v4045_v21 = vpop.f32.mrf.mxu0  ;;  %v4047_v24 = vpop.f32.mrf.mxu1 }
  0xf9   :  { %5266 = vst [vmem:[#allocation44_spill] sm:$0xff] %v4040_v19 }
  0xfa   :  { %3142 = vmatmul.msk.bf16.gmra.mxu0 %vm192_vm1, %v3274_v20  ;;  %3155 = vmatmul.msk.bf16.gmra.mxu1 %vm192_vm1, %v3274_v20  ;;  %v3275_v20 = vld [vmem:[%s5093_s1 + $0xe0] sm:$0xff] }
  0xfc   :  { %3216 = vmatmul.msk.bf16.gmra.mxu2 %vm192_vm1, %v3286_v27  ;;  %3229 = vmatmul.msk.bf16.gmra.mxu3 %vm192_vm1, %v3286_v27  ;;  %v3287_v27 = vld [vmem:[%s5093_s1 + $0x144] sm:$0xff] }
  0xff   :  { %v4056_v34 = vpop.f32.mrf.mxu2  ;;  %v4058_v37 = vpop.f32.mrf.mxu3 }
 0x100   :  { %5267 = vst [vmem:[#allocation45_spill] sm:$0xff] %v4056_v34  ;;  %v4060_v44 = vpop.f32.mrf.mxu0  ;;  %v4062_v57 = vpop.f32.mrf.mxu1 }
 0x101   :  { %5268 = vst [vmem:[#allocation46_spill] sm:$0xff] %v4058_v37 }
 0x102   :  { %5269 = vst [vmem:[#allocation47_spill] sm:$0xff] %v4060_v44 }
 0x103   :  { %5270 = vst [vmem:[#allocation48_spill] sm:$0xff] %v4062_v57 }
 0x107   :  { %v4064_v19 = vpop.f32.mrf.mxu2  ;;  %v4066_v18 = vpop.f32.mrf.mxu3 }
 0x108   :  { %5271 = vst [vmem:[#allocation49_spill] sm:$0xff] %v4064_v19  ;;  %v4071_v3 = vpop.f32.mrf.mxu0  ;;  %v4073_v0 = vpop.f32.mrf.mxu1 }
 0x109   :  { %5272 = vst [vmem:[#allocation50_spill] sm:$0xff] %v4066_v18 }
 0x10a   :  { %5273 = vst [vmem:[#allocation51_spill] sm:$0xff] %v4071_v3  ;;  %3143 = vmatmul.msk.bf16.gmra.mxu0 %vm192_vm1, %v3275_v20  ;;  %3156 = vmatmul.msk.bf16.gmra.mxu1 %vm192_vm1, %v3275_v20  ;;  %v3276_v20 = vld [vmem:[%s5093_s1 + $0xe8] sm:$0xff] }
 0x10b   :  { %5274 = vst [vmem:[#allocation52_spill] sm:$0xff] %v4073_v0 }
 0x10c   :  { %3217 = vmatmul.msk.bf16.gmra.mxu2 %vm192_vm1, %v3287_v27  ;;  %3230 = vmatmul.msk.bf16.gmra.mxu3 %vm192_vm1, %v3287_v27  ;;  %v3288_v27 = vld [vmem:[%s5093_s1 + $0x14c] sm:$0xff] }
 0x10f   :  { %v4082_v18 = vpop.f32.mrf.mxu2  ;;  %v4084_v19 = vpop.f32.mrf.mxu3 }
 0x110   :  { %5275 = vst [vmem:[#allocation53_spill] sm:$0xff] %v4082_v18  ;;  %v4086_v37 = vpop.f32.mrf.mxu0  ;;  %v4088_v34 = vpop.f32.mrf.mxu1 }
 0x111   :  { %5276 = vst [vmem:[#allocation54_spill] sm:$0xff] %v4084_v19  ;;  %v1162_v19 = vmax.f32 %v3863_v45, %v3878_v50 }
 0x117   :  { %v4090_v0 = vpop.f32.mrf.mxu2  ;;  %v4092_v3 = vpop.f32.mrf.mxu3 }
 0x118   :  { %5277 = vst [vmem:[#allocation55_spill] sm:$0xff] %v4090_v0  ;;  %v4097_v57 = vpop.f32.mrf.mxu0  ;;  %v4099_v44 = vpop.f32.mrf.mxu1  ;;  %v1192_v0 = vmax.f32 %v3865_v46, %v3880_v51 }
 0x119   :  { %5278 = vst [vmem:[#allocation56_spill] sm:$0xff] %v4092_v3  ;;  %v1163_v3 = vmax.f32 %v1162_v19, %v3889_v55  ;;  %v1222_v19 = vmax.f32 %v3874_v48, %v3882_v52 }
 0x11a   :  { %5279 = vst [vmem:[#allocation57_spill] sm:$0xff] %v4097_v57  ;;  %3144 = vmatmul.msk.bf16.gmra.mxu0 %vm192_vm1, %v3276_v20  ;;  %3157 = vmatmul.msk.bf16.gmra.mxu1 %vm192_vm1, %v3276_v20  ;;  %v1193_v18 = vmax.f32 %v1192_v0, %v3891_v56  ;;  %v1252_v0 = vmax.f32 %v3876_v49, %v3884_v53 }
 0x11b   :  { %5280 = vst [vmem:[#allocation58_spill] sm:$0xff] %v4099_v44  ;;  %v1164_v44 = vmax.f32 %v1163_v3, %v3904_v60 }
 0x11c   :  { %3218 = vmatmul.msk.bf16.gmra.mxu2 %vm192_vm1, %v3288_v27  ;;  %3231 = vmatmul.msk.bf16.gmra.mxu3 %vm192_vm1, %v3288_v27  ;;  %v1194_v57 = vmax.f32 %v1193_v18, %v3906_v61  ;;  %v1223_v61 = vmax.f32 %v1222_v19, %v3900_v58  ;;  %v1253_v60 = vmax.f32 %v1252_v0, %v3902_v59 }
 0x11d   :  { %v1165_v20 = vmax.f32 %v1164_v44, %v3915_v1 }
 0x11e   :  { %v1195_v27 = vmax.f32 %v1194_v57, %v3917_v2  ;;  %v1224_v57 = vmax.f32 %v1223_v61, %v3908_v62  ;;  %v1254_v55 = vmax.f32 %v1253_v60, %v3910_v63 }
 0x11f   :  { %v4116_v50 = vpop.f32.mrf.mxu2  ;;  %v4118_v45 = vpop.f32.mrf.mxu3  ;;  %v1166_v3 = vmax.f32 %v1165_v20, %v3930_v6 }
 0x120   :  { %5281 = vst [vmem:[#allocation59_spill] sm:$0xff] %v4116_v50  ;;  %v4120_v51 = vpop.f32.mrf.mxu0  ;;  %v4122_v46 = vpop.f32.mrf.mxu1  ;;  %v1196_v18 = vmax.f32 %v1195_v27, %v3932_v7  ;;  %v3277_v27 = vld [vmem:[%s5093_s1 + $0xf0] sm:$0xff]  ;;  %v1225_v19 = vmax.f32 %v1224_v57, %v3926_v4  ;;  %v1255_v0 = vmax.f32 %v1254_v55, %v3928_v5  ;;  %v5287_v5 = vld [vmem:[#allocation47_spill] sm:$0xff]  ;;  %v5288_v4 = vld [vmem:[#allocation48_spill] sm:$0xff] }
 0x121   :  { %5282 = vst [vmem:[#allocation60_spill] sm:$0xff] %v4118_v45  ;;  %v1167_v56 = vmax.f32 %v1166_v3, %v3941_v11 }
 0x122   :  { %v1197_v44 = vmax.f32 %v1196_v18, %v3943_v12  ;;  %v1256_v48 = vmax.f32 %v1255_v0, %v3936_v9 }
 0x123   :  { %v1168_v52 = vmax.f32 %v1167_v56, %v3956_v16  ;;  %v3289_v56 = vld [vmem:[%s5093_s1 + $0x154] sm:$0xff] }
 0x124   :  { %v1198_v53 = vmax.f32 %v1197_v44, %v3958_v17  ;;  %v1226_v44 = vmax.f32 %v1225_v19, %v3934_v8  ;;  %v1257_v62 = vmax.f32 %v1256_v48, %v3954_v15  ;;  %v5294_v15 = vld [vmem:[#allocation52_spill] sm:$0xff] }
 0x125   :  { %v1169_v60 = vmax.f32 %v1168_v52, %v3970_v25 }
 0x126   :  { %v1199_v18 = vmax.f32 %v1198_v53, %v3972_v26  ;;  %v1227_v63 = vmax.f32 %v1226_v44, %v3952_v14  ;;  %v1258_v0 = vmax.f32 %v1257_v62, %v3968_v23 }
 0x127   :  { %v4140_v49 = vpop.f32.mrf.mxu2  ;;  %v4142_v20 = vpop.f32.mrf.mxu3  ;;  %v1170_v57 = vmax.f32 %v1169_v60, %v3982_v30 }
 0x128   :  { %5283 = vst [vmem:[#allocation61_spill] sm:$0xff] %v4140_v49  ;;  %v4149_v3 = vpop.f32.mrf.mxu0  ;;  %v4151_v61 = vpop.f32.mrf.mxu1  ;;  %v1200_v55 = vmax.f32 %v1199_v18, %v3984_v31  ;;  %v1228_v19 = vmax.f32 %v1227_v63, %v3966_v22 }
 0x129   :  { %5284 = vst [vmem:[#allocation62_spill] sm:$0xff] %v4142_v20  ;;  %v1171_v52 = vmax.f32 %v1170_v57, %v3993_v35 }
 0x12a   :  { %3145 = vmatmul.msk.bf16.gmra.mxu0 %vm192_vm1, %v3277_v27  ;;  %3158 = vmatmul.msk.bf16.gmra.mxu1 %vm192_vm1, %v3277_v27  ;;  %v1201_v53 = vmax.f32 %v1200_v55, %v3995_v36  ;;  %v1229_v48 = vmax.f32 %v1228_v19, %v3978_v28 }
 0x12b   :  { %v1172_v60 = vmax.f32 %v1171_v52, %v4008_v40 }
 0x12c   :  { %3219 = vmatmul.msk.bf16.gmra.mxu2 %vm192_vm1, %v3289_v56  ;;  %3232 = vmatmul.msk.bf16.gmra.mxu3 %vm192_vm1, %v3289_v56  ;;  %v1202_v27 = vmax.f32 %v1201_v53, %v4010_v41  ;;  %v1259_v56 = vmax.f32 %v1258_v0, %v3980_v29  ;;  %v1230_v55 = vmax.f32 %v1229_v48, %v3986_v32  ;;  %v5296_v29 = vld [vmem:[#allocation44_spill] sm:$0xff] }
 0x12d   :  { %v1173_v63 = vmax.f32 %v1172_v60, %v4019_v47 }
 0x12e   :  { %v1203_v62 = vmax.f32 %v1202_v27, %v4021_v54  ;;  %v1260_v52 = vmax.f32 %v1259_v56, %v3988_v33  ;;  %v1231_v19 = vmax.f32 %v1230_v55, %v4004_v38  ;;  %v5291_v55 = vld [vmem:[#allocation41_spill] sm:$0xff]  ;;  %v5295_v33 = vld [vmem:[#allocation43_spill] sm:$0xff] }
 0x12f   :  { %v4174_v18 = vpop.f32.mrf.mxu2  ;;  %v4176_v44 = vpop.f32.mrf.mxu3  ;;  %v1174_v53 = vmax.f32 %v1173_v63, %v4034_v10 }
 0x130   :  { %5285 = vst [vmem:[#allocation63_spill] sm:$0xff] %v4174_v18  ;;  %v4180_v59 = vpop.f32.mrf.mxu0  ;;  %v4182_v57 = vpop.f32.mrf.mxu1  ;;  %v1204_v58 = vmax.f32 %v1203_v62, %v4036_v13  ;;  %v1261_v0 = vmax.f32 %v1260_v52, %v4006_v39  ;;  %v1232_v60 = vmax.f32 %v1231_v19, %v4012_v42  ;;  %v3278_v62 = vld [vmem:[%s5093_s1 + $0xf8] sm:$0xff] }
 0x131   :  { %5286 = vst [vmem:[#allocation64_spill] sm:$0xff] %v4176_v44  ;;  %v1175_v9 = vmax.f32 %v1174_v53, %v4045_v21  ;;  %v5292_v53 = vld [vmem:[#allocation42_spill] sm:$0xff] }
 0x132   :  { %v1205_v8 = vmax.f32 %v1204_v58, %v4047_v24  ;;  %v1262_v27 = vmax.f32 %v1261_v0, %v4014_v43  ;;  %v1233_v52 = vmax.f32 %v1232_v60, %v5291_v55  ;;  %v5297_v43 = vld [vmem:[#allocation45_spill] sm:$0xff]  ;;  %v5298_v39 = vld [vmem:[#allocation46_spill] sm:$0xff] }
 0x133   :  { %v1176_v48 = vmax.f32 %v1175_v9, %v5287_v5  ;;  %v5293_v9 = vld [vmem:[#allocation51_spill] sm:$0xff] }
 0x134   :  { %v1206_v56 = vmax.f32 %v1205_v8, %v5288_v4  ;;  %v1263_v58 = vmax.f32 %v1262_v27, %v5292_v53  ;;  %v3290_v8 = vld [vmem:[%s5093_s1 + $0x15c] sm:$0xff]  ;;  %v1234_v32 = vmax.f32 %v1233_v52, %v5295_v33  ;;  %v5300_v52 = vld [vmem:[#allocation58_spill] sm:$0xff] }
 0x135   :  { %v1177_v0 = vmax.f32 %v1176_v48, %v5293_v9  ;;  %v5299_v48 = vld [vmem:[#allocation57_spill] sm:$0xff]  ;;  %v5302_v33 = vld [vmem:[#allocation50_spill] sm:$0xff] }
 0x136   :  { %v1207_v14 = vmax.f32 %v1206_v56, %v5294_v15  ;;  %v1264_v28 = vmax.f32 %v1263_v58, %v5296_v29  ;;  %v1235_v42 = vmax.f32 %v1234_v32, %v5297_v43  ;;  %v5301_v29 = vld [vmem:[#allocation49_spill] sm:$0xff]  ;;  %v5306_v43 = vld [vmem:[#allocation54_spill] sm:$0xff] }
 0x137   :  { %v4198_v23 = vpop.f32.mrf.mxu2  ;;  %v4200_v63 = vpop.f32.mrf.mxu3  ;;  %v1178_v60 = vmax.f32 %v1177_v0, %v4086_v37 }
 0x138   :  { %5289 = vst [vmem:[#allocation47_spill] sm:$0xff] %v4198_v23  ;;  %v4207_v22 = vpop.f32.mrf.mxu0  ;;  %v4209_v19 = vpop.f32.mrf.mxu1  ;;  %v1208_v27 = vmax.f32 %v1207_v14, %v4088_v34  ;;  %v1265_v38 = vmax.f32 %v1264_v28, %v5298_v39  ;;  %v1236_v0 = vmax.f32 %v1235_v42, %v5301_v29  ;;  %v5305_v28 = vld [vmem:[#allocation53_spill] sm:$0xff] }
 0x139   :  { %5290 = vst [vmem:[#allocation48_spill] sm:$0xff] %v4200_v63  ;;  %v1179_v56 = vmax.f32 %v1178_v60, %v5299_v48 }
 0x13a   :  { %3146 = vmatmul.msk.bf16.gmra.mxu0 %vm192_vm1, %v3278_v62  ;;  %3159 = vmatmul.msk.bf16.gmra.mxu1 %vm192_vm1, %v3278_v62  ;;  %v1209_v58 = vmax.f32 %v1208_v27, %v5300_v52  ;;  %v1266_v14 = vmax.f32 %v1265_v38, %v5302_v33  ;;  %v1237_v39 = vmax.f32 %v1236_v0, %v5305_v28  ;;  %v5307_v27 = vld [vmem:[#allocation55_spill] sm:$0xff]  ;;  %v5308_v33 = vld [vmem:[#allocation56_spill] sm:$0xff] }
 0x13b   :  { %v1180_v53 = vmax.f32 %v1179_v56, %v4120_v51 }
 0x13c   :  { %3220 = vmatmul.msk.bf16.gmra.mxu2 %vm192_vm1, %v3290_v8  ;;  %3233 = vmatmul.msk.bf16.gmra.mxu3 %vm192_vm1, %v3290_v8  ;;  %v1210_v62 = vmax.f32 %v1209_v58, %v4122_v46  ;;  %v1267_v8 = vmax.f32 %v1266_v14, %v5306_v43  ;;  %v1238_v56 = vmax.f32 %v1237_v39, %v5307_v27 }
 0x13d   :  { %v1181_v42 = vmax.f32 %v1180_v53, %v4149_v3 }
 0x13e   :  { %v1211_v38 = vmax.f32 %v1210_v62, %v4151_v61  ;;  %v1268_v58 = vmax.f32 %v1267_v8, %v5308_v33  ;;  %v1239_v0 = vmax.f32 %v1238_v56, %v4116_v50 }
 0x13f   :  { %v4232_v55 = vpop.f32.mrf.mxu2  ;;  %v4234_v32 = vpop.f32.mrf.mxu3  ;;  %v1182_v29 = vmax.f32 %v1181_v42, %v4180_v59 }
 0x140   :  { %5303 = vst [vmem:[#allocation51_spill] sm:$0xff] %v4232_v55  ;;  %v4238_v7 = vpop.f32.mrf.mxu0  ;;  %v4240_v60 = vpop.f32.mrf.mxu1  ;;  %v1212_v6 = vmax.f32 %v1211_v38, %v4182_v57  ;;  %v1269_v14 = vmax.f32 %v1268_v58, %v4118_v45  ;;  %v1240_v53 = vmax.f32 %v1239_v0, %v4140_v49  ;;  %v3279_v38 = vld [vmem:[%s5093_s1 + $0x100] sm:$0xff] }
 0x141   :  { %5304 = vst [vmem:[#allocation52_spill] sm:$0xff] %v4234_v32  ;;  %v1183_v43 = vmax.f32 %v1182_v29, %v4207_v22 }
 0x142   :  { %v1213_v28 = vmax.f32 %v1212_v6, %v4209_v19  ;;  %v1270_v62 = vmax.f32 %v1269_v14, %v4142_v20  ;;  %v1241_v29 = vmax.f32 %v1240_v53, %v4174_v18 }
 0x143   :  { %v1184_v39 = vmax.f32 %v1183_v43, %v4238_v7  ;;  %v3291_v43 = vld [vmem:[%s5093_s1 + $0x164] sm:$0xff] }
 0x144   :  { %v1214_v8 = vmax.f32 %v1213_v28, %v4240_v60  ;;  %v1271_v6 = vmax.f32 %v1270_v62, %v4176_v44  ;;  %v1242_v14 = vmax.f32 %v1241_v29, %v4198_v23 }
 0x146   :  { %v1272_v27 = vmax.f32 %v1271_v6, %v4200_v63  ;;  %v1243_v53 = vmax.f32 %v1242_v14, %v4232_v55 }
 0x147   :  { %v4256_v33 = vpop.f32.mrf.mxu2  ;;  %v4258_v42 = vpop.f32.mrf.mxu3 }
 0x148   :  { %5309 = vst [vmem:[#allocation57_spill] sm:$0xff] %v4258_v42  ;;  %v308_v56 = vpop.f32.mrf.mxu0  ;;  %v381_v58 = vpop.f32.mrf.mxu1  ;;  %v1273_v62 = vmax.f32 %v1272_v27, %v4234_v32  ;;  %v1244_v29 = vmax.f32 %v1243_v53, %v4256_v33 }
 0x149   :  { %v1185_v0 = vmax.f32 %v1184_v39, %v308_v56  ;;  %v1215_v28 = vmax.f32 %v1214_v8, %v381_v58 }
 0x14a   :  { %3147 = vmatmul.msk.bf16.gmra.mxu0 %vm192_vm1, %v3279_v38  ;;  %3160 = vmatmul.msk.bf16.gmra.mxu1 %vm192_vm1, %v3279_v38  ;;  %v1274_v6 = vmax.f32 %v1273_v62, %v4258_v42 }
 0x14b   :  { %v1186_v20 = vrot.slane %v1185_v0, 4  ;;  %v1216_v49 = vrot.slane %v1215_v28, 4 }
 0x14c   :  { %3221 = vmatmul.msk.bf16.gmra.mxu2 %vm192_vm1, %v3291_v43  ;;  %3234 = vmatmul.msk.bf16.gmra.mxu3 %vm192_vm1, %v3291_v43 }
 0x14d   :  { %v1187_v39 = vmax.f32 %v1185_v0, %v1186_v20  ;;  %v1217_v8 = vmax.f32 %v1215_v28, %v1216_v49 }
 0x14f   :  { %v1188_v45 = vrot.slane %v1187_v39, 2  ;;  %v1218_v50 = vrot.slane %v1217_v8, 2  ;;  %v567_v63 = vpop.f32.mrf.mxu2  ;;  %v640_v23 = vpop.f32.mrf.mxu3 }
 0x150   :  { %v1245_v44 = vmax.f32 %v1244_v29, %v567_v63  ;;  %v1275_v38 = vmax.f32 %v1274_v6, %v640_v23  ;;  %v310_v18 = vpop.f32.mrf.mxu0  ;;  %v383_v14 = vpop.f32.mrf.mxu1 }
 0x151   :  { %v1189_v55 = vmax.f32 %v1187_v39, %v1188_v45  ;;  %v1219_v27 = vmax.f32 %v1217_v8, %v1218_v50  ;;  %v3280_v45 = vld [vmem:[%s5093_s1 + $0x108] sm:$0xff] }
 0x152   :  { %v1246_v32 = vrot.slane %v1245_v44, 4  ;;  %v1276_v2 = vrot.slane %v1275_v38, 4 }
 0x153   :  { %v1190_v1 = vrot.slane %v1189_v55, 1  ;;  %v1220_v43 = vrot.slane %v1219_v27, 1 }
 0x154   :  { %v1247_v20 = vmax.f32 %v1245_v44, %v1246_v32  ;;  %v1277_v49 = vmax.f32 %v1275_v38, %v1276_v2 }
 0x155   :  { %v4278_v0 = vmax.f32 %v1189_v55, %v1190_v1  ;;  %v4280_v28 = vmax.f32 %v1219_v27, %v1220_v43  ;;  %v3292_v55 = vld [vmem:[%s5093_s1 + $0x16c] sm:$0xff] }
 0x156   :  { %v1248_v53 = vrot.slane %v1247_v20, 2  ;;  %v1278_v62 = vrot.slane %v1277_v49, 2 }
 0x157   :  { %v1450_v42 = vsub.f32 %v308_v56, %v4278_v0  ;;  %v1451_v29 = vsub.f32 %v381_v58, %v4280_v28  ;;  %v569_v18 = vpop.f32.mrf.mxu2  ;;  %v642_v6 = vpop.f32.mrf.mxu3  ;;  %v1430_v50 = vsub.f32 %v4045_v21, %v4278_v0  ;;  %v1431_v1 = vsub.f32 %v4047_v24, %v4280_v28 }
 0x158   :  { %v1249_v2 = vmax.f32 %v1247_v20, %v1248_v53  ;;  %v1279_v44 = vmax.f32 %v1277_v49, %v1278_v62  ;;  %v1432_v32 = vsub.f32 %v5287_v5, %v4278_v0  ;;  %v1433_v56 = vsub.f32 %v5288_v4, %v4280_v28 }
 0x159   :  { %v1698_v58 = vmul.f32 1.442695, %v1450_v42  ;;  %v1700_v39 = vmul.f32 1.442695, %v1451_v29  ;;  %v1658_v8 = vmul.f32 1.442695, %v1430_v50  ;;  %v1426_v21 = vsub.f32 %v4019_v47, %v4278_v0 }
 0x15a   :  { %v1250_v38 = vrot.slane %v1249_v2, 1  ;;  %v1280_v24 = vrot.slane %v1279_v44, 1  ;;  %v1660_v14 = vmul.f32 1.442695, %v1431_v1  ;;  %3148 = vmatmul.msk.bf16.gmra.mxu0 %vm192_vm1, %v3280_v45  ;;  %3161 = vmatmul.msk.bf16.gmra.mxu1 %vm192_vm1, %v3280_v45  ;;  %v1662_v27 = vmul.f32 1.442695, %v1432_v32 }
 0x15b   :  { %3297 = vpow2.f32 %v1698_v58  ;;  %v1664_v43 = vmul.f32 1.442695, %v1433_v56  ;;  %v1427_v47 = vsub.f32 %v4021_v54, %v4280_v28  ;;  %v1428_v42 = vsub.f32 %v4034_v10, %v4278_v0 }
 0x15c   :  { %3299 = vpow2.f32 %v1700_v39  ;;  %v4302_v5 = vmax.f32 %v1249_v2, %v1250_v38  ;;  %v4304_v4 = vmax.f32 %v1279_v44, %v1280_v24  ;;  %3222 = vmatmul.msk.bf16.gmra.mxu2 %vm192_vm1, %v3292_v55  ;;  %3235 = vmatmul.msk.bf16.gmra.mxu3 %vm192_vm1, %v3292_v55  ;;  %v1650_v20 = vmul.f32 1.442695, %v1426_v21 }
 0x15d   :  { %3301 = vpow2.f32 %v1658_v8  ;;  %v1429_v62 = vsub.f32 %v4036_v13, %v4280_v28  ;;  %v1446_v29 = vsub.f32 %v4207_v22, %v4278_v0  ;;  %v1447_v54 = vsub.f32 %v4209_v19, %v4280_v28 }
 0x15e   :  { %v1500_v49 = vsub.f32 %v567_v63, %v4302_v5  ;;  %v1501_v53 = vsub.f32 %v640_v23, %v4304_v4  ;;  %3303 = vpow2.f32 %v1660_v14  ;;  %v1652_v10 = vmul.f32 1.442695, %v1427_v47 }
 0x15f   :  { %3305 = vpow2.f32 %v1662_v27  ;;  %v1654_v63 = vmul.f32 1.442695, %v1428_v42  ;;  %v1656_v23 = vmul.f32 1.442695, %v1429_v62  ;;  %v1448_v13 = vsub.f32 %v4238_v7, %v4278_v0 }
 0x160   :  { %v1798_v18 = vmul.f32 1.442695, %v1500_v49  ;;  %v1800_v6 = vmul.f32 1.442695, %v1501_v53  ;;  %3307 = vpow2.f32 %v1664_v43  ;;  %v1449_v1 = vsub.f32 %v4240_v60, %v4280_v28 }
 0x161   :  { %v3298_v45 = vpop.eup %3297  ;;  %3309 = vpow2.f32 %v1650_v20  ;;  %v1690_v19 = vmul.f32 1.442695, %v1446_v29  ;;  %v1692_v44 = vmul.f32 1.442695, %v1447_v54  ;;  %v1422_v32 = vsub.f32 %v3993_v35, %v4278_v0  ;;  %v3281_v20 = vld [vmem:[%s5093_s1 + $0x110] sm:$0xff] }
 0x162   :  { %v3300_v50 = vpop.eup %3299  ;;  %3311 = vpow2.f32 %v1798_v18  ;;  %v1423_v56 = vsub.f32 %v3995_v36, %v4280_v28  ;;  %v1424_v58 = vsub.f32 %v4008_v40, %v4278_v0  ;;  %v1694_v38 = vmul.f32 1.442695, %v1448_v13  ;;  %v4346_v13 = vpop.f32.mrf.mxu0 }
 0x163   :  { %v3302_v22 = vpop.eup %3301  ;;  %3313 = vpow2.f32 %v1800_v6  ;;  %v2026_v2 = vpack.c.bf16 %v3300_v50, %v3298_v45  ;;  %v1696_v24 = vmul.f32 1.442695, %v1449_v1  ;;  %v1425_v14 = vsub.f32 %v4010_v41, %v4280_v28  ;;  %5310 = vst [vmem:[#allocation58_spill] sm:$0xff] %v4346_v13 }
 0x164   :  { %v3304_v55 = vpop.eup %3303  ;;  %3315 = vpow2.f32 %v1652_v10  ;;  %v1642_v49 = vmul.f32 1.442695, %v1422_v32  ;;  %v1442_v53 = vsub.f32 %v4149_v3, %v4278_v0  ;;  %v1644_v54 = vmul.f32 1.442695, %v1423_v56  ;;  %v4348_v3 = vpop.f32.mrf.mxu1 }
 0x165   :  { %v3306_v7 = vpop.eup %3305  ;;  %v2016_v39 = vpack.c.bf16 %v3304_v55, %v3302_v22  ;;  %v2180_v8 = vunpack.c.l.b16 %v2026_v2  ;;  %v2181_v60 = vunpack.c.h.b16 %v2026_v2  ;;  %3317 = vpow2.f32 %v1654_v63  ;;  %v3293_v63 = vld [vmem:[%s5093_s1 + $0x174] sm:$0xff]  ;;  %5311 = vst [vmem:[#allocation65_spill] sm:$0xff] %v4348_v3 }
 0x166   :  { %v3308_v21 = vpop.eup %3307  ;;  %3319 = vpow2.f32 %v1656_v23  ;;  %v1646_v18 = vmul.f32 1.442695, %v1424_v58  ;;  %v1648_v50 = vmul.f32 1.442695, %v1425_v14  ;;  %v1444_v55 = vsub.f32 %v4180_v59, %v4278_v0 }
 0x167   :  { %v3310_v27 = vpop.eup %3309  ;;  %v2017_v35 = vpack.c.bf16 %v3308_v21, %v3306_v7  ;;  %v2160_v43 = vunpack.c.l.b16 %v2016_v39  ;;  %v2161_v47 = vunpack.c.h.b16 %v2016_v39  ;;  %v2206_v36 = vpack.c.b16 %v2180_v8, %v2180_v8 }
 0x168   :  { %v4332_v42 = vpop.eup %3311  ;;  %v2207_v40 = vpack.c.b16 %v2181_v60, %v2181_v60  ;;  %3321 = vpow2.f32 %v1690_v19  ;;  %v1445_v32 = vsub.f32 %v4182_v57, %v4280_v28  ;;  %v1682_v8 = vmul.f32 1.442695, %v1442_v53 }
 0x169   :  { %v4339_v62 = vpop.eup %3313  ;;  %v2162_v41 = vunpack.c.l.b16 %v2017_v35  ;;  %v2163_v29 = vunpack.c.h.b16 %v2017_v35  ;;  %v2236_v10 = vsel %vm232_vm0, %v2206_v36, 0  ;;  %3323 = vpow2.f32 %v1692_v44 }
 0x16a   :  { %v3316_v6 = vpop.eup %3315  ;;  %v2239_v45 = vsel %vm232_vm0, %v2207_v40, 0  ;;  %2257 = vmatpush.bf16.msra.mxu1 %v2236_v10  ;;  %3325 = vpow2.f32 %v1694_v38  ;;  %3149 = vmatmul.msk.bf16.gmra.mxu0 %vm192_vm1, %v3281_v20  ;;  %v1443_v44 = vsub.f32 %v4151_v61, %v4280_v28  ;;  %v1686_v57 = vmul.f32 1.442695, %v1444_v55 }
 0x16b   :  { %v3318_v23 = vpop.eup %3317  ;;  %v2196_v1 = vpack.c.b16 %v2162_v41, %v2160_v43  ;;  %v2197_v22 = vpack.c.b16 %v2163_v29, %v2161_v47  ;;  %2283 = vmatpush.bf16.msra.mxu3 %v2239_v45  ;;  %v2014_v2 = vpack.c.bf16 %v3316_v6, %v3310_v27  ;;  %3162 = vmatmul.msk.bf16.gmra.mxu1 %vm192_vm1, %v3281_v20  ;;  %3327 = vpow2.f32 %v1696_v24  ;;  %v4366_v29 = vpop.f32.mrf.mxu2 }
 0x16c   :  { %v3320_v19 = vpop.eup %3319  ;;  %3329 = vpow2.f32 %v1642_v49  ;;  %3223 = vmatmul.msk.bf16.gmra.mxu2 %vm192_vm1, %v3293_v63  ;;  %3236 = vmatmul.msk.bf16.gmra.mxu3 %vm192_vm1, %v3293_v63  ;;  %v1684_v59 = vmul.f32 1.442695, %v1443_v44  ;;  %v1418_v38 = vsub.f32 %v3970_v25, %v4278_v0  ;;  %v1688_v43 = vmul.f32 1.442695, %v1445_v32  ;;  %5312 = vst [vmem:[#allocation66_spill] sm:$0xff] %v4366_v29  ;;  %v4374_v45 = vpop.f32.mrf.mxu1 }
 0x16d   :  { %2241 = vmatpush.bf16.msra.mxu0 %v2196_v1  ;;  %2267 = vmatpush.bf16.msra.mxu2 %v2197_v22  ;;  %v2015_v56 = vpack.c.bf16 %v3320_v19, %v3318_v23  ;;  %v2156_v58 = vunpack.c.l.b16 %v2014_v2  ;;  %v2157_v7 = vunpack.c.h.b16 %v2014_v2  ;;  %3331 = vpow2.f32 %v1644_v54  ;;  %v4368_v54 = vpop.f32.mrf.mxu3  ;;  %5315 = vst [vmem:[#allocation69_spill] sm:$0xff] %v4374_v45 }
 0x16e   :  { %v3322_v39 = vpop.eup %3321  ;;  %3333 = vpow2.f32 %v1646_v18  ;;  %v1419_v36 = vsub.f32 %v3972_v26, %v4280_v28  ;;  %v1420_v40 = vsub.f32 %v3982_v30, %v4278_v0  ;;  %5313 = vst [vmem:[#allocation67_spill] sm:$0xff] %v4368_v54  ;;  %v1421_v18 = vsub.f32 %v3984_v31, %v4280_v28  ;;  %v4372_v30 = vpop.f32.mrf.mxu0 }
 0x16f   :  { %v2158_v61 = vunpack.c.l.b16 %v2015_v56  ;;  %v2159_v60 = vunpack.c.h.b16 %v2015_v56  ;;  %v3324_v21 = vpop.eup %3323  ;;  %3335 = vpow2.f32 %v1648_v50  ;;  %v1634_v26 = vmul.f32 1.442695, %v1418_v38  ;;  %5314 = vst [vmem:[#allocation68_spill] sm:$0xff] %v4372_v30 }
 0x170   :  { %v3326_v24 = vpop.eup %3325  ;;  %v2024_v35 = vpack.c.bf16 %v3324_v21, %v3322_v39  ;;  %3337 = vpow2.f32 %v1682_v8  ;;  %v1636_v6 = vmul.f32 1.442695, %v1419_v36  ;;  %v1638_v22 = vmul.f32 1.442695, %v1420_v40 }
 0x171   :  { %v2194_v14 = vpack.c.b16 %v2158_v61, %v2156_v58  ;;  %v2195_v27 = vpack.c.b16 %v2159_v60, %v2157_v7  ;;  %v3328_v47 = vpop.eup %3327  ;;  %3339 = vpow2.f32 %v1684_v59  ;;  %v1640_v2 = vmul.f32 1.442695, %v1421_v18  ;;  %v3282_v59 = vld [vmem:[%s5093_s1 + $0x118] sm:$0xff] }
 0x172   :  { %v3330_v20 = vpop.eup %3329  ;;  %v2025_v49 = vpack.c.bf16 %v3328_v47, %v3326_v24  ;;  %v2176_v53 = vunpack.c.l.b16 %v2024_v35  ;;  %v2177_v41 = vunpack.c.h.b16 %v2024_v35  ;;  %3341 = vpow2.f32 %v1686_v57 }
 0x173   :  { %2242 = vmatpush.bf16.msra.mxu0 %v2194_v14  ;;  %2268 = vmatpush.bf16.msra.mxu2 %v2195_v27  ;;  %v3332_v25 = vpop.eup %3331  ;;  %3343 = vpow2.f32 %v1688_v43  ;;  %v1438_v19 = vsub.f32 %v5299_v48, %v4278_v0  ;;  %v1439_v7 = vsub.f32 %v5300_v52, %v4280_v28  ;;  %v1440_v39 = vsub.f32 %v4120_v51, %v4278_v0  ;;  %v3294_v51 = vld [vmem:[%s5093_s1 + $0x17c] sm:$0xff] }
 0x174   :  { %v3334_v10 = vpop.eup %3333  ;;  %v2178_v63 = vunpack.c.l.b16 %v2025_v49  ;;  %v2179_v50 = vunpack.c.h.b16 %v2025_v49  ;;  %v2012_v23 = vpack.c.bf16 %v3332_v25, %v3330_v20  ;;  %3345 = vpow2.f32 %v1634_v26  ;;  %v4392_v49 = vpop.f32.mrf.mxu2 }
 0x175   :  { %v3336_v1 = vpop.eup %3335  ;;  %3347 = vpow2.f32 %v1636_v6  ;;  %v1441_v48 = vsub.f32 %v4122_v46, %v4280_v28  ;;  %v1674_v52 = vmul.f32 1.442695, %v1438_v19  ;;  %v1676_v38 = vmul.f32 1.442695, %v1439_v7  ;;  %5316 = vst [vmem:[#allocation70_spill] sm:$0xff] %v4392_v49  ;;  %v4400_v6 = vpop.f32.mrf.mxu1 }
 0x176   :  { %v2204_v44 = vpack.c.b16 %v2178_v63, %v2176_v53  ;;  %v2205_v31 = vpack.c.b16 %v2179_v50, %v2177_v41  ;;  %v2013_v55 = vpack.c.bf16 %v3336_v1, %v3334_v10  ;;  %v2152_v32 = vunpack.c.l.b16 %v2012_v23  ;;  %v3338_v56 = vpop.eup %3337  ;;  %v4394_v53 = vpop.f32.mrf.mxu3  ;;  %5319 = vst [vmem:[#allocation73_spill] sm:$0xff] %v4400_v6 }
 0x177   :  { %v2153_v58 = vunpack.c.h.b16 %v2012_v23  ;;  %v3340_v8 = vpop.eup %3339  ;;  %3349 = vpow2.f32 %v1638_v22  ;;  %v1678_v35 = vmul.f32 1.442695, %v1440_v39  ;;  %v1680_v43 = vmul.f32 1.442695, %v1441_v48  ;;  %5317 = vst [vmem:[#allocation71_spill] sm:$0xff] %v4394_v53  ;;  %v4398_v26 = vpop.f32.mrf.mxu0 }
 0x178   :  { %2258 = vmatpush.bf16.msra.mxu1 %v2204_v44  ;;  %2284 = vmatpush.bf16.msra.mxu3 %v2205_v31  ;;  %v2154_v61 = vunpack.c.l.b16 %v2013_v55  ;;  %v2155_v60 = vunpack.c.h.b16 %v2013_v55  ;;  %v3342_v21 = vpop.eup %3341  ;;  %v2022_v57 = vpack.c.bf16 %v3340_v8, %v3338_v56  ;;  %3351 = vpow2.f32 %v1640_v2  ;;  %5318 = vst [vmem:[#allocation72_spill] sm:$0xff] %v4398_v26 }
 0x179   :  { %v3344_v24 = vpop.eup %3343  ;;  %3353 = vpow2.f32 %v1674_v52  ;;  %v1414_v63 = vsub.f32 %v3941_v11, %v4278_v0  ;;  %v1415_v50 = vsub.f32 %v3943_v12, %v4280_v28  ;;  %v1416_v2 = vsub.f32 %v3956_v16, %v4278_v0 }
 0x17a   :  { %v2192_v14 = vpack.c.b16 %v2154_v61, %v2152_v32  ;;  %v2193_v27 = vpack.c.b16 %v2155_v60, %v2153_v58  ;;  %v3346_v47 = vpop.eup %3345  ;;  %v2023_v46 = vpack.c.bf16 %v3344_v24, %v3342_v21  ;;  %v2172_v36 = vunpack.c.l.b16 %v2022_v57  ;;  %3150 = vmatmul.msk.bf16.gmra.mxu0 %vm192_vm1, %v3282_v59 }
 0x17b   :  { %v2173_v40 = vunpack.c.h.b16 %v2022_v57  ;;  %3163 = vmatmul.msk.bf16.gmra.mxu1 %vm192_vm1, %v3282_v59  ;;  %3355 = vpow2.f32 %v1676_v38  ;;  %v3348_v20 = vpop.eup %3347  ;;  %v1417_v19 = vsub.f32 %v3958_v17, %v4280_v28  ;;  %v1626_v32 = vmul.f32 1.442695, %v1414_v63 }
 0x17c   :  { %2243 = vmatpush.bf16.msra.mxu0 %v2192_v14  ;;  %2269 = vmatpush.bf16.msra.mxu2 %v2193_v27  ;;  %v2174_v41 = vunpack.c.l.b16 %v2023_v46  ;;  %v2175_v25 = vunpack.c.h.b16 %v2023_v46  ;;  %3357 = vpow2.f32 %v1678_v35  ;;  %v2010_v10 = vpack.c.bf16 %v3348_v20, %v3346_v47  ;;  %v4418_v35 = vpop.f32.mrf.mxu2  ;;  %v5322_v46 = vld [vmem:[#allocation21_spill] sm:$0xff] }
 0x17d   :  { %3224 = vmatmul.msk.bf16.gmra.mxu2 %vm192_vm1, %v3294_v51  ;;  %3237 = vmatmul.msk.bf16.gmra.mxu3 %vm192_vm1, %v3294_v51  ;;  %v3350_v18 = vpop.eup %3349  ;;  %3359 = vpow2.f32 %v1680_v43  ;;  %v1628_v11 = vmul.f32 1.442695, %v1415_v50  ;;  %v1630_v58 = vmul.f32 1.442695, %v1416_v2  ;;  %v1632_v7 = vmul.f32 1.442695, %v1417_v19 }
 0x17e   :  { %v3352_v23 = vpop.eup %3351  ;;  %v2202_v1 = vpack.c.b16 %v2174_v41, %v2172_v36  ;;  %v2203_v22 = vpack.c.b16 %v2175_v25, %v2173_v40  ;;  %v2148_v31 = vunpack.c.l.b16 %v2010_v10  ;;  %v2149_v55 = vunpack.c.h.b16 %v2010_v10  ;;  %5320 = vst [vmem:[#allocation74_spill] sm:$0xff] %v4418_v35  ;;  %v4428_v41 = vpop.f32.mrf.mxu1  ;;  %v5325_v25 = vld [vmem:[#allocation22_spill] sm:$0xff]  ;;  %v5326_v10 = vld [vmem:[#allocation25_spill] sm:$0xff] }
 0x17f   :  { %v2011_v44 = vpack.c.bf16 %v3352_v23, %v3350_v18  ;;  %v3354_v56 = vpop.eup %3353  ;;  %v1434_v12 = vsub.f32 %v5293_v9, %v4278_v0  ;;  %3361 = vpow2.f32 %v1626_v32  ;;  %v1435_v16 = vsub.f32 %v5294_v15, %v4280_v28  ;;  %v4426_v20 = vpop.f32.mrf.mxu0  ;;  %5324 = vst [vmem:[#allocation76_spill] sm:$0xff] %v4428_v41  ;;  %v5327_v50 = vld [vmem:[#allocation26_spill] sm:$0xff] }
 0x180   :  { %2259 = vmatpush.bf16.msra.mxu1 %v2202_v1  ;;  %2285 = vmatpush.bf16.msra.mxu3 %v2203_v22  ;;  %3363 = vpow2.f32 %v1628_v11  ;;  %v1436_v48 = vsub.f32 %v4086_v37, %v4278_v0  ;;  %v1437_v59 = vsub.f32 %v4088_v34, %v4280_v28  ;;  %v4420_v37 = vpop.f32.mrf.mxu3  ;;  %v2051_v47 = vpack.c.bf16 %v4339_v62, %v4332_v42 }
 0x181   :  { %v3356_v39 = vpop.eup %3355  ;;  %v2150_v8 = vunpack.c.l.b16 %v2011_v44  ;;  %v2151_v61 = vunpack.c.h.b16 %v2011_v44  ;;  %3365 = vpow2.f32 %v1630_v58  ;;  %v1666_v9 = vmul.f32 1.442695, %v1434_v12  ;;  %5321 = vst [vmem:[#allocation75_spill] sm:$0xff] %v4420_v37 }
 0x182   :  { %v3358_v17 = vpop.eup %3357  ;;  %v2020_v60 = vpack.c.bf16 %v3356_v39, %v3354_v56  ;;  %3367 = vpow2.f32 %v1632_v7  ;;  %v1668_v15 = vmul.f32 1.442695, %v1435_v16  ;;  %v1670_v14 = vmul.f32 1.442695, %v1436_v48  ;;  %5323 = vst [vmem:[#allocation21_spill] sm:$0xff] %v4426_v20 }
 0x183   :  { %v3360_v21 = vpop.eup %3359  ;;  %v2190_v57 = vpack.c.b16 %v2150_v8, %v2148_v31  ;;  %v2191_v52 = vpack.c.b16 %v2151_v61, %v2149_v55  ;;  %3369 = vpow2.f32 %v1666_v9  ;;  %v1672_v27 = vmul.f32 1.442695, %v1437_v59  ;;  %v5329_v9 = vld [vmem:[#allocation52_spill] sm:$0xff] }
 0x184   :  { %v2021_v38 = vpack.c.bf16 %v3360_v21, %v3358_v17  ;;  %v2168_v51 = vunpack.c.l.b16 %v2020_v60  ;;  %v2169_v24 = vunpack.c.h.b16 %v2020_v60  ;;  %v1410_v36 = vsub.f32 %v5322_v46, %v4278_v0 }
 0x185   :  { %2244 = vmatpush.bf16.msra.mxu0 %v2190_v57  ;;  %2270 = vmatpush.bf16.msra.mxu2 %v2191_v52  ;;  %v3362_v40 = vpop.eup %3361  ;;  %3371 = vpow2.f32 %v1668_v15  ;;  %v1411_v18 = vsub.f32 %v5325_v25, %v4280_v28  ;;  %v1412_v63 = vsub.f32 %v5326_v10, %v4278_v0  ;;  %v1413_v23 = vsub.f32 %v5327_v50, %v4280_v28  ;;  %v5328_v57 = vld [vmem:[#allocation51_spill] sm:$0xff] }
 0x186   :  { %v2170_v34 = vunpack.c.l.b16 %v2021_v38  ;;  %v2171_v43 = vunpack.c.h.b16 %v2021_v38  ;;  %v3364_v1 = vpop.eup %3363  ;;  %3373 = vpow2.f32 %v1670_v14  ;;  %v2371_v22 = vunpack.c.l.b16 %v2051_v47 }
 0x187   :  { %v3366_v2 = vpop.eup %3365  ;;  %v2008_v19 = vpack.c.bf16 %v3364_v1, %v3362_v40  ;;  %3375 = vpow2.f32 %v1672_v27  ;;  %v2372_v44 = vunpack.c.h.b16 %v2051_v47  ;;  %v1618_v31 = vmul.f32 1.442695, %v1410_v36  ;;  %v4443_v27 = vpop.f32.mrf.mxu2  ;;  %v5332_v36 = vld [vmem:[#allocation57_spill] sm:$0xff] }
 0x188   :  { %v2200_v42 = vpack.c.b16 %v2170_v34, %v2168_v51  ;;  %v2201_v62 = vpack.c.b16 %v2171_v43, %v2169_v24  ;;  %v3368_v55 = vpop.eup %3367  ;;  %v2397_v32 = vpack.c.b16 %v2371_v22, %v2371_v22  ;;  %v1620_v56 = vmul.f32 1.442695, %v1411_v18  ;;  %5330 = vst [vmem:[#allocation22_spill] sm:$0xff] %v4443_v27  ;;  %v4445_v34 = vpop.f32.mrf.mxu3 }
 0x189   :  { %v1622_v11 = vmul.f32 1.442695, %v1412_v63  ;;  %v3370_v58 = vpop.eup %3369  ;;  %v2009_v7 = vpack.c.bf16 %v3368_v55, %v3366_v2  ;;  %v2144_v12 = vunpack.c.l.b16 %v2008_v19  ;;  %v2145_v39 = vunpack.c.h.b16 %v2008_v19  ;;  %5331 = vst [vmem:[#allocation25_spill] sm:$0xff] %v4445_v34  ;;  %v4449_v25 = vpop.f32.mrf.mxu0  ;;  %v5335_v2 = vld [vmem:[#allocation13_spill] sm:$0xff] }
 0x18a   :  { %2260 = vmatpush.bf16.msra.mxu1 %v2200_v42  ;;  %2286 = vmatpush.bf16.msra.mxu3 %v2201_v62  ;;  %v1624_v8 = vmul.f32 1.442695, %v1413_v23  ;;  %v2398_v61 = vpack.c.b16 %v2372_v44, %v2372_v44  ;;  %3377 = vpow2.f32 %v1618_v31  ;;  %v2426_v48 = vsel %vm232_vm0, %v2397_v32, 0  ;;  %5333 = vst [vmem:[#allocation26_spill] sm:$0xff] %v4449_v25  ;;  %v4451_v18 = vpop.f32.mrf.mxu1  ;;  %v5336_v44 = vld [vmem:[#allocation14_spill] sm:$0xff]  ;;  %v5337_v55 = vld [vmem:[#allocation17_spill] sm:$0xff] }
 0x18b   :  { %v3372_v16 = vpop.eup %3371  ;;  %v2146_v17 = vunpack.c.l.b16 %v2009_v7  ;;  %v2147_v60 = vunpack.c.h.b16 %v2009_v7  ;;  %3379 = vpow2.f32 %v1620_v56  ;;  %v1496_v52 = vsub.f32 %v5328_v57, %v4302_v5  ;;  %5334 = vst [vmem:[#allocation51_spill] sm:$0xff] %v4451_v18 }
 0x18c   :  { %v3374_v59 = vpop.eup %3373  ;;  %v2018_v21 = vpack.c.bf16 %v3372_v16, %v3370_v58  ;;  %3381 = vpow2.f32 %v1622_v11  ;;  %v1497_v38 = vsub.f32 %v5329_v9, %v4304_v4  ;;  %v1498_v14 = vsub.f32 %v4256_v33, %v4302_v5 }
 0x18d   :  { %v3376_v51 = vpop.eup %3375  ;;  %v2188_v24 = vpack.c.b16 %v2146_v17, %v2144_v12  ;;  %v2189_v15 = vpack.c.b16 %v2147_v60, %v2145_v39  ;;  %3383 = vpow2.f32 %v1624_v8  ;;  %v1499_v40 = vsub.f32 %v5332_v36, %v4304_v4  ;;  %v5338_v39 = vld [vmem:[#allocation18_spill] sm:$0xff] }
 0x18e   :  { %v2019_v43 = vpack.c.bf16 %v3376_v51, %v3374_v59  ;;  %v2164_v47 = vunpack.c.l.b16 %v2018_v21  ;;  %v2165_v46 = vunpack.c.h.b16 %v2018_v21  ;;  %v1790_v10 = vmul.f32 1.442695, %v1496_v52  ;;  %v5339_v52 = vld [vmem:[#allocation63_spill] sm:$0xff] }
 0x18f   :  { %2245 = vmatpush.bf16.msra.mxu0 %v2188_v24  ;;  %2271 = vmatpush.bf16.msra.mxu2 %v2189_v15  ;;  %v1792_v63 = vmul.f32 1.442695, %v1497_v38  ;;  %v1794_v50 = vmul.f32 1.442695, %v1498_v14  ;;  %v2429_v42 = vsel %vm232_vm0, %v2398_v61, 0  ;;  %v1406_v19 = vsub.f32 %v5335_v2, %v4278_v0  ;;  %v5340_v24 = vld [vmem:[#allocation64_spill] sm:$0xff] }
 0x190   :  { %v3378_v33 = vpop.eup %3377  ;;  %v2166_v23 = vunpack.c.l.b16 %v2019_v43  ;;  %v2167_v1 = vunpack.c.h.b16 %v2019_v43  ;;  %v1796_v62 = vmul.f32 1.442695, %v1499_v40  ;;  %3385 = vpow2.f32 %v1790_v10  ;;  %v5341_v43 = vld [vmem:[#allocation47_spill] sm:$0xff] }
 0x191   :  { %v3380_v22 = vpop.eup %3379  ;;  %v1407_v31 = vsub.f32 %v5336_v44, %v4280_v28  ;;  %v1408_v32 = vsub.f32 %v5337_v55, %v4278_v0  ;;  %3387 = vpow2.f32 %v1792_v63  ;;  %v1409_v8 = vsub.f32 %v5338_v39, %v4280_v28 }
 0x192   :  { %v3382_v56 = vpop.eup %3381  ;;  %v2198_v11 = vpack.c.b16 %v2166_v23, %v2164_v47  ;;  %v2199_v58 = vpack.c.b16 %v2167_v1, %v2165_v46  ;;  %v2006_v7 = vpack.c.bf16 %v3380_v22, %v3378_v33  ;;  %3389 = vpow2.f32 %v1794_v50  ;;  %v4470_v50 = vpop.f32.mrf.mxu2 }
 0x193   :  { %v3384_v12 = vpop.eup %3383  ;;  %v1610_v61 = vmul.f32 1.442695, %v1406_v19  ;;  %v1612_v16 = vmul.f32 1.442695, %v1407_v31  ;;  %3391 = vpow2.f32 %v1796_v62  ;;  %v1614_v21 = vmul.f32 1.442695, %v1408_v32  ;;  %v4472_v33 = vpop.f32.mrf.mxu3 }
 0x194   :  { %2261 = vmatpush.bf16.msra.mxu1 %v2198_v11  ;;  %2287 = vmatpush.bf16.msra.mxu3 %v2199_v58  ;;  %v2007_v17 = vpack.c.bf16 %v3384_v12, %v3382_v56  ;;  %v2140_v60 = vunpack.c.l.b16 %v2006_v7  ;;  %v2141_v59 = vunpack.c.h.b16 %v2006_v7  ;;  %v1616_v57 = vmul.f32 1.442695, %v1409_v8  ;;  %5343 = vst [vmem:[#allocation52_spill] sm:$0xff] %v4470_v50  ;;  %v4474_v62 = vpop.f32.mrf.mxu0  ;;  %v4476_v22 = vpop.f32.mrf.mxu1  ;;  %v5347_v31 = vld [vmem:[#allocation5_spill] sm:$0xff]  ;;  %v5348_v32 = vld [vmem:[#allocation6_spill] sm:$0xff] }
 0x195   :  { %3393 = vpow2.f32 %v1610_v61  ;;  %v1492_v9 = vsub.f32 %v5339_v52, %v4302_v5  ;;  %v1493_v15 = vsub.f32 %v5340_v24, %v4304_v4  ;;  %v1494_v47 = vsub.f32 %v5341_v43, %v4302_v5  ;;  %5344 = vst [vmem:[#allocation57_spill] sm:$0xff] %v4472_v33  ;;  %v5349_v11 = vld [vmem:[#allocation9_spill] sm:$0xff] }
 0x196   :  { %v2142_v38 = vunpack.c.l.b16 %v2007_v17  ;;  %v2143_v51 = vunpack.c.h.b16 %v2007_v17  ;;  %3395 = vpow2.f32 %v1612_v16  ;;  %v3386_v14 = vpop.eup %3385  ;;  %5345 = vst [vmem:[#allocation13_spill] sm:$0xff] %v4474_v62  ;;  %v1402_v55 = vsub.f32 %v5347_v31, %v4278_v0  ;;  %v5350_v16 = vld [vmem:[#allocation10_spill] sm:$0xff]  ;;  %v5351_v24 = vld [vmem:[#allocation45_spill] sm:$0xff] }
 0x197   :  { %3397 = vpow2.f32 %v1614_v21  ;;  %v1782_v36 = vmul.f32 1.442695, %v1492_v9  ;;  %v3388_v40 = vpop.eup %3387  ;;  %v1784_v23 = vmul.f32 1.442695, %v1493_v15  ;;  %5346 = vst [vmem:[#allocation14_spill] sm:$0xff] %v4476_v22  ;;  %v1403_v56 = vsub.f32 %v5348_v32, %v4280_v28 }
 0x198   :  { %2447 = vmatpush.bf16.msrb.mxu1 %v2426_v48  ;;  %2473 = vmatpush.bf16.msrb.mxu3 %v2429_v42  ;;  %v5342_v48 = vld [vmem:[#allocation48_spill] sm:$0xff]  ;;  %v2186_v10 = vpack.c.b16 %v2142_v38, %v2140_v60  ;;  %v2187_v63 = vpack.c.b16 %v2143_v51, %v2141_v59  ;;  %3399 = vpow2.f32 %v1616_v57  ;;  %v3390_v1 = vpop.eup %3389  ;;  %v2049_v42 = vpack.c.bf16 %v3388_v40, %v3386_v14  ;;  %v5352_v14 = vld [vmem:[#allocation46_spill] sm:$0xff] }
 0x199   :  { %v1495_v46 = vsub.f32 %v5342_v48, %v4304_v4  ;;  %3401 = vpow2.f32 %v1782_v36  ;;  %v1786_v2 = vmul.f32 1.442695, %v1494_v47  ;;  %v3392_v44 = vpop.eup %3391  ;;  %v1404_v58 = vsub.f32 %v5349_v11, %v4278_v0 }
 0x19a   :  { %2246 = vmatpush.bf16.msra.mxu0 %v2186_v10  ;;  %2272 = vmatpush.bf16.msra.mxu2 %v2187_v63  ;;  %3403 = vpow2.f32 %v1784_v23  ;;  %v2050_v12 = vpack.c.bf16 %v3392_v44, %v3390_v1  ;;  %v2367_v39 = vunpack.c.l.b16 %v2049_v42  ;;  %v2368_v8 = vunpack.c.h.b16 %v2049_v42  ;;  %v5353_v63 = vld [vmem:[#allocation49_spill] sm:$0xff]  ;;  %v5354_v1 = vld [vmem:[#allocation50_spill] sm:$0xff] }
 0x19b   :  { %v1788_v19 = vmul.f32 1.442695, %v1495_v46  ;;  %v3394_v7 = vpop.eup %3393  ;;  %3405 = vpow2.f32 %v1786_v2  ;;  %v1405_v17 = vsub.f32 %v5350_v16, %v4280_v28  ;;  %v1602_v60 = vmul.f32 1.442695, %v1402_v55 }
 0x19c   :  { %v3396_v61 = vpop.eup %3395  ;;  %v1604_v59 = vmul.f32 1.442695, %v1403_v56  ;;  %v2369_v57 = vunpack.c.l.b16 %v2050_v12  ;;  %v2370_v52 = vunpack.c.h.b16 %v2050_v12  ;;  %v1606_v38 = vmul.f32 1.442695, %v1404_v58  ;;  %v4494_v58 = vpop.f32.mrf.mxu2 }
 0x19d   :  { %3407 = vpow2.f32 %v1788_v19  ;;  %v3398_v21 = vpop.eup %3397  ;;  %v2004_v9 = vpack.c.bf16 %v3396_v61, %v3394_v7  ;;  %v1608_v0 = vmul.f32 1.442695, %v1405_v17  ;;  %v1480_v15 = vsub.f32 %v5351_v24, %v4302_v5  ;;  %5355 = vst [vmem:[#allocation17_spill] sm:$0xff] %v4494_v58  ;;  %v4496_v7 = vpop.f32.mrf.mxu3 }
 0x19e   :  { %v3400_v51 = vpop.eup %3399  ;;  %3409 = vpow2.f32 %v1602_v60  ;;  %v1481_v43 = vsub.f32 %v5352_v14, %v4304_v4  ;;  %v2395_v48 = vpack.c.b16 %v2369_v57, %v2367_v39  ;;  %v2396_v46 = vpack.c.b16 %v2370_v52, %v2368_v8  ;;  %5356 = vst [vmem:[#allocation18_spill] sm:$0xff] %v4496_v7  ;;  %v4498_v16 = vpop.f32.mrf.mxu0  ;;  %v3283_v57 = vld [vmem:[%s5093_s1 + $0x120] sm:$0xff] }
 0x19f   :  { %v3402_v47 = vpop.eup %3401  ;;  %v2005_v28 = vpack.c.bf16 %v3400_v51, %v3398_v21  ;;  %v2136_v36 = vunpack.c.l.b16 %v2004_v9  ;;  %v2137_v10 = vunpack.c.h.b16 %v2004_v9  ;;  %3411 = vpow2.f32 %v1604_v59  ;;  %v4500_v17 = vpop.f32.mrf.mxu1  ;;  %v3295_v52 = vld [vmem:[%s5093_s1 + $0x184] sm:$0xff]  ;;  %3151 = vmatmul.msk.bf16.gmra.mxu0 %vm192_vm1, %v3283_v57  ;;  %3164 = vmatmul.msk.bf16.gmra.mxu1 %vm192_vm1, %v3283_v57 }
 0x1a0   :  { %v3404_v40 = vpop.eup %3403  ;;  %v1482_v23 = vsub.f32 %v5353_v63, %v4302_v5  ;;  %v1483_v42 = vsub.f32 %v5354_v1, %v4304_v4  ;;  %2448 = vmatpush.bf16.msrb.mxu1 %v2395_v48  ;;  %2474 = vmatpush.bf16.msrb.mxu3 %v2396_v46  ;;  %3413 = vpow2.f32 %v1606_v38  ;;  %v1758_v32 = vmul.f32 1.442695, %v1480_v15  ;;  %v5358_v15 = vld [vmem:[#allocation60_spill] sm:$0xff] }
 0x1a1   :  { %v3406_v2 = vpop.eup %3405  ;;  %v2138_v19 = vunpack.c.l.b16 %v2005_v28  ;;  %v2139_v44 = vunpack.c.h.b16 %v2005_v28  ;;  %v2047_v31 = vpack.c.bf16 %v3404_v40, %v3402_v47  ;;  %3415 = vpow2.f32 %v1608_v0  ;;  %v5357_v0 = vld [vmem:[#allocation59_spill] sm:$0xff]  ;;  %3225 = vmatmul.msk.bf16.gmra.mxu2 %vm192_vm1, %v3295_v52  ;;  %3238 = vmatmul.msk.bf16.gmra.mxu3 %vm192_vm1, %v3295_v52  ;;  %v5364_v52 = vld [vmem:[#allocation44_spill] sm:$0xff] }
 0x1a2   :  { %v1760_v56 = vmul.f32 1.442695, %v1481_v43  ;;  %v1762_v11 = vmul.f32 1.442695, %v1482_v23  ;;  %3417 = vpow2.f32 %v1758_v32  ;;  %v1764_v21 = vmul.f32 1.442695, %v1483_v42 }
 0x1a3   :  { %v3408_v55 = vpop.eup %3407  ;;  %v2184_v12 = vpack.c.b16 %v2138_v19, %v2136_v36  ;;  %v2185_v39 = vpack.c.b16 %v2139_v44, %v2137_v10  ;;  %v2363_v61 = vunpack.c.l.b16 %v2047_v31  ;;  %v2364_v59 = vunpack.c.h.b16 %v2047_v31  ;;  %v5359_v43 = vld [vmem:[#allocation61_spill] sm:$0xff]  ;;  %v5360_v10 = vld [vmem:[#allocation62_spill] sm:$0xff] }
 0x1a4   :  { %v2048_v8 = vpack.c.bf16 %v3408_v55, %v3406_v2  ;;  %v3410_v60 = vpop.eup %3409  ;;  %3419 = vpow2.f32 %v1760_v56  ;;  %v1488_v24 = vsub.f32 %v5357_v0, %v4302_v5  ;;  %v1489_v14 = vsub.f32 %v5358_v15, %v4304_v4  ;;  %v5361_v32 = vld [vmem:[#allocation41_spill] sm:$0xff] }
 0x1a5   :  { %2247 = vmatpush.bf16.msra.mxu0 %v2184_v12  ;;  %2273 = vmatpush.bf16.msra.mxu2 %v2185_v39  ;;  %v3412_v51 = vpop.eup %3411  ;;  %3421 = vpow2.f32 %v1762_v11  ;;  %v1490_v47 = vsub.f32 %v5359_v43, %v4302_v5  ;;  %v1491_v63 = vsub.f32 %v5360_v10, %v4304_v4  ;;  %v1476_v56 = vsub.f32 %v5361_v32, %v4302_v5 }
 0x1a6   :  { %v2365_v9 = vunpack.c.l.b16 %v2048_v8  ;;  %v2366_v38 = vunpack.c.h.b16 %v2048_v8  ;;  %v3414_v48 = vpop.eup %3413  ;;  %v2002_v36 = vpack.c.bf16 %v3412_v51, %v3410_v60  ;;  %3423 = vpow2.f32 %v1764_v21  ;;  %v5362_v8 = vld [vmem:[#allocation42_spill] sm:$0xff]  ;;  %v5363_v21 = vld [vmem:[#allocation43_spill] sm:$0xff]  ;;  %v4530_v51 = vpop.f32.mrf.mxu3 }
 0x1a7   :  { %v3416_v40 = vpop.eup %3415  ;;  %v1774_v23 = vmul.f32 1.442695, %v1488_v24  ;;  %v1776_v1 = vmul.f32 1.442695, %v1489_v14  ;;  %v1778_v42 = vmul.f32 1.442695, %v1490_v47  ;;  %v1478_v57 = vsub.f32 %v5363_v21, %v4302_v5  ;;  %v4532_v43 = vpop.f32.mrf.mxu0 }
 0x1a8   :  { %v2393_v46 = vpack.c.b16 %v2365_v9, %v2363_v61  ;;  %v2394_v28 = vpack.c.b16 %v2366_v38, %v2364_v59  ;;  %v2003_v2 = vpack.c.bf16 %v3416_v40, %v3414_v48  ;;  %v2132_v19 = vunpack.c.l.b16 %v2002_v36  ;;  %v3418_v31 = vpop.eup %3417  ;;  %v4528_v38 = vpop.f32.mrf.mxu2  ;;  %5366 = vst [vmem:[#allocation64_spill] sm:$0xff] %v4530_v51 }
 0x1a9   :  { %v2133_v44 = vunpack.c.h.b16 %v2002_v36  ;;  %3425 = vpow2.f32 %v1774_v23  ;;  %v1780_v55 = vmul.f32 1.442695, %v1491_v63  ;;  %v1477_v61 = vsub.f32 %v5362_v8, %v4304_v4  ;;  %5365 = vst [vmem:[#allocation63_spill] sm:$0xff] %v4528_v38  ;;  %v4534_v47 = vpop.f32.mrf.mxu1  ;;  %v5367_v63 = vld [vmem:[#allocation53_spill] sm:$0xff] }
 0x1aa   :  { %2449 = vmatpush.bf16.msrb.mxu1 %v2393_v46  ;;  %2475 = vmatpush.bf16.msrb.mxu3 %v2394_v28  ;;  %v3420_v11 = vpop.eup %3419  ;;  %v2134_v12 = vunpack.c.l.b16 %v2003_v2  ;;  %v2135_v39 = vunpack.c.h.b16 %v2003_v2  ;;  %3427 = vpow2.f32 %v1776_v1  ;;  %v1479_v9 = vsub.f32 %v5364_v52, %v4304_v4 }
 0x1ab   :  { %v3422_v60 = vpop.eup %3421  ;;  %v2041_v59 = vpack.c.bf16 %v3420_v11, %v3418_v31  ;;  %3429 = vpow2.f32 %v1778_v42  ;;  %v1750_v14 = vmul.f32 1.442695, %v1476_v56  ;;  %v1752_v36 = vmul.f32 1.442695, %v1477_v61  ;;  %v5370_v56 = vld [vmem:[#allocation56_spill] sm:$0xff] }
 0x1ac   :  { %v3424_v0 = vpop.eup %3423  ;;  %v2182_v24 = vpack.c.b16 %v2134_v12, %v2132_v19  ;;  %v2183_v15 = vpack.c.b16 %v2135_v39, %v2133_v44  ;;  %3431 = vpow2.f32 %v1780_v55  ;;  %v1754_v40 = vmul.f32 1.442695, %v1478_v57  ;;  %v5368_v19 = vld [vmem:[#allocation54_spill] sm:$0xff]  ;;  %v5369_v55 = vld [vmem:[#allocation55_spill] sm:$0xff] }
 0x1ad   :  { %v2042_v48 = vpack.c.bf16 %v3424_v0, %v3422_v60  ;;  %v2351_v46 = vunpack.c.l.b16 %v2041_v59  ;;  %v2352_v28 = vunpack.c.h.b16 %v2041_v59  ;;  %3433 = vpow2.f32 %v1750_v14 }
 0x1ae   :  { %2248 = vmatpush.bf16.msra.mxu0 %v2182_v24  ;;  %2274 = vmatpush.bf16.msra.mxu2 %v2183_v15  ;;  %v1756_v10 = vmul.f32 1.442695, %v1479_v9  ;;  %v1484_v23 = vsub.f32 %v5367_v63, %v4302_v5  ;;  %3435 = vpow2.f32 %v1752_v36  ;;  %v1485_v44 = vsub.f32 %v5368_v19, %v4304_v4  ;;  %v5371_v15 = vld [vmem:[#allocation37_spill] sm:$0xff]  ;;  %v5373_v36 = vld [vmem:[#allocation39_spill] sm:$0xff] }
 0x1af   :  { %v3426_v1 = vpop.eup %3425  ;;  %v2353_v42 = vunpack.c.l.b16 %v2042_v48  ;;  %v2354_v2 = vunpack.c.h.b16 %v2042_v48  ;;  %3437 = vpow2.f32 %v1754_v40  ;;  %v1486_v32 = vsub.f32 %v5369_v55, %v4302_v5 }
 0x1b0   :  { %v3428_v31 = vpop.eup %3427  ;;  %v1487_v11 = vsub.f32 %v5370_v56, %v4304_v4  ;;  %v1766_v12 = vmul.f32 1.442695, %v1484_v23  ;;  %3439 = vpow2.f32 %v1756_v10  ;;  %v1768_v21 = vmul.f32 1.442695, %v1485_v44  ;;  %v5374_v10 = vld [vmem:[#allocation40_spill] sm:$0xff]  ;;  %v4552_v19 = vpop.f32.mrf.mxu2 }
 0x1b1   :  { %v3430_v39 = vpop.eup %3429  ;;  %v2387_v8 = vpack.c.b16 %v2353_v42, %v2351_v46  ;;  %v2388_v61 = vpack.c.b16 %v2354_v2, %v2352_v28  ;;  %v2045_v60 = vpack.c.bf16 %v3428_v31, %v3426_v1  ;;  %v1770_v57 = vmul.f32 1.442695, %v1486_v32  ;;  %v5372_v46 = vld [vmem:[#allocation38_spill] sm:$0xff]  ;;  %5375 = vst [vmem:[#allocation47_spill] sm:$0xff] %v4552_v19  ;;  %v4554_v44 = vpop.f32.mrf.mxu3 }
 0x1b2   :  { %v3432_v59 = vpop.eup %3431  ;;  %3441 = vpow2.f32 %v1766_v12  ;;  %v1772_v52 = vmul.f32 1.442695, %v1487_v11  ;;  %v1472_v14 = vsub.f32 %v5371_v15, %v4302_v5  ;;  %v1473_v28 = vsub.f32 %v5372_v46, %v4304_v4  ;;  %5376 = vst [vmem:[#allocation48_spill] sm:$0xff] %v4554_v44  ;;  %v4556_v11 = vpop.f32.mrf.mxu0 }
 0x1b3   :  { %2431 = vmatpush.bf16.msrb.mxu0 %v2387_v8  ;;  %2457 = vmatpush.bf16.msrb.mxu2 %v2388_v61  ;;  %v2046_v9 = vpack.c.bf16 %v3432_v59, %v3430_v39  ;;  %v2359_v0 = vunpack.c.l.b16 %v2045_v60  ;;  %v2360_v24 = vunpack.c.h.b16 %v2045_v60  ;;  %v3434_v48 = vpop.eup %3433  ;;  %3443 = vpow2.f32 %v1768_v21  ;;  %v4558_v12 = vpop.f32.mrf.mxu1 }
 0x1b4   :  { %v1474_v40 = vsub.f32 %v5373_v36, %v4302_v5  ;;  %v1475_v63 = vsub.f32 %v5374_v10, %v4304_v4  ;;  %v3436_v23 = vpop.eup %3435  ;;  %3445 = vpow2.f32 %v1770_v57  ;;  %v1742_v2 = vmul.f32 1.442695, %v1472_v14 }
 0x1b5   :  { %v2361_v1 = vunpack.c.l.b16 %v2046_v9  ;;  %v2362_v42 = vunpack.c.h.b16 %v2046_v9  ;;  %v3438_v31 = vpop.eup %3437  ;;  %v2039_v55 = vpack.c.bf16 %v3436_v23, %v3434_v48  ;;  %3447 = vpow2.f32 %v1772_v52 }
 0x1b6   :  { %v1744_v32 = vmul.f32 1.442695, %v1473_v28  ;;  %v1746_v56 = vmul.f32 1.442695, %v1474_v40  ;;  %v3440_v39 = vpop.eup %3439  ;;  %3449 = vpow2.f32 %v1742_v2  ;;  %v1748_v60 = vmul.f32 1.442695, %v1475_v63 }
 0x1b7   :  { %v2391_v8 = vpack.c.b16 %v2361_v1, %v2359_v0  ;;  %v2392_v61 = vpack.c.b16 %v2362_v42, %v2360_v24  ;;  %v2040_v21 = vpack.c.bf16 %v3440_v39, %v3438_v31  ;;  %v2347_v57 = vunpack.c.l.b16 %v2039_v55  ;;  %v5377_v28 = vld [vmem:[#allocation33_spill] sm:$0xff]  ;;  %v5378_v24 = vld [vmem:[#allocation34_spill] sm:$0xff]  ;;  %v5379_v40 = vld [vmem:[#allocation35_spill] sm:$0xff] }
 0x1b8   :  { %v3442_v59 = vpop.eup %3441  ;;  %v2348_v9 = vunpack.c.h.b16 %v2039_v55  ;;  %3451 = vpow2.f32 %v1744_v32  ;;  %v1468_v0 = vsub.f32 %v5377_v28, %v4302_v5  ;;  %v1469_v36 = vsub.f32 %v5378_v24, %v4304_v4  ;;  %v5380_v42 = vld [vmem:[#allocation36_spill] sm:$0xff]  ;;  %v5381_v31 = vld [vmem:[#allocation29_spill] sm:$0xff] }
 0x1b9   :  { %2450 = vmatpush.bf16.msrb.mxu1 %v2391_v8  ;;  %2476 = vmatpush.bf16.msrb.mxu3 %v2392_v61  ;;  %3453 = vpow2.f32 %v1746_v56  ;;  %v3444_v52 = vpop.eup %3443  ;;  %v2349_v15 = vunpack.c.l.b16 %v2040_v21  ;;  %v2350_v14 = vunpack.c.h.b16 %v2040_v21  ;;  %v1470_v10 = vsub.f32 %v5379_v40, %v4302_v5  ;;  %v4572_v40 = vpop.f32.mrf.mxu2 }
 0x1ba   :  { %3455 = vpow2.f32 %v1748_v60  ;;  %v3446_v48 = vpop.eup %3445  ;;  %v2043_v46 = vpack.c.bf16 %v3444_v52, %v3442_v59  ;;  %v1471_v2 = vsub.f32 %v5380_v42, %v4304_v4  ;;  %v1464_v55 = vsub.f32 %v5381_v31, %v4302_v5  ;;  %5383 = vst [vmem:[#allocation5_spill] sm:$0xff] %v4572_v40 }
 0x1bb   :  { %v3448_v63 = vpop.eup %3447  ;;  %v2385_v23 = vpack.c.b16 %v2349_v15, %v2347_v57  ;;  %v2386_v1 = vpack.c.b16 %v2350_v14, %v2348_v9  ;;  %v1734_v61 = vmul.f32 1.442695, %v1468_v0  ;;  %v1736_v59 = vmul.f32 1.442695, %v1469_v36  ;;  %v5382_v57 = vld [vmem:[#allocation30_spill] sm:$0xff]  ;;  %v5385_v0 = vld [vmem:[#allocation31_spill] sm:$0xff]  ;;  %v4582_v42 = vpop.f32.mrf.mxu1 }
 0x1bc   :  { %v3450_v32 = vpop.eup %3449  ;;  %v2044_v56 = vpack.c.bf16 %v3448_v63, %v3446_v48  ;;  %v2355_v39 = vunpack.c.l.b16 %v2043_v46  ;;  %v2356_v8 = vunpack.c.h.b16 %v2043_v46  ;;  %v1738_v21 = vmul.f32 1.442695, %v1470_v10  ;;  %v4574_v48 = vpop.f32.mrf.mxu3  ;;  %v5386_v36 = vld [vmem:[#allocation32_spill] sm:$0xff] }
 0x1bd   :  { %2432 = vmatpush.bf16.msrb.mxu0 %v2385_v23  ;;  %2458 = vmatpush.bf16.msrb.mxu2 %v2386_v1  ;;  %v1740_v52 = vmul.f32 1.442695, %v1471_v2  ;;  %v1465_v9 = vsub.f32 %v5382_v57, %v4304_v4  ;;  %3457 = vpow2.f32 %v1734_v61  ;;  %5384 = vst [vmem:[#allocation6_spill] sm:$0xff] %v4574_v48  ;;  %v1466_v63 = vsub.f32 %v5385_v0, %v4302_v5  ;;  %v4580_v1 = vpop.f32.mrf.mxu0 }
 0x1be   :  { %v3452_v60 = vpop.eup %3451  ;;  %v2357_v14 = vunpack.c.l.b16 %v2044_v56  ;;  %v2358_v28 = vunpack.c.h.b16 %v2044_v56  ;;  %3459 = vpow2.f32 %v1736_v59  ;;  %v1467_v10 = vsub.f32 %v5386_v36, %v4304_v4 }
 0x1bf   :  { %v3454_v15 = vpop.eup %3453  ;;  %v2037_v24 = vpack.c.bf16 %v3452_v60, %v3450_v32  ;;  %v1726_v23 = vmul.f32 1.442695, %v1464_v55  ;;  %3461 = vpow2.f32 %v1738_v21  ;;  %v1728_v60 = vmul.f32 1.442695, %v1465_v9  ;;  %v94_v55 = vld [vmem:[%s5093_s1 + $0x128] sm:$0xf] }
 0x1c0   :  { %v3456_v46 = vpop.eup %3455  ;;  %v2389_v2 = vpack.c.b16 %v2357_v14, %v2355_v39  ;;  %v2390_v31 = vpack.c.b16 %v2358_v28, %v2356_v8  ;;  %v1730_v57 = vmul.f32 1.442695, %v1466_v63  ;;  %3463 = vpow2.f32 %v1740_v52  ;;  %v119_v21 = vld [vmem:[%s5093_s1 + $0x18c] sm:$0xf]  ;;  %v5388_v52 = vld [vmem:[#allocation24_spill] sm:$0xff] }
 0x1c1   :  { %v2038_v32 = vpack.c.bf16 %v3456_v46, %v3454_v15  ;;  %v2343_v56 = vunpack.c.l.b16 %v2037_v24  ;;  %v2344_v61 = vunpack.c.h.b16 %v2037_v24  ;;  %v1732_v48 = vmul.f32 1.442695, %v1467_v10  ;;  %v5387_v15 = vld [vmem:[#allocation23_spill] sm:$0xff]  ;;  %v5390_v10 = vld [vmem:[#allocation28_spill] sm:$0xff] }
 0x1c2   :  { %2451 = vmatpush.bf16.msrb.mxu1 %v2389_v2  ;;  %2477 = vmatpush.bf16.msrb.mxu3 %v2390_v31  ;;  %3465 = vpow2.f32 %v1726_v23  ;;  %v1460_v14 = vsub.f32 %v5387_v15, %v4302_v5  ;;  %v1461_v28 = vsub.f32 %v5388_v52, %v4304_v4  ;;  %v5389_v24 = vld [vmem:[#allocation27_spill] sm:$0xff]  ;;  %v1463_v23 = vsub.f32 %v5390_v10, %v4304_v4  ;;  %v4598_v31 = vpop.f32.mrf.mxu2 }
 0x1c3   :  { %v2345_v59 = vunpack.c.l.b16 %v2038_v32  ;;  %v2346_v0 = vunpack.c.h.b16 %v2038_v32  ;;  %v3458_v36 = vpop.eup %3457  ;;  %3467 = vpow2.f32 %v1728_v60  ;;  %v1462_v46 = vsub.f32 %v5389_v24, %v4302_v5  ;;  %5391 = vst [vmem:[#allocation9_spill] sm:$0xff] %v4598_v31  ;;  %v4604_v15 = vpop.f32.mrf.mxu1  ;;  %v5394_v10 = vld [vmem:[#allocation15_spill] sm:$0xff] }
 0x1c4   :  { %v3460_v9 = vpop.eup %3459  ;;  %3469 = vpow2.f32 %v1730_v57  ;;  %v693_v2 = vunpack.c.l.b16 %v94_v55  ;;  %v4600_v32 = vpop.f32.mrf.mxu3  ;;  %v1720_v60 = vmul.f32 1.442695, %v1461_v28  ;;  %5393 = vst [vmem:[#allocation45_spill] sm:$0xff] %v4604_v15 }
 0x1c5   :  { %v2383_v39 = vpack.c.b16 %v2345_v59, %v2343_v56  ;;  %v2384_v8 = vpack.c.b16 %v2346_v0, %v2344_v61  ;;  %v2035_v63 = vpack.c.bf16 %v3460_v9, %v3458_v36  ;;  %3471 = vpow2.f32 %v1732_v48  ;;  %5392 = vst [vmem:[#allocation10_spill] sm:$0xff] %v4600_v32  ;;  %v3462_v56 = vpop.eup %3461  ;;  %v4602_v0 = vpop.f32.mrf.mxu0 }
 0x1c6   :  { %v1718_v61 = vmul.f32 1.442695, %v1460_v14  ;;  %v1722_v57 = vmul.f32 1.442695, %v1462_v46  ;;  %v952_v59 = vunpack.c.l.b16 %v119_v21  ;;  %v706_v9 = vpack.c.b16 %v693_v2, %v693_v2  ;;  %v5395_v21 = vld [vmem:[#allocation16_spill] sm:$0xff]  ;;  %v5396_v46 = vld [vmem:[#allocation19_spill] sm:$0xff] }
 0x1c7   :  { %2433 = vmatpush.bf16.msrb.mxu0 %v2383_v39  ;;  %2459 = vmatpush.bf16.msrb.mxu2 %v2384_v8  ;;  %v3464_v39 = vpop.eup %3463  ;;  %v2339_v36 = vunpack.c.l.b16 %v2035_v63  ;;  %v2340_v48 = vunpack.c.h.b16 %v2035_v63  ;;  %v1724_v8 = vmul.f32 1.442695, %v1463_v23  ;;  %v1456_v32 = vsub.f32 %v5394_v10, %v4302_v5  ;;  %v5397_v23 = vld [vmem:[#allocation20_spill] sm:$0xff] }
 0x1c8   :  { %v3466_v52 = vpop.eup %3465  ;;  %v2036_v55 = vpack.c.bf16 %v3464_v39, %v3462_v56  ;;  %3473 = vpow2.f32 %v1718_v61  ;;  %v965_v24 = vpack.c.b16 %v952_v59, %v952_v59  ;;  %3152 = vmatmul.msk.bf16.gmra.mxu0 %vm192_vm1, %v706_v9  ;;  %3165 = vmatmul.msk.bf16.gmra.mxu1 %vm192_vm1, %v706_v9  ;;  %v1457_v28 = vsub.f32 %v5395_v21, %v4304_v4 }
 0x1c9   :  { %v3468_v14 = vpop.eup %3467  ;;  %3475 = vpow2.f32 %v1720_v60  ;;  %v1458_v63 = vsub.f32 %v5396_v46, %v4302_v5  ;;  %v1459_v2 = vsub.f32 %v5397_v23, %v4304_v4  ;;  %v1710_v9 = vmul.f32 1.442695, %v1456_v32 }
 0x1ca   :  { %v3470_v56 = vpop.eup %3469  ;;  %v2341_v61 = vunpack.c.l.b16 %v2036_v55  ;;  %v2342_v59 = vunpack.c.h.b16 %v2036_v55  ;;  %v2033_v39 = vpack.c.bf16 %v3468_v14, %v3466_v52  ;;  %3477 = vpow2.f32 %v1722_v57  ;;  %3226 = vmatmul.msk.bf16.gmra.mxu2 %vm192_vm1, %v965_v24  ;;  %3239 = vmatmul.msk.bf16.gmra.mxu3 %vm192_vm1, %v965_v24  ;;  %v4618_v15 = vpop.f32.mrf.mxu2 }
 0x1cb   :  { %v3472_v60 = vpop.eup %3471  ;;  %3479 = vpow2.f32 %v1724_v8  ;;  %v1712_v10 = vmul.f32 1.442695, %v1457_v28  ;;  %v1714_v21 = vmul.f32 1.442695, %v1458_v63  ;;  %v1716_v23 = vmul.f32 1.442695, %v1459_v2  ;;  %v4624_v8 = vpop.f32.mrf.mxu1 }
 0x1cc   :  { %v2381_v31 = vpack.c.b16 %v2341_v61, %v2339_v36  ;;  %v2382_v40 = vpack.c.b16 %v2342_v59, %v2340_v48  ;;  %v2034_v46 = vpack.c.bf16 %v3472_v60, %v3470_v56  ;;  %v2335_v44 = vunpack.c.l.b16 %v2033_v39  ;;  %5398 = vst [vmem:[#allocation46_spill] sm:$0xff] %v4618_v15  ;;  %v4620_v52 = vpop.f32.mrf.mxu3  ;;  %v5400_v48 = vld [vmem:[#allocation7_spill] sm:$0xff]  ;;  %v5403_v60 = vld [vmem:[#allocation12_spill] sm:$0xff] }
 0x1cd   :  { %v2336_v19 = vunpack.c.h.b16 %v2033_v39  ;;  %3481 = vpow2.f32 %v1710_v9  ;;  %5399 = vst [vmem:[#allocation49_spill] sm:$0xff] %v4620_v52  ;;  %v4622_v32 = vpop.f32.mrf.mxu0  ;;  %v1452_v14 = vsub.f32 %v5400_v48, %v4302_v5  ;;  %v5402_v59 = vld [vmem:[#allocation11_spill] sm:$0xff]  ;;  %v1455_v9 = vsub.f32 %v5403_v60, %v4304_v4 }
 0x1ce   :  { %v3474_v57 = vpop.eup %3473  ;;  %2434 = vmatpush.bf16.msrb.mxu0 %v2381_v31  ;;  %2460 = vmatpush.bf16.msrb.mxu2 %v2382_v40  ;;  %v2337_v55 = vunpack.c.l.b16 %v2034_v46  ;;  %v2338_v24 = vunpack.c.h.b16 %v2034_v46  ;;  %3483 = vpow2.f32 %v1712_v10  ;;  %v5401_v40 = vld [vmem:[#allocation8_spill] sm:$0xff]  ;;  %v1454_v39 = vsub.f32 %v5402_v59, %v4302_v5 }
 0x1cf   :  { %v3476_v36 = vpop.eup %3475  ;;  %3485 = vpow2.f32 %v1714_v21  ;;  %v1453_v31 = vsub.f32 %v5401_v40, %v4304_v4  ;;  %v1702_v10 = vmul.f32 1.442695, %v1452_v14 }
 0x1d0   :  { %v3478_v28 = vpop.eup %3477  ;;  %v2379_v63 = vpack.c.b16 %v2337_v55, %v2335_v44  ;;  %v2380_v2 = vpack.c.b16 %v2338_v24, %v2336_v19  ;;  %v2031_v56 = vpack.c.bf16 %v3476_v36, %v3474_v57  ;;  %3487 = vpow2.f32 %v1716_v23 }
 0x1d1   :  { %v3480_v61 = vpop.eup %3479  ;;  %3489 = vpow2.f32 %v1702_v10  ;;  %v1704_v19 = vmul.f32 1.442695, %v1453_v31  ;;  %v1706_v23 = vmul.f32 1.442695, %v1454_v39  ;;  %v1708_v57 = vmul.f32 1.442695, %v1455_v9 }
 0x1d2   :  { %2435 = vmatpush.bf16.msrb.mxu0 %v2379_v63  ;;  %2461 = vmatpush.bf16.msrb.mxu2 %v2380_v2  ;;  %v2032_v21 = vpack.c.bf16 %v3480_v61, %v3478_v28  ;;  %v2331_v46 = vunpack.c.l.b16 %v2031_v56  ;;  %v2332_v48 = vunpack.c.h.b16 %v2031_v56  ;;  %v4634_v5 = vpop.f32.mrf.mxu2 }
 0x1d3   :  { %v3482_v44 = vpop.eup %3481  ;;  %3491 = vpow2.f32 %v1704_v19  ;;  %5404 = vst [vmem:[#allocation50_spill] sm:$0xff] %v4634_v5  ;;  %v4640_v56 = vpop.f32.mrf.mxu1 }
 0x1d4   :  { %v3484_v55 = vpop.eup %3483  ;;  %v2333_v24 = vunpack.c.l.b16 %v2032_v21  ;;  %v2334_v36 = vunpack.c.h.b16 %v2032_v21  ;;  %v4636_v4 = vpop.f32.mrf.mxu3  ;;  %3493 = vpow2.f32 %v1706_v23 }
 0x1d5   :  { %v3486_v40 = vpop.eup %3485  ;;  %v2029_v52 = vpack.c.bf16 %v3484_v55, %v3482_v44  ;;  %5405 = vst [vmem:[#allocation59_spill] sm:$0xff] %v4636_v4  ;;  %v4638_v2 = vpop.f32.mrf.mxu0  ;;  %3495 = vpow2.f32 %v1708_v57 }
 0x1d6   :  { %v3488_v14 = vpop.eup %3487  ;;  %v2377_v63 = vpack.c.b16 %v2333_v24, %v2331_v46  ;;  %v2378_v28 = vpack.c.b16 %v2334_v36, %v2332_v48 }
 0x1d7   :  { %v2030_v61 = vpack.c.bf16 %v3488_v14, %v3486_v40  ;;  %v2327_v31 = vunpack.c.l.b16 %v2029_v52  ;;  %v2328_v59 = vunpack.c.h.b16 %v2029_v52  ;;  %v3490_v39 = vpop.eup %3489 }
 0x1d8   :  { %2436 = vmatpush.bf16.msrb.mxu0 %v2377_v63  ;;  %2462 = vmatpush.bf16.msrb.mxu2 %v2378_v28 }
 0x1d9   :  { %v2329_v60 = vunpack.c.l.b16 %v2030_v61  ;;  %v2330_v9 = vunpack.c.h.b16 %v2030_v61  ;;  %v3492_v10 = vpop.eup %3491 }
 0x1da   :  { %v3494_v19 = vpop.eup %3493  ;;  %v2027_v46 = vpack.c.bf16 %v3492_v10, %v3490_v39  ;;  %v4642_v23 = vpop.f32.mrf.mxu2 }
 0x1db   :  { %v2375_v21 = vpack.c.b16 %v2329_v60, %v2327_v31  ;;  %v2376_v44 = vpack.c.b16 %v2330_v9, %v2328_v59  ;;  %v3496_v48 = vpop.eup %3495  ;;  %5406 = vst [vmem:[#allocation60_spill] sm:$0xff] %v4642_v23  ;;  %v4648_v40 = vpop.f32.mrf.mxu1 }
 0x1dc   :  { %v4644_v55 = vpop.f32.mrf.mxu3  ;;  %v2028_v24 = vpack.c.bf16 %v3496_v48, %v3494_v19  ;;  %v2323_v52 = vunpack.c.l.b16 %v2027_v46  ;;  %v2324_v57 = vunpack.c.h.b16 %v2027_v46 }
 0x1dd   :  { %2437 = vmatpush.bf16.msrb.mxu0 %v2375_v21  ;;  %2463 = vmatpush.bf16.msrb.mxu2 %v2376_v44  ;;  %5407 = vst [vmem:[#allocation61_spill] sm:$0xff] %v4644_v55  ;;  %v4646_v36 = vpop.f32.mrf.mxu0 }
 0x1de   :  { %v2325_v14 = vunpack.c.l.b16 %v2028_v24  ;;  %v2326_v63 = vunpack.c.h.b16 %v2028_v24 }
 0x1e0   :  { %v2373_v28 = vpack.c.b16 %v2325_v14, %v2323_v52  ;;  %v2374_v61 = vpack.c.b16 %v2326_v63, %v2324_v57 }
 0x1e2   :  { %2438 = vmatpush.bf16.msrb.mxu0 %v2373_v28  ;;  %2464 = vmatpush.bf16.msrb.mxu2 %v2374_v61  ;;  %v4650_v31 = vpop.f32.mrf.mxu2 }
 0x1e3   :  { %5408 = vst [vmem:[#allocation62_spill] sm:$0xff] %v4650_v31  ;;  %v4656_v60 = vpop.f32.mrf.mxu1 }
 0x1e4   :  { %v4652_v59 = vpop.f32.mrf.mxu3 }
 0x1e5   :  { %5409 = vst [vmem:[#allocation41_spill] sm:$0xff] %v4652_v59  ;;  %v4654_v39 = vpop.f32.mrf.mxu0 }
 0x1ea   :  { %v4658_v9 = vpop.f32.mrf.mxu2 }
 0x1eb   :  { %5410 = vst [vmem:[#allocation42_spill] sm:$0xff] %v4658_v9  ;;  %v4664_v44 = vpop.f32.mrf.mxu1 }
 0x1ec   :  { %v4660_v10 = vpop.f32.mrf.mxu3 }
 0x1ed   :  { %5411 = vst [vmem:[#allocation43_spill] sm:$0xff] %v4660_v10  ;;  %v4662_v21 = vpop.f32.mrf.mxu0 }
 0x1f2   :  { %v4666_v19 = vpop.f32.mrf.mxu2 }
 0x1f3   :  { %5412 = vst [vmem:[#allocation44_spill] sm:$0xff] %v4666_v19  ;;  %v4672_v24 = vpop.f32.mrf.mxu1 }
 0x1f4   :  { %v4668_v46 = vpop.f32.mrf.mxu3 }
 0x1f5   :  { %5413 = vst [vmem:[#allocation53_spill] sm:$0xff] %v4668_v46  ;;  %v4670_v48 = vpop.f32.mrf.mxu0 }
 0x1fa   :  { %v4674_v52 = vpop.f32.mrf.mxu2 }
 0x1fb   :  { %5414 = vst [vmem:[#allocation54_spill] sm:$0xff] %v4674_v52  ;;  %v4680_v63 = vpop.f32.mrf.mxu1 }
 0x1fc   :  { %v4676_v57 = vpop.f32.mrf.mxu3  ;;  %5416 = vst [vmem:[#allocation56_spill] sm:$0xff] %v4680_v63 }
 0x1fd   :  { %5415 = vst [vmem:[#allocation55_spill] sm:$0xff] %v4676_v57  ;;  %v4678_v14 = vpop.f32.mrf.mxu0  ;;  %v1282_v57 = vmax.f32 %v4346_v13, %v4372_v30 }
 0x202   :  { %v4682_v28 = vpop.f32.mrf.mxu2 }
 0x203   :  { %5417 = vst [vmem:[#allocation37_spill] sm:$0xff] %v4682_v28  ;;  %v4688_v19 = vpop.f32.mrf.mxu1  ;;  %v1312_v28 = vmax.f32 %v4348_v3, %v4374_v45 }
 0x204   :  { %v4684_v61 = vpop.f32.mrf.mxu3  ;;  %5420 = vst [vmem:[#allocation40_spill] sm:$0xff] %v4688_v19 }
 0x205   :  { %5418 = vst [vmem:[#allocation38_spill] sm:$0xff] %v4684_v61  ;;  %v4686_v10 = vpop.f32.mrf.mxu0  ;;  %v1283_v61 = vmax.f32 %v1282_v57, %v4398_v26  ;;  %v1342_v57 = vmax.f32 %v4366_v29, %v4392_v49  ;;  %v5448_v26 = vld [vmem:[#allocation53_spill] sm:$0xff] }
 0x206   :  { %5419 = vst [vmem:[#allocation39_spill] sm:$0xff] %v4686_v10  ;;  %v1313_v10 = vmax.f32 %v1312_v28, %v4400_v6  ;;  %v1372_v28 = vmax.f32 %v4368_v54, %v4394_v53  ;;  %v5447_v6 = vld [vmem:[#allocation44_spill] sm:$0xff] }
 0x208   :  { %v1373_v13 = vmax.f32 %v1372_v28, %v4420_v37  ;;  %v5431_v37 = vld [vmem:[#allocation48_spill] sm:$0xff] }
 0x20a   :  { %v4690_v46 = vpop.f32.mrf.mxu2 }
 0x20b   :  { %5421 = vst [vmem:[#allocation33_spill] sm:$0xff] %v4690_v46  ;;  %v4696_v52 = vpop.f32.mrf.mxu1  ;;  %v1314_v46 = vmax.f32 %v1313_v10, %v4428_v41  ;;  %v1343_v10 = vmax.f32 %v1342_v57, %v4418_v35 }
 0x20c   :  { %v4692_v9 = vpop.f32.mrf.mxu3  ;;  %5424 = vst [vmem:[#allocation36_spill] sm:$0xff] %v4696_v52 }
 0x20d   :  { %5422 = vst [vmem:[#allocation34_spill] sm:$0xff] %v4692_v9  ;;  %v4694_v59 = vpop.f32.mrf.mxu0  ;;  %v1284_v9 = vmax.f32 %v1283_v61, %v4426_v20  ;;  %v1315_v45 = vmax.f32 %v1314_v46, %v4451_v18  ;;  %v1344_v46 = vmax.f32 %v1343_v10, %v4443_v27  ;;  %v1374_v20 = vmax.f32 %v1373_v13, %v4445_v34  ;;  %v5429_v34 = vld [vmem:[#allocation45_spill] sm:$0xff]  ;;  %v5430_v27 = vld [vmem:[#allocation47_spill] sm:$0xff] }
 0x20e   :  { %5423 = vst [vmem:[#allocation35_spill] sm:$0xff] %v4694_v59  ;;  %v5453_v18 = vld [vmem:[#allocation37_spill] sm:$0xff] }
 0x20f   :  { %v1285_v30 = vmax.f32 %v1284_v9, %v4449_v25  ;;  %v1316_v61 = vmax.f32 %v1315_v45, %v4476_v22  ;;  %v1345_v45 = vmax.f32 %v1344_v46, %v4470_v50  ;;  %v1375_v57 = vmax.f32 %v1374_v20, %v4472_v33  ;;  %v5433_v33 = vld [vmem:[#allocation6_spill] sm:$0xff] }
 0x210   :  { %v5451_v22 = vld [vmem:[#allocation54_spill] sm:$0xff] }
 0x211   :  { %v1286_v3 = vmax.f32 %v1285_v30, %v4474_v62  ;;  %v1317_v9 = vmax.f32 %v1316_v61, %v4500_v17  ;;  %v1346_v61 = vmax.f32 %v1345_v45, %v4494_v58  ;;  %v1376_v13 = vmax.f32 %v1375_v57, %v4496_v7  ;;  %v5432_v58 = vld [vmem:[#allocation5_spill] sm:$0xff]  ;;  %v5452_v62 = vld [vmem:[#allocation55_spill] sm:$0xff]  ;;  %v5454_v25 = vld [vmem:[#allocation38_spill] sm:$0xff] }
 0x212   :  { %v4704_v63 = vpop.f32.mrf.mxu2 }
 0x213   :  { %5425 = vst [vmem:[#allocation29_spill] sm:$0xff] %v4704_v63  ;;  %v4712_v52 = vpop.f32.mrf.mxu1  ;;  %v1287_v41 = vmax.f32 %v1286_v3, %v4498_v16  ;;  %v1318_v53 = vmax.f32 %v1317_v9, %v4534_v47  ;;  %v1347_v46 = vmax.f32 %v1346_v61, %v4528_v38  ;;  %v1377_v20 = vmax.f32 %v1376_v13, %v4530_v51 }
 0x214   :  { %v4706_v19 = vpop.f32.mrf.mxu3 }
 0x215   :  { %5426 = vst [vmem:[#allocation30_spill] sm:$0xff] %v4706_v19  ;;  %v4710_v59 = vpop.f32.mrf.mxu0  ;;  %v1288_v49 = vmax.f32 %v1287_v41, %v4532_v43  ;;  %v1319_v28 = vmax.f32 %v1318_v53, %v4558_v12  ;;  %v1348_v45 = vmax.f32 %v1347_v46, %v5430_v27  ;;  %v1378_v57 = vmax.f32 %v1377_v20, %v5431_v37  ;;  %v5437_v27 = vld [vmem:[#allocation10_spill] sm:$0xff]  ;;  %v5438_v37 = vld [vmem:[#allocation49_spill] sm:$0xff] }
 0x217   :  { %v1289_v3 = vmax.f32 %v1288_v49, %v4556_v11  ;;  %v1320_v29 = vmax.f32 %v1319_v28, %v4582_v42  ;;  %v1379_v28 = vmax.f32 %v1378_v57, %v5433_v33  ;;  %v5439_v33 = vld [vmem:[#allocation41_spill] sm:$0xff] }
 0x219   :  { %v1290_v9 = vmax.f32 %v1289_v3, %v4580_v1  ;;  %v1321_v53 = vmax.f32 %v1320_v29, %v5429_v34  ;;  %v1349_v3 = vmax.f32 %v1348_v45, %v5432_v58  ;;  %v5436_v29 = vld [vmem:[#allocation9_spill] sm:$0xff]  ;;  %v1380_v20 = vmax.f32 %v1379_v28, %v5437_v27  ;;  %v5440_v58 = vld [vmem:[#allocation56_spill] sm:$0xff] }
 0x21a   :  { %v4730_v54 = vpop.f32.mrf.mxu2 }
 0x21b   :  { %5427 = vst [vmem:[#allocation31_spill] sm:$0xff] %v4730_v54  ;;  %v4742_v41 = vpop.f32.mrf.mxu1  ;;  %v1291_v49 = vmax.f32 %v1290_v9, %v4602_v0  ;;  %v1322_v7 = vmax.f32 %v1321_v53, %v4624_v8  ;;  %v1350_v46 = vmax.f32 %v1349_v3, %v5436_v29  ;;  %v1381_v57 = vmax.f32 %v1380_v20, %v5438_v37  ;;  %v5445_v37 = vld [vmem:[#allocation39_spill] sm:$0xff] }
 0x21c   :  { %v4732_v30 = vpop.f32.mrf.mxu3 }
 0x21d   :  { %5428 = vst [vmem:[#allocation32_spill] sm:$0xff] %v4732_v30  ;;  %v4740_v10 = vpop.f32.mrf.mxu0  ;;  %v1292_v35 = vmax.f32 %v1291_v49, %v4622_v32  ;;  %v1323_v13 = vmax.f32 %v1322_v7, %v4640_v56  ;;  %v1351_v45 = vmax.f32 %v1350_v46, %v4618_v15  ;;  %v1382_v28 = vmax.f32 %v1381_v57, %v4636_v4  ;;  %v5446_v15 = vld [vmem:[#allocation40_spill] sm:$0xff] }
 0x21f   :  { %v1293_v61 = vmax.f32 %v1292_v35, %v4638_v2  ;;  %v1324_v53 = vmax.f32 %v1323_v13, %v4648_v40  ;;  %v1352_v3 = vmax.f32 %v1351_v45, %v4634_v5  ;;  %v1383_v20 = vmax.f32 %v1382_v28, %v4644_v55  ;;  %v5444_v5 = vld [vmem:[#allocation43_spill] sm:$0xff]  ;;  %v5450_v55 = vld [vmem:[#allocation36_spill] sm:$0xff] }
 0x221   :  { %v1294_v49 = vmax.f32 %v1293_v61, %v4646_v36  ;;  %v1325_v38 = vmax.f32 %v1324_v53, %v4656_v60  ;;  %v1353_v46 = vmax.f32 %v1352_v3, %v4642_v23  ;;  %v1384_v53 = vmax.f32 %v1383_v20, %v5439_v33 }
 0x222   :  { %v4758_v50 = vpop.f32.mrf.mxu2 }
 0x223   :  { %5434 = vst [vmem:[#allocation23_spill] sm:$0xff] %v4758_v50  ;;  %v4770_v35 = vpop.f32.mrf.mxu1  ;;  %v1295_v7 = vmax.f32 %v1294_v49, %v4654_v39  ;;  %v1326_v13 = vmax.f32 %v1325_v38, %v4664_v44  ;;  %v1354_v49 = vmax.f32 %v1353_v46, %v4650_v31  ;;  %v5443_v38 = vld [vmem:[#allocation42_spill] sm:$0xff]  ;;  %v1385_v28 = vmax.f32 %v1384_v53, %v5444_v5 }
 0x224   :  { %v4760_v9 = vpop.f32.mrf.mxu3 }
 0x225   :  { %5435 = vst [vmem:[#allocation24_spill] sm:$0xff] %v4760_v9  ;;  %v4768_v51 = vpop.f32.mrf.mxu0  ;;  %v1296_v61 = vmax.f32 %v1295_v7, %v4662_v21  ;;  %v1327_v29 = vmax.f32 %v1326_v13, %v4672_v24  ;;  %v1355_v3 = vmax.f32 %v1354_v49, %v5443_v38  ;;  %v1386_v20 = vmax.f32 %v1385_v28, %v5448_v26 }
 0x227   :  { %v1297_v27 = vmax.f32 %v1296_v61, %v4670_v48  ;;  %v1328_v57 = vmax.f32 %v1327_v29, %v5440_v58  ;;  %v1356_v46 = vmax.f32 %v1355_v3, %v5447_v6  ;;  %v5449_v29 = vld [vmem:[#allocation35_spill] sm:$0xff]  ;;  %v1387_v53 = vmax.f32 %v1386_v20, %v5452_v62 }
 0x229   :  { %v1298_v45 = vmax.f32 %v1297_v27, %v4678_v14  ;;  %v1329_v13 = vmax.f32 %v1328_v57, %v5446_v15  ;;  %v1357_v49 = vmax.f32 %v1356_v46, %v5451_v22  ;;  %v1388_v28 = vmax.f32 %v1387_v53, %v5454_v25  ;;  %v5456_v22 = vld [vmem:[#allocation34_spill] sm:$0xff] }
 0x22a   :  { %v4786_v4 = vpop.f32.mrf.mxu2 }
 0x22b   :  { %5441 = vst [vmem:[#allocation27_spill] sm:$0xff] %v4786_v4  ;;  %v1299_v61 = vmax.f32 %v1298_v45, %v5445_v37  ;;  %v4798_v27 = vpop.f32.mrf.mxu1  ;;  %v1330_v23 = vmax.f32 %v1329_v13, %v5450_v55  ;;  %v1358_v3 = vmax.f32 %v1357_v49, %v5453_v18  ;;  %v5455_v13 = vld [vmem:[#allocation33_spill] sm:$0xff]  ;;  %v1389_v20 = vmax.f32 %v1388_v28, %v5456_v22  ;;  %v121_v22 = vld [vmem:[%s5094_s2 + $0x2] sm:$0x3] }
 0x22c   :  { %v4788_v7 = vpop.f32.mrf.mxu3 }
 0x22d   :  { %5442 = vst [vmem:[#allocation28_spill] sm:$0xff] %v4788_v7  ;;  %v4796_v33 = vpop.f32.mrf.mxu0  ;;  %v1300_v31 = vmax.f32 %v1299_v61, %v5449_v29  ;;  %v1331_v57 = vmax.f32 %v1330_v23, %v4712_v52  ;;  %v120_v61 = vld [vmem:[%s5094_s2] sm:$0x3]  ;;  %v1359_v46 = vmax.f32 %v1358_v3, %v5455_v13 }
 0x22e   :  { %2103 = vst [vmem:[#allocation1] ss:$9 sm:$0xff] %v120_v61 }
 0x22f   :  { %v1301_v45 = vmax.f32 %v1300_v31, %v4710_v59  ;;  %v1332_v6 = vmax.f32 %v1331_v57, %v4742_v41  ;;  %v1390_v57 = vmax.f32 %v1389_v20, %v4706_v19 }
 0x231   :  { %v1302_v26 = vmax.f32 %v1301_v45, %v4740_v10  ;;  %v1333_v23 = vmax.f32 %v1332_v6, %v4770_v35  ;;  %v1360_v45 = vmax.f32 %v1359_v46, %v4704_v63  ;;  %v1391_v28 = vmax.f32 %v1390_v57, %v4732_v30 }
 0x232   :  { %v4817_v49 = vpop.f32.mrf.mxu2 }
 0x233   :  { %v1303_v31 = vmax.f32 %v1302_v26, %v4768_v51  ;;  %5457 = vst [vmem:[#allocation15_spill] sm:$0xff] %v4817_v49  ;;  %v1334_v18 = vmax.f32 %v1333_v23, %v4798_v27  ;;  %v1361_v3 = vmax.f32 %v1360_v45, %v4730_v54  ;;  %v1392_v20 = vmax.f32 %v1391_v28, %v4760_v9 }
 0x234   :  { %v4819_v53 = vpop.f32.mrf.mxu3 }
 0x235   :  { %5458 = vst [vmem:[#allocation16_spill] sm:$0xff] %v4819_v53  ;;  %v1304_v25 = vmax.f32 %v1303_v31, %v4796_v33  ;;  %v1362_v46 = vmax.f32 %v1361_v3, %v4758_v50  ;;  %v2104_v23 = vld [vmem:[#allocation1] sm:$0xff]  ;;  %v2105_v63 = vld [vmem:[#allocation1 + $0x9] sm:$0xff]  ;;  %v1393_v57 = vmax.f32 %v1392_v20, %v4788_v7 }
 0x236   :  { %2275 = vmatmul.bf16.vlgmr.msra.gmra.mxu2 %v2104_v23  ;;  %3241 = vmatmul.msk.bf16.vlgmr.msra.gmra.mxu3 %vm2232_vm2, %v2105_v63  ;;  %2294 = vst [vmem:[#allocation1] ss:$9 sm:$0xff] %v121_v22 }
 0x237   :  { %v1363_v45 = vmax.f32 %v1362_v46, %v4786_v4  ;;  %2249 = vmatmul.bf16.vlgmr.msra.gmra.mxu0 %v2104_v23  ;;  %3240 = vmatmul.msk.bf16.vlgmr.msra.gmra.mxu1 %vm2232_vm2, %v2105_v63  ;;  %v1394_v28 = vmax.f32 %v1393_v57, %v4819_v53  ;;  %v122_v63 = vld [vmem:[%s5094_s2 + $0x4] sm:$0x3] }
 0x239   :  { %v1364_v3 = vmax.f32 %v1363_v45, %v4817_v49 }
 0x23d   :  { %v2295_v54 = vld [vmem:[#allocation1] sm:$0xff]  ;;  %v2296_v53 = vld [vmem:[#allocation1 + $0x9] sm:$0xff] }
 0x23e   :  { %2484 = vst [vmem:[#allocation1] ss:$9 sm:$0xff] %v122_v63 }
 0x245   :  { %v826_v61 = vpop.f32.mrf.mxu0  ;;  %v899_v26 = vpop.f32.mrf.mxu1 }
 0x246   :  { %v1305_v62 = vmax.f32 %v1304_v25, %v826_v61  ;;  %v1335_v6 = vmax.f32 %v1334_v18, %v899_v26  ;;  %2465 = vmatmul.bf16.vlgmr.msrb.gmra.mxu2 %v2295_v54  ;;  %3243 = vmatmul.msk.bf16.vlgmr.msrb.gmra.mxu3 %vm2232_vm2, %v2296_v53 }
 0x247   :  { %2439 = vmatmul.bf16.vlgmr.msrb.gmra.mxu0 %v2295_v54  ;;  %3242 = vmatmul.msk.bf16.vlgmr.msrb.gmra.mxu1 %vm2232_vm2, %v2296_v53 }
 0x248   :  { %v1306_v31 = vrot.slane %v1305_v62, 4  ;;  %v1336_v19 = vrot.slane %v1335_v6, 4 }
 0x24a   :  { %v1307_v25 = vmax.f32 %v1305_v62, %v1306_v31  ;;  %v1337_v18 = vmax.f32 %v1335_v6, %v1336_v19 }
 0x24c   :  { %v1308_v13 = vrot.slane %v1307_v25, 2  ;;  %v1338_v9 = vrot.slane %v1337_v18, 2 }
 0x24d   :  { %v4838_v50 = vpop.f32.mrf.mxu2  ;;  %v4840_v46 = vpop.f32.mrf.mxu3 }
 0x24e   :  { %v1365_v20 = vmax.f32 %v1364_v3, %v4838_v50  ;;  %v1395_v30 = vmax.f32 %v1394_v28, %v4840_v46  ;;  %v828_v22 = vpop.f32.mrf.mxu0  ;;  %v901_v62 = vpop.f32.mrf.mxu1  ;;  %v1309_v19 = vmax.f32 %v1307_v25, %v1308_v13  ;;  %v1339_v6 = vmax.f32 %v1337_v18, %v1338_v9 }
 0x250   :  { %v1366_v31 = vrot.slane %v1365_v20, 4  ;;  %v1396_v23 = vrot.slane %v1395_v30, 4  ;;  %v1310_v45 = vrot.slane %v1309_v19, 1  ;;  %v1340_v57 = vrot.slane %v1339_v6, 1 }
 0x252   :  { %v1367_v49 = vmax.f32 %v1365_v20, %v1366_v31  ;;  %v1397_v7 = vmax.f32 %v1395_v30, %v1396_v23  ;;  %v4847_v3 = vmax.f32 %v1309_v19, %v1310_v45  ;;  %v4849_v28 = vmax.f32 %v1339_v6, %v1340_v57 }
 0x254   :  { %v1368_v22 = vrot.slane %v1367_v49, 2  ;;  %v1398_v13 = vrot.slane %v1397_v7, 2  ;;  %v1550_v9 = vsub.f32 %v826_v61, %v4847_v3  ;;  %v1551_v25 = vsub.f32 %v899_v26, %v4849_v28 }
 0x255   :  { %v1087_v18 = vpop.f32.mrf.mxu2  ;;  %v1160_v62 = vpop.f32.mrf.mxu3  ;;  %v1530_v4 = vsub.f32 %v4654_v39, %v4847_v3  ;;  %v1531_v20 = vsub.f32 %v4656_v60, %v4849_v28  ;;  %v1532_v19 = vsub.f32 %v4662_v21, %v4847_v3  ;;  %v1533_v6 = vsub.f32 %v4664_v44, %v4849_v28 }
 0x256   :  { %v1369_v30 = vmax.f32 %v1367_v49, %v1368_v22  ;;  %v1399_v63 = vmax.f32 %v1397_v7, %v1398_v13  ;;  %v1898_v31 = vmul.f32 1.442695, %v1550_v9  ;;  %v1900_v61 = vmul.f32 1.442695, %v1551_v25 }
 0x257   :  { %v1858_v23 = vmul.f32 1.442695, %v1530_v4  ;;  %v1526_v26 = vsub.f32 %v4638_v2, %v4847_v3  ;;  %v1860_v39 = vmul.f32 1.442695, %v1531_v20  ;;  %v1862_v18 = vmul.f32 1.442695, %v1532_v19 }
 0x258   :  { %v1370_v45 = vrot.slane %v1369_v30, 1  ;;  %v1400_v57 = vrot.slane %v1399_v63, 1  ;;  %3497 = vpow2.f32 %v1898_v31  ;;  %v1864_v60 = vmul.f32 1.442695, %v1533_v6 }
 0x259   :  { %v1527_v7 = vsub.f32 %v4640_v56, %v4849_v28  ;;  %v1528_v21 = vsub.f32 %v4646_v36, %v4847_v3  ;;  %3499 = vpow2.f32 %v1900_v61  ;;  %v1529_v4 = vsub.f32 %v4648_v40, %v4849_v28 }
 0x25a   :  { %v4867_v44 = vmax.f32 %v1369_v30, %v1370_v45  ;;  %v4869_v49 = vmax.f32 %v1399_v63, %v1400_v57  ;;  %3501 = vpow2.f32 %v1858_v23  ;;  %v1850_v2 = vmul.f32 1.442695, %v1526_v26 }
 0x25b   :  { %v1852_v56 = vmul.f32 1.442695, %v1527_v7  ;;  %v1854_v22 = vmul.f32 1.442695, %v1528_v21  ;;  %3503 = vpow2.f32 %v1860_v39  ;;  %v1856_v9 = vmul.f32 1.442695, %v1529_v4 }
 0x25c   :  { %v1600_v36 = vsub.f32 %v4838_v50, %v4867_v44  ;;  %v1601_v13 = vsub.f32 %v4840_v46, %v4869_v49  ;;  %3505 = vpow2.f32 %v1862_v18  ;;  %v1546_v25 = vsub.f32 %v4768_v51, %v4847_v3 }
 0x25d   :  { %v1547_v54 = vsub.f32 %v4770_v35, %v4849_v28  ;;  %v1548_v40 = vsub.f32 %v4796_v33, %v4847_v3  ;;  %3507 = vpow2.f32 %v1864_v60  ;;  %v1549_v50 = vsub.f32 %v4798_v27, %v4849_v28 }
 0x25e   :  { %v1998_v53 = vmul.f32 1.442695, %v1600_v36  ;;  %v2000_v62 = vmul.f32 1.442695, %v1601_v13  ;;  %v3498_v20 = vpop.eup %3497  ;;  %3509 = vpow2.f32 %v1850_v2  ;;  %v1890_v46 = vmul.f32 1.442695, %v1546_v25 }
 0x25f   :  { %v1892_v30 = vmul.f32 1.442695, %v1547_v54  ;;  %v1894_v63 = vmul.f32 1.442695, %v1548_v40  ;;  %v3500_v19 = vpop.eup %3499  ;;  %v1896_v51 = vmul.f32 1.442695, %v1549_v50  ;;  %v1522_v35 = vsub.f32 %v4602_v0, %v4847_v3 }
 0x260   :  { %3511 = vpow2.f32 %v1998_v53  ;;  %v1523_v33 = vsub.f32 %v5429_v34, %v4849_v28  ;;  %v3502_v6 = vpop.eup %3501  ;;  %v2076_v31 = vpack.c.bf16 %v3500_v19, %v3498_v20  ;;  %v1524_v27 = vsub.f32 %v4622_v32, %v4847_v3 }
 0x261   :  { %3513 = vpow2.f32 %v2000_v62  ;;  %v1525_v61 = vsub.f32 %v4624_v8, %v4849_v28  ;;  %v3504_v23 = vpop.eup %3503  ;;  %v1842_v26 = vmul.f32 1.442695, %v1522_v35  ;;  %v1542_v57 = vsub.f32 %v4710_v59, %v4847_v3 }
 0x262   :  { %3515 = vpow2.f32 %v1852_v56  ;;  %v1844_v45 = vmul.f32 1.442695, %v1523_v33  ;;  %v3506_v0 = vpop.eup %3505  ;;  %v2066_v39 = vpack.c.bf16 %v3504_v23, %v3502_v6  ;;  %v2561_v18 = vunpack.c.l.b16 %v2076_v31 }
 0x263   :  { %v2562_v34 = vunpack.c.h.b16 %v2076_v31  ;;  %3517 = vpow2.f32 %v1854_v22  ;;  %v3508_v60 = vpop.eup %3507  ;;  %v1846_v7 = vmul.f32 1.442695, %v1524_v27  ;;  %v1848_v21 = vmul.f32 1.442695, %v1525_v61 }
 0x264   :  { %3519 = vpow2.f32 %v1856_v9  ;;  %v1543_v32 = vsub.f32 %v4712_v52, %v4849_v28  ;;  %v3510_v8 = vpop.eup %3509  ;;  %v2067_v4 = vpack.c.bf16 %v3508_v60, %v3506_v0  ;;  %v2541_v2 = vunpack.c.l.b16 %v2066_v39 }
 0x265   :  { %v2542_v56 = vunpack.c.h.b16 %v2066_v39  ;;  %v2587_v36 = vpack.c.b16 %v2561_v18, %v2561_v18  ;;  %v2588_v59 = vpack.c.b16 %v2562_v34, %v2562_v34  ;;  %3521 = vpow2.f32 %v1890_v46 }
 0x266   :  { %v4899_v13 = vpop.eup %3511  ;;  %v1544_v25 = vsub.f32 %v4740_v10, %v4847_v3  ;;  %v1545_v22 = vsub.f32 %v4742_v41, %v4849_v28  ;;  %v2543_v54 = vunpack.c.l.b16 %v2067_v4  ;;  %v2544_v40 = vunpack.c.h.b16 %v2067_v4 }
 0x267   :  { %v4905_v9 = vpop.eup %3513  ;;  %v2616_v52 = vsel %vm232_vm0, %v2587_v36, 0  ;;  %3523 = vpow2.f32 %v1892_v30  ;;  %v2619_v62 = vsel %vm232_vm0, %v2588_v59, 0  ;;  %v1882_v50 = vmul.f32 1.442695, %v1542_v57 }
 0x268   :  { %v3516_v53 = vpop.eup %3515  ;;  %2637 = vmatpush.bf16.msra.mxu3 %v2616_v52  ;;  %3525 = vpow2.f32 %v1894_v63  ;;  %v1884_v20 = vmul.f32 1.442695, %v1543_v32  ;;  %v2577_v19 = vpack.c.b16 %v2543_v54, %v2541_v2  ;;  %v2578_v10 = vpack.c.b16 %v2544_v40, %v2542_v56  ;;  %2663 = vmatpush.bf16.msra.mxu2 %v2619_v62 }
 0x269   :  { %v3518_v46 = vpop.eup %3517  ;;  %v2064_v35 = vpack.c.bf16 %v3516_v53, %v3510_v8  ;;  %3527 = vpow2.f32 %v1896_v51  ;;  %v1886_v33 = vmul.f32 1.442695, %v1544_v25  ;;  %v1888_v6 = vmul.f32 1.442695, %v1545_v22 }
 0x26a   :  { %v3520_v41 = vpop.eup %3519  ;;  %3529 = vpow2.f32 %v1842_v26  ;;  %v1518_v30 = vsub.f32 %v4556_v11, %v4847_v3  ;;  %2621 = vmatpush.bf16.msra.mxu1 %v2577_v19  ;;  %2647 = vmatpush.bf16.msra.mxu0 %v2578_v10  ;;  %v1519_v23 = vsub.f32 %v4558_v12, %v4849_v28  ;;  %v1520_v51 = vsub.f32 %v4580_v1, %v4847_v3 }
 0x26b   :  { %v2065_v31 = vpack.c.bf16 %v3520_v41, %v3518_v46  ;;  %v2537_v27 = vunpack.c.l.b16 %v2064_v35  ;;  %v2538_v63 = vunpack.c.h.b16 %v2064_v35  ;;  %3531 = vpow2.f32 %v1844_v45  ;;  %v3522_v61 = vpop.eup %3521 }
 0x26c   :  { %3533 = vpow2.f32 %v1846_v7  ;;  %v1521_v26 = vsub.f32 %v4582_v42, %v4849_v28  ;;  %v1834_v39 = vmul.f32 1.442695, %v1518_v30  ;;  %v1836_v45 = vmul.f32 1.442695, %v1519_v23 }
 0x26d   :  { %v3524_v57 = vpop.eup %3523  ;;  %v2539_v0 = vunpack.c.l.b16 %v2065_v31  ;;  %v2540_v11 = vunpack.c.h.b16 %v2065_v31  ;;  %3535 = vpow2.f32 %v1848_v21  ;;  %v1838_v60 = vmul.f32 1.442695, %v1520_v51 }
 0x26e   :  { %v3526_v18 = vpop.eup %3525  ;;  %v2074_v34 = vpack.c.bf16 %v3524_v57, %v3522_v61  ;;  %3537 = vpow2.f32 %v1882_v50  ;;  %v1840_v12 = vmul.f32 1.442695, %v1521_v26  ;;  %v1538_v21 = vsub.f32 %v5445_v37, %v4847_v3 }
 0x26f   :  { %v3528_v7 = vpop.eup %3527  ;;  %v2575_v32 = vpack.c.b16 %v2539_v0, %v2537_v27  ;;  %v2576_v8 = vpack.c.b16 %v2540_v11, %v2538_v63  ;;  %3539 = vpow2.f32 %v1884_v20  ;;  %v1539_v36 = vsub.f32 %v5446_v15, %v4849_v28 }
 0x270   :  { %v3530_v4 = vpop.eup %3529  ;;  %v2075_v1 = vpack.c.bf16 %v3528_v7, %v3526_v18  ;;  %v2557_v2 = vunpack.c.l.b16 %v2074_v34  ;;  %v2558_v56 = vunpack.c.h.b16 %v2074_v34  ;;  %3541 = vpow2.f32 %v1886_v33 }
 0x271   :  { %v3532_v42 = vpop.eup %3531  ;;  %2622 = vmatpush.bf16.msra.mxu1 %v2575_v32  ;;  %2648 = vmatpush.bf16.msra.mxu0 %v2576_v8  ;;  %3543 = vpow2.f32 %v1888_v6  ;;  %v1540_v59 = vsub.f32 %v5449_v29, %v4847_v3  ;;  %v1541_v53 = vsub.f32 %v5450_v55, %v4849_v28  ;;  %v1874_v62 = vmul.f32 1.442695, %v1538_v21 }
 0x272   :  { %v3534_v25 = vpop.eup %3533  ;;  %v2559_v22 = vunpack.c.l.b16 %v2075_v1  ;;  %v2560_v54 = vunpack.c.h.b16 %v2075_v1  ;;  %v2062_v40 = vpack.c.bf16 %v3532_v42, %v3530_v4  ;;  %3545 = vpow2.f32 %v1834_v39 }
 0x273   :  { %v3536_v52 = vpop.eup %3535  ;;  %3547 = vpow2.f32 %v1836_v45  ;;  %v1876_v50 = vmul.f32 1.442695, %v1539_v36  ;;  %v1878_v29 = vmul.f32 1.442695, %v1540_v59  ;;  %v1880_v41 = vmul.f32 1.442695, %v1541_v53 }
 0x274   :  { %v3538_v20 = vpop.eup %3537  ;;  %v2585_v37 = vpack.c.b16 %v2559_v22, %v2557_v2  ;;  %v2586_v46 = vpack.c.b16 %v2560_v54, %v2558_v56  ;;  %v2063_v19 = vpack.c.bf16 %v3536_v52, %v3534_v25  ;;  %v2533_v15 = vunpack.c.l.b16 %v2062_v40 }
 0x275   :  { %v3540_v10 = vpop.eup %3539  ;;  %v2534_v35 = vunpack.c.h.b16 %v2062_v40  ;;  %3549 = vpow2.f32 %v1838_v60  ;;  %v1514_v27 = vsub.f32 %v4498_v16, %v4847_v3  ;;  %v1515_v63 = vsub.f32 %v4500_v17, %v4849_v28 }
 0x276   :  { %v3542_v33 = vpop.eup %3541  ;;  %2638 = vmatpush.bf16.msra.mxu3 %v2585_v37  ;;  %2664 = vmatpush.bf16.msra.mxu2 %v2586_v46  ;;  %v2535_v6 = vunpack.c.l.b16 %v2063_v19  ;;  %v2536_v30 = vunpack.c.h.b16 %v2063_v19  ;;  %v2072_v31 = vpack.c.bf16 %v3540_v10, %v3538_v20  ;;  %3551 = vpow2.f32 %v1840_v12  ;;  %v5459_v10 = vld [vmem:[#allocation44_spill] sm:$0xff] }
 0x277   :  { %v3544_v55 = vpop.eup %3543  ;;  %3553 = vpow2.f32 %v1874_v62  ;;  %v1516_v61 = vsub.f32 %v4532_v43, %v4847_v3  ;;  %v1517_v18 = vsub.f32 %v4534_v47, %v4849_v28  ;;  %v1826_v34 = vmul.f32 1.442695, %v1514_v27 }
 0x278   :  { %v3546_v23 = vpop.eup %3545  ;;  %v2573_v51 = vpack.c.b16 %v2535_v6, %v2533_v15  ;;  %v2574_v26 = vpack.c.b16 %v2536_v30, %v2534_v35  ;;  %v2073_v57 = vpack.c.bf16 %v3544_v55, %v3542_v33  ;;  %v2553_v0 = vunpack.c.l.b16 %v2072_v31 }
 0x279   :  { %v3548_v11 = vpop.eup %3547  ;;  %v2554_v39 = vunpack.c.h.b16 %v2072_v31  ;;  %3555 = vpow2.f32 %v1876_v50  ;;  %v1828_v43 = vmul.f32 1.442695, %v1515_v63  ;;  %v1830_v7 = vmul.f32 1.442695, %v1516_v61 }
 0x27a   :  { %2623 = vmatpush.bf16.msra.mxu1 %v2573_v51  ;;  %2649 = vmatpush.bf16.msra.mxu0 %v2574_v26  ;;  %v2555_v16 = vunpack.c.l.b16 %v2073_v57  ;;  %v2556_v45 = vunpack.c.h.b16 %v2073_v57  ;;  %v2060_v17 = vpack.c.bf16 %v3548_v11, %v3546_v23  ;;  %3557 = vpow2.f32 %v1878_v29  ;;  %v5460_v29 = vld [vmem:[#allocation53_spill] sm:$0xff] }
 0x27b   :  { %v3550_v60 = vpop.eup %3549  ;;  %3559 = vpow2.f32 %v1880_v41  ;;  %v1832_v32 = vmul.f32 1.442695, %v1517_v18  ;;  %v1534_v47 = vsub.f32 %v4670_v48, %v4847_v3  ;;  %v1535_v21 = vsub.f32 %v4672_v24, %v4849_v28 }
 0x27c   :  { %v3552_v8 = vpop.eup %3551  ;;  %v2583_v12 = vpack.c.b16 %v2555_v16, %v2553_v0  ;;  %v2584_v4 = vpack.c.b16 %v2556_v45, %v2554_v39  ;;  %v2529_v1 = vunpack.c.l.b16 %v2060_v17  ;;  %v2530_v2 = vunpack.c.h.b16 %v2060_v17  ;;  %v5462_v45 = vld [vmem:[#allocation51_spill] sm:$0xff] }
 0x27d   :  { %v3554_v56 = vpop.eup %3553  ;;  %v2061_v42 = vpack.c.bf16 %v3552_v8, %v3550_v60  ;;  %3561 = vpow2.f32 %v1826_v34  ;;  %v1536_v36 = vsub.f32 %v4678_v14, %v4847_v3  ;;  %v1537_v59 = vsub.f32 %v5440_v58, %v4849_v28  ;;  %v5463_v60 = vld [vmem:[#allocation13_spill] sm:$0xff] }
 0x27e   :  { %2639 = vmatpush.bf16.msra.mxu3 %v2583_v12  ;;  %2665 = vmatpush.bf16.msra.mxu2 %v2584_v4  ;;  %3563 = vpow2.f32 %v1828_v43  ;;  %v1580_v25 = vsub.f32 %v5443_v38, %v4867_v44  ;;  %v1866_v48 = vmul.f32 1.442695, %v1534_v47  ;;  %v1868_v24 = vmul.f32 1.442695, %v1535_v21  ;;  %v5465_v21 = vld [vmem:[#allocation60_spill] sm:$0xff] }
 0x27f   :  { %v3556_v22 = vpop.eup %3555  ;;  %v2531_v54 = vunpack.c.l.b16 %v2061_v42  ;;  %v2532_v40 = vunpack.c.h.b16 %v2061_v42  ;;  %3565 = vpow2.f32 %v1830_v7  ;;  %v1870_v62 = vmul.f32 1.442695, %v1536_v36  ;;  %v5464_v7 = vld [vmem:[#allocation14_spill] sm:$0xff] }
 0x280   :  { %v3558_v52 = vpop.eup %3557  ;;  %v2070_v53 = vpack.c.bf16 %v3556_v22, %v3554_v56  ;;  %3567 = vpow2.f32 %v1832_v32  ;;  %v1872_v14 = vmul.f32 1.442695, %v1537_v59  ;;  %v1581_v15 = vsub.f32 %v5444_v5, %v4869_v49  ;;  %v5461_v5 = vld [vmem:[#allocation26_spill] sm:$0xff] }
 0x281   :  { %v3560_v50 = vpop.eup %3559  ;;  %v2571_v20 = vpack.c.b16 %v2531_v54, %v2529_v1  ;;  %v2572_v37 = vpack.c.b16 %v2532_v40, %v2530_v2  ;;  %3569 = vpow2.f32 %v1866_v48  ;;  %v1582_v35 = vsub.f32 %v5459_v10, %v4867_v44 }
 0x282   :  { %v2071_v46 = vpack.c.bf16 %v3560_v50, %v3558_v52  ;;  %v2549_v58 = vunpack.c.l.b16 %v2070_v53  ;;  %v2550_v19 = vunpack.c.h.b16 %v2070_v53  ;;  %3571 = vpow2.f32 %v1868_v24  ;;  %v5466_v53 = vld [vmem:[#allocation61_spill] sm:$0xff] }
 0x283   :  { %v3562_v38 = vpop.eup %3561  ;;  %2624 = vmatpush.bf16.msra.mxu1 %v2571_v20  ;;  %2650 = vmatpush.bf16.msra.mxu0 %v2572_v37  ;;  %3573 = vpow2.f32 %v1870_v62  ;;  %v1583_v41 = vsub.f32 %v5460_v29, %v4869_v49  ;;  %v1958_v31 = vmul.f32 1.442695, %v1580_v25  ;;  %v1960_v63 = vmul.f32 1.442695, %v1581_v15  ;;  %v5467_v37 = vld [vmem:[#allocation62_spill] sm:$0xff] }
 0x284   :  { %v3564_v33 = vpop.eup %3563  ;;  %v2551_v6 = vunpack.c.l.b16 %v2071_v46  ;;  %v2552_v30 = vunpack.c.h.b16 %v2071_v46  ;;  %3575 = vpow2.f32 %v1872_v14  ;;  %v1962_v61 = vmul.f32 1.442695, %v1582_v35 }
 0x285   :  { %v3566_v55 = vpop.eup %3565  ;;  %v2058_v27 = vpack.c.bf16 %v3564_v33, %v3562_v38  ;;  %v1964_v23 = vmul.f32 1.442695, %v1583_v41  ;;  %3577 = vpow2.f32 %v1958_v31  ;;  %v1510_v0 = vsub.f32 %v5461_v5, %v4847_v3 }
 0x286   :  { %v3568_v51 = vpop.eup %3567  ;;  %v2581_v26 = vpack.c.b16 %v2551_v6, %v2549_v58  ;;  %v2582_v57 = vpack.c.b16 %v2552_v30, %v2550_v19  ;;  %3579 = vpow2.f32 %v1960_v63  ;;  %v1511_v17 = vsub.f32 %v5462_v45, %v4849_v28  ;;  %v5468_v19 = vld [vmem:[#allocation41_spill] sm:$0xff]  ;;  %v5473_v45 = vld [vmem:[#allocation46_spill] sm:$0xff] }
 0x287   :  { %v3570_v11 = vpop.eup %3569  ;;  %v2059_v39 = vpack.c.bf16 %v3568_v51, %v3566_v55  ;;  %v2525_v18 = vunpack.c.l.b16 %v2058_v27  ;;  %v2526_v34 = vunpack.c.h.b16 %v2058_v27  ;;  %3581 = vpow2.f32 %v1962_v61  ;;  %v5469_v27 = vld [vmem:[#allocation72_spill] sm:$0xff] }
 0x288   :  { %v3572_v16 = vpop.eup %3571  ;;  %2640 = vmatpush.bf16.msra.mxu3 %v2581_v26  ;;  %2666 = vmatpush.bf16.msra.mxu2 %v2582_v57  ;;  %v1512_v43 = vsub.f32 %v5463_v60, %v4847_v3  ;;  %v1513_v32 = vsub.f32 %v5464_v7, %v4849_v28  ;;  %3583 = vpow2.f32 %v1964_v23  ;;  %v1818_v56 = vmul.f32 1.442695, %v1510_v0  ;;  %v2486_v61 = vld [vmem:[#allocation1 + $0x9] sm:$0xff] }
 0x289   :  { %v3574_v8 = vpop.eup %3573  ;;  %v2527_v12 = vunpack.c.l.b16 %v2059_v39  ;;  %v2528_v4 = vunpack.c.h.b16 %v2059_v39  ;;  %v2068_v1 = vpack.c.bf16 %v3572_v16, %v3570_v11  ;;  %v1820_v42 = vmul.f32 1.442695, %v1511_v17  ;;  %v5470_v57 = vld [vmem:[#allocation73_spill] sm:$0xff] }
 0x28a   :  { %v3576_v2 = vpop.eup %3575  ;;  %v1822_v47 = vmul.f32 1.442695, %v1512_v43  ;;  %v1576_v36 = vsub.f32 %v5465_v21, %v4867_v44  ;;  %3585 = vpow2.f32 %v1818_v56  ;;  %v1824_v52 = vmul.f32 1.442695, %v1513_v32  ;;  %v5471_v0 = vld [vmem:[#allocation21_spill] sm:$0xff] }
 0x28b   :  { %v2569_v59 = vpack.c.b16 %v2527_v12, %v2525_v18  ;;  %v2570_v25 = vpack.c.b16 %v2528_v4, %v2526_v34  ;;  %v2069_v22 = vpack.c.bf16 %v3576_v2, %v3574_v8  ;;  %v2545_v54 = vunpack.c.l.b16 %v2068_v1  ;;  %v3578_v40 = vpop.eup %3577  ;;  %v5472_v18 = vld [vmem:[#allocation76_spill] sm:$0xff]  ;;  %v5474_v21 = vld [vmem:[#allocation49_spill] sm:$0xff] }
 0x28c   :  { %v2546_v48 = vunpack.c.h.b16 %v2068_v1  ;;  %v1577_v24 = vsub.f32 %v5466_v53, %v4869_v49  ;;  %v3580_v62 = vpop.eup %3579  ;;  %3587 = vpow2.f32 %v1820_v42  ;;  %v1578_v14 = vsub.f32 %v5467_v37, %v4867_v44 }
 0x28d   :  { %2625 = vmatpush.bf16.msra.mxu1 %v2569_v59  ;;  %2651 = vmatpush.bf16.msra.mxu0 %v2570_v25  ;;  %v2547_v50 = vunpack.c.l.b16 %v2069_v22  ;;  %v2548_v20 = vunpack.c.h.b16 %v2069_v22  ;;  %v3582_v46 = vpop.eup %3581  ;;  %v2091_v58 = vpack.c.bf16 %v3580_v62, %v3578_v40  ;;  %3589 = vpow2.f32 %v1822_v47  ;;  %v5475_v25 = vld [vmem:[#allocation50_spill] sm:$0xff]  ;;  %v123_v62 = vld [vmem:[%s5094_s2 + $0x6] sm:$0x3]  ;;  %s3739_s2 = smov [#allocation2]  }
 0x28e   :  { %v1579_v38 = vsub.f32 %v5468_v19, %v4869_v49  ;;  %v1950_v15 = vmul.f32 1.442695, %v1576_v36  ;;  %v3584_v10 = vpop.eup %3583  ;;  %3591 = vpow2.f32 %v1824_v52  ;;  %v1952_v41 = vmul.f32 1.442695, %v1577_v24  ;;  %s2933_s19 = sshll.u32 %s3739_s2, 4  ;;  %s2934_s19 = int_to_ptr.vmem [resolvable:$true] %s2933_s19 }
 0x28f   :  { %v2579_v35 = vpack.c.b16 %v2547_v50, %v2545_v54  ;;  %v2580_v29 = vpack.c.b16 %v2548_v20, %v2546_v48  ;;  %v2092_v33 = vpack.c.bf16 %v3584_v10, %v3582_v46  ;;  %v2731_v6 = vunpack.c.l.b16 %v2091_v58  ;;  %v5476_v54 = vld [vmem:[#allocation59_spill] sm:$0xff] }
 0x290   :  { %v2732_v30 = vunpack.c.h.b16 %v2091_v58  ;;  %3593 = vpow2.f32 %v1950_v15  ;;  %v1954_v31 = vmul.f32 1.442695, %v1578_v14  ;;  %v1956_v55 = vmul.f32 1.442695, %v1579_v38  ;;  %v3586_v23 = vpop.eup %3585  ;;  %v4986_v50 = vld [vmem:[#allocation1] sm:$0xff] }
 0x291   :  { %2641 = vmatpush.bf16.msra.mxu3 %v2579_v35  ;;  %2667 = vmatpush.bf16.msra.mxu2 %v2580_v29  ;;  %3595 = vpow2.f32 %v1952_v41  ;;  %v1506_v63 = vsub.f32 %v5469_v27, %v4847_v3  ;;  %v2733_v51 = vunpack.c.l.b16 %v2092_v33  ;;  %v2734_v26 = vunpack.c.h.b16 %v2092_v33  ;;  %2674 = vst [vmem:[#allocation1] ss:$9 sm:$0xff] %v123_v62  ;;  %v5477_v41 = vld [vmem:[#allocation58_spill] sm:$0xff]  ;;  %v5480_v27 = vld [vmem:[#allocation69_spill] sm:$0xff] }
 0x292   :  { %v1507_v5 = vsub.f32 %v5470_v57, %v4849_v28  ;;  %v1508_v11 = vsub.f32 %v5471_v0, %v4847_v3  ;;  %v3588_v39 = vpop.eup %3587  ;;  %3597 = vpow2.f32 %v1954_v31  ;;  %v1509_v34 = vsub.f32 %v5472_v18, %v4849_v28  ;;  %v5479_v31 = vld [vmem:[#allocation68_spill] sm:$0xff] }
 0x293   :  { %v1810_v16 = vmul.f32 1.442695, %v1506_v63  ;;  %v1572_v17 = vsub.f32 %v5473_v45, %v4867_v44  ;;  %v3590_v60 = vpop.eup %3589  ;;  %v2767_v43 = vpack.c.b16 %v2733_v51, %v2731_v6  ;;  %v2768_v7 = vpack.c.b16 %v2734_v26, %v2732_v30  ;;  %v5478_v6 = vld [vmem:[#allocation65_spill] sm:$0xff] }
 0x294   :  { %v2056_v32 = vpack.c.bf16 %v3588_v39, %v3586_v23  ;;  %3599 = vpow2.f32 %v1956_v55  ;;  %3244 = vmatmul.msk.bf16.vlgmr.msra.gmra.mxu3 %vm2232_vm2, %v2486_v61  ;;  %3245 = vmatmul.msk.bf16.vlgmr.msra.gmra.mxu2 %vm2232_vm2, %v2486_v61  ;;  %v3592_v8 = vpop.eup %3591  ;;  %v1812_v12 = vmul.f32 1.442695, %v1507_v5  ;;  %v1814_v4 = vmul.f32 1.442695, %v1508_v11 }
 0x295   :  { %3601 = vpow2.f32 %v1810_v16  ;;  %v1816_v1 = vmul.f32 1.442695, %v1509_v34  ;;  %2811 = vmatpush.bf16.msrb.mxu3 %v2767_v43  ;;  %2837 = vmatpush.bf16.msrb.mxu2 %v2768_v7  ;;  %v2057_v56 = vpack.c.bf16 %v3592_v8, %v3590_v60  ;;  %v1573_v36 = vsub.f32 %v5474_v21, %v4869_v49  ;;  %v5481_v43 = vld [vmem:[#allocation5_spill] sm:$0xff] }
 0x296   :  { %v3594_v2 = vpop.eup %3593  ;;  %v2521_v42 = vunpack.c.l.b16 %v2056_v32  ;;  %v2522_v47 = vunpack.c.h.b16 %v2056_v32  ;;  %3603 = vpow2.f32 %v1812_v12  ;;  %v1574_v22 = vsub.f32 %v5475_v25, %v4867_v44  ;;  %v5483_v21 = vld [vmem:[#allocation9_spill] sm:$0xff] }
 0x297   :  { %v3596_v59 = vpop.eup %3595  ;;  %v1575_v40 = vsub.f32 %v5476_v54, %v4869_v49  ;;  %v1942_v48 = vmul.f32 1.442695, %v1572_v17  ;;  %v2523_v52 = vunpack.c.l.b16 %v2057_v56  ;;  %v2524_v53 = vunpack.c.h.b16 %v2057_v56  ;;  %v5484_v54 = vld [vmem:[#allocation10_spill] sm:$0xff] }
 0x298   :  { %v2089_v24 = vpack.c.bf16 %v3596_v59, %v3594_v2  ;;  %3605 = vpow2.f32 %v1814_v4  ;;  %v3598_v20 = vpop.eup %3597  ;;  %v1944_v37 = vmul.f32 1.442695, %v1573_v36  ;;  %v1946_v14 = vmul.f32 1.442695, %v1574_v22  ;;  %v5482_v4 = vld [vmem:[#allocation6_spill] sm:$0xff] }
 0x299   :  { %3607 = vpow2.f32 %v1816_v1  ;;  %v1948_v46 = vmul.f32 1.442695, %v1575_v40  ;;  %v2567_v19 = vpack.c.b16 %v2523_v52, %v2521_v42  ;;  %v2568_v38 = vpack.c.b16 %v2524_v53, %v2522_v47 }
 0x29a   :  { %v3600_v58 = vpop.eup %3599  ;;  %v2727_v15 = vunpack.c.l.b16 %v2089_v24  ;;  %v2728_v10 = vunpack.c.h.b16 %v2089_v24  ;;  %3609 = vpow2.f32 %v1942_v48  ;;  %v1502_v33 = vsub.f32 %v5477_v41, %v4847_v3  ;;  %v5485_v41 = vld [vmem:[#allocation27_spill] sm:$0xff] }
 0x29b   :  { %v3602_v35 = vpop.eup %3601  ;;  %v2090_v29 = vpack.c.bf16 %v3600_v58, %v3598_v20  ;;  %v1503_v30 = vsub.f32 %v5478_v6, %v4849_v28  ;;  %2626 = vmatpush.bf16.msra.mxu1 %v2567_v19  ;;  %2652 = vmatpush.bf16.msra.mxu0 %v2568_v38  ;;  %3611 = vpow2.f32 %v1944_v37  ;;  %v1504_v55 = vsub.f32 %v5479_v31, %v4847_v3  ;;  %v5486_v6 = vld [vmem:[#allocation28_spill] sm:$0xff]  ;;  %v5487_v31 = vld [vmem:[#allocation15_spill] sm:$0xff] }
 0x29c   :  { %v1505_v63 = vsub.f32 %v5480_v27, %v4849_v28  ;;  %v2101_v61 = vpack.c.bf16 %v4905_v9, %v4899_v13  ;;  %v3604_v23 = vpop.eup %3603  ;;  %3613 = vpow2.f32 %v1946_v14  ;;  %v1802_v57 = vmul.f32 1.442695, %v1502_v33 }
 0x29d   :  { %v2729_v51 = vunpack.c.l.b16 %v2090_v29  ;;  %v2730_v26 = vunpack.c.h.b16 %v2090_v29  ;;  %v2054_v0 = vpack.c.bf16 %v3604_v23, %v3602_v35  ;;  %3615 = vpow2.f32 %v1948_v46 }
 0x29e   :  { %v3606_v5 = vpop.eup %3605  ;;  %v1804_v11 = vmul.f32 1.442695, %v1503_v30  ;;  %v1806_v39 = vmul.f32 1.442695, %v1504_v55  ;;  %3617 = vpow2.f32 %v1802_v57  ;;  %v1808_v3 = vmul.f32 1.442695, %v1505_v63 }
 0x29f   :  { %v3608_v18 = vpop.eup %3607  ;;  %v2765_v34 = vpack.c.b16 %v2729_v51, %v2727_v15  ;;  %v2766_v16 = vpack.c.b16 %v2730_v26, %v2728_v10  ;;  %v2517_v28 = vunpack.c.l.b16 %v2054_v0  ;;  %v2518_v17 = vunpack.c.h.b16 %v2054_v0  ;;  %v5488_v26 = vld [vmem:[#allocation16_spill] sm:$0xff] }
 0x2a0   :  { %v2055_v45 = vpack.c.bf16 %v3608_v18, %v3606_v5  ;;  %3619 = vpow2.f32 %v1804_v11  ;;  %v3610_v13 = vpop.eup %3609  ;;  %v2751_v9 = vunpack.c.l.b16 %v2101_v61  ;;  %v2752_v60 = vunpack.c.h.b16 %v2101_v61 }
 0x2a1   :  { %2812 = vmatpush.bf16.msrb.mxu3 %v2765_v34  ;;  %2838 = vmatpush.bf16.msrb.mxu2 %v2766_v16  ;;  %3621 = vpow2.f32 %v1806_v39  ;;  %v1568_v7 = vsub.f32 %v5481_v43, %v4867_v44  ;;  %v3612_v32 = vpop.eup %3611  ;;  %v1569_v1 = vsub.f32 %v5482_v4, %v4869_v49  ;;  %v1570_v36 = vsub.f32 %v5483_v21, %v4867_v44  ;;  %v5491_v43 = vld [vmem:[#allocation47_spill] sm:$0xff] }
 0x2a2   :  { %v2519_v8 = vunpack.c.l.b16 %v2055_v45  ;;  %v2520_v12 = vunpack.c.h.b16 %v2055_v45  ;;  %3623 = vpow2.f32 %v1808_v3  ;;  %v3614_v2 = vpop.eup %3613  ;;  %v2087_v56 = vpack.c.bf16 %v3612_v32, %v3610_v13  ;;  %v5489_v3 = vld [vmem:[#allocation63_spill] sm:$0xff]  ;;  %v5490_v13 = vld [vmem:[#allocation64_spill] sm:$0xff] }
 0x2a3   :  { %v2777_v42 = vpack.c.b16 %v2751_v9, %v2751_v9  ;;  %v2778_v47 = vpack.c.b16 %v2752_v60, %v2752_v60  ;;  %v3616_v59 = vpop.eup %3615  ;;  %v1571_v40 = vsub.f32 %v5484_v54, %v4869_v49  ;;  %v1934_v48 = vmul.f32 1.442695, %v1568_v7  ;;  %v5492_v32 = vld [vmem:[#allocation48_spill] sm:$0xff] }
 0x2a4   :  { %v2565_v25 = vpack.c.b16 %v2519_v8, %v2517_v28  ;;  %v2566_v22 = vpack.c.b16 %v2520_v12, %v2518_v17  ;;  %v3618_v52 = vpop.eup %3617  ;;  %v2088_v53 = vpack.c.bf16 %v3616_v59, %v3614_v2  ;;  %v2723_v24 = vunpack.c.l.b16 %v2087_v56  ;;  %v5493_v2 = vld [vmem:[#allocation31_spill] sm:$0xff] }
 0x2a5   :  { %v2724_v62 = vunpack.c.h.b16 %v2087_v56  ;;  %v2806_v20 = vsel %vm232_vm0, %v2777_v42, 0  ;;  %v2809_v14 = vsel %vm232_vm0, %v2778_v47, 0  ;;  %3625 = vpow2.f32 %v1934_v48 }
 0x2a6   :  { %v3620_v37 = vpop.eup %3619  ;;  %2627 = vmatpush.bf16.msra.mxu1 %v2565_v25  ;;  %2653 = vmatpush.bf16.msra.mxu0 %v2566_v22  ;;  %v1936_v46 = vmul.f32 1.442695, %v1569_v1  ;;  %v1938_v58 = vmul.f32 1.442695, %v1570_v36  ;;  %v2725_v38 = vunpack.c.l.b16 %v2088_v53  ;;  %v2726_v15 = vunpack.c.h.b16 %v2088_v53  ;;  %v5494_v36 = vld [vmem:[#allocation32_spill] sm:$0xff] }
 0x2a7   :  { %v3622_v19 = vpop.eup %3621  ;;  %v2052_v10 = vpack.c.bf16 %v3620_v37, %v3618_v52  ;;  %v1940_v35 = vmul.f32 1.442695, %v1571_v40  ;;  %v1596_v33 = vsub.f32 %v5485_v41, %v4867_v44  ;;  %v1597_v30 = vsub.f32 %v5486_v6, %v4869_v49  ;;  %v5495_v40 = vld [vmem:[#allocation23_spill] sm:$0xff]  ;;  %v5498_v41 = vld [vmem:[#allocation57_spill] sm:$0xff] }
 0x2a8   :  { %v3624_v29 = vpop.eup %3623  ;;  %3627 = vpow2.f32 %v1936_v46  ;;  %v1598_v55 = vsub.f32 %v5487_v31, %v4867_v44  ;;  %v2763_v27 = vpack.c.b16 %v2725_v38, %v2723_v24  ;;  %v2764_v63 = vpack.c.b16 %v2726_v15, %v2724_v62  ;;  %v5496_v24 = vld [vmem:[#allocation24_spill] sm:$0xff]  ;;  %v5499_v6 = vld [vmem:[#allocation17_spill] sm:$0xff] }
 0x2a9   :  { %v2053_v61 = vpack.c.bf16 %v3624_v29, %v3622_v19  ;;  %v2513_v23 = vunpack.c.l.b16 %v2052_v10  ;;  %v2514_v51 = vunpack.c.h.b16 %v2052_v10  ;;  %3629 = vpow2.f32 %v1938_v58  ;;  %v5497_v58 = vld [vmem:[#allocation52_spill] sm:$0xff] }
 0x2aa   :  { %v1599_v57 = vsub.f32 %v5488_v26, %v4869_v49  ;;  %v1990_v5 = vmul.f32 1.442695, %v1596_v33  ;;  %2813 = vmatpush.bf16.msrb.mxu3 %v2763_v27  ;;  %2839 = vmatpush.bf16.msrb.mxu2 %v2764_v63  ;;  %3631 = vpow2.f32 %v1940_v35  ;;  %v1992_v39 = vmul.f32 1.442695, %v1597_v30  ;;  %v5500_v26 = vld [vmem:[#allocation18_spill] sm:$0xff] }
 0x2ab   :  { %v2515_v0 = vunpack.c.l.b16 %v2053_v61  ;;  %v2516_v11 = vunpack.c.h.b16 %v2053_v61  ;;  %v3626_v18 = vpop.eup %3625  ;;  %v1994_v34 = vmul.f32 1.442695, %v1598_v55  ;;  %v1564_v45 = vsub.f32 %v5489_v3, %v4867_v44 }
 0x2ac   :  { %3633 = vpow2.f32 %v1990_v5  ;;  %v1996_v16 = vmul.f32 1.442695, %v1599_v57  ;;  %v1565_v9 = vsub.f32 %v5490_v13, %v4869_v49  ;;  %v1566_v7 = vsub.f32 %v5491_v43, %v4867_v44 }
 0x2ad   :  { %v2563_v28 = vpack.c.b16 %v2515_v0, %v2513_v23  ;;  %v2564_v17 = vpack.c.b16 %v2516_v11, %v2514_v51  ;;  %3635 = vpow2.f32 %v1992_v39  ;;  %v1567_v8 = vsub.f32 %v5492_v32, %v4869_v49  ;;  %v5501_v32 = vld [vmem:[#allocation33_spill] sm:$0xff] }
 0x2ae   :  { %v3628_v60 = vpop.eup %3627  ;;  %3637 = vpow2.f32 %v1994_v34  ;;  %v1926_v12 = vmul.f32 1.442695, %v1564_v45  ;;  %v1928_v1 = vmul.f32 1.442695, %v1565_v9  ;;  %v1592_v56 = vsub.f32 %v5493_v2, %v4867_v44 }
 0x2af   :  { %2628 = vmatpush.bf16.msra.mxu1 %v2563_v28  ;;  %2654 = vmatpush.bf16.msra.mxu0 %v2564_v17  ;;  %v2085_v4 = vpack.c.bf16 %v3628_v60, %v3626_v18  ;;  %3639 = vpow2.f32 %v1996_v16  ;;  %v3630_v42 = vpop.eup %3629  ;;  %v1930_v47 = vmul.f32 1.442695, %v1566_v7  ;;  %v1932_v21 = vmul.f32 1.442695, %v1567_v8 }
 0x2b0   :  { %3641 = vpow2.f32 %v1926_v12  ;;  %v1593_v59 = vsub.f32 %v5494_v36, %v4869_v49  ;;  %v3632_v25 = vpop.eup %3631  ;;  %v1594_v48 = vsub.f32 %v5495_v40, %v4867_v44  ;;  %v1595_v62 = vsub.f32 %v5496_v24, %v4869_v49  ;;  %v5502_v12 = vld [vmem:[#allocation34_spill] sm:$0xff] }
 0x2b1   :  { %v2719_v22 = vunpack.c.l.b16 %v2085_v4  ;;  %v2720_v54 = vunpack.c.h.b16 %v2085_v4  ;;  %3643 = vpow2.f32 %v1928_v1  ;;  %v2086_v53 = vpack.c.bf16 %v3632_v25, %v3630_v42  ;;  %v5504_v36 = vld [vmem:[#allocation30_spill] sm:$0xff] }
 0x2b2   :  { %v3634_v52 = vpop.eup %3633  ;;  %2629 = vmatmul.bf16.vlgmr.msra.gmra.mxu1 %v4986_v50  ;;  %2655 = vmatmul.bf16.vlgmr.msra.gmra.mxu0 %v4986_v50  ;;  %3645 = vpow2.f32 %v1930_v47  ;;  %v1986_v46 = vmul.f32 1.442695, %v1594_v48  ;;  %v1560_v19 = vsub.f32 %v5497_v58, %v4867_v44  ;;  %v1988_v50 = vmul.f32 1.442695, %v1595_v62  ;;  %v5503_v47 = vld [vmem:[#allocation29_spill] sm:$0xff]  ;;  %v5506_v58 = vld [vmem:[#allocation75_spill] sm:$0xff] }
 0x2b3   :  { %2827 = vmatpush.bf16.msrb.mxu1 %v2806_v20  ;;  %2853 = vmatpush.bf16.msrb.mxu0 %v2809_v14  ;;  %v1982_v20 = vmul.f32 1.442695, %v1592_v56  ;;  %v3636_v37 = vpop.eup %3635  ;;  %3647 = vpow2.f32 %v1932_v21  ;;  %v1984_v14 = vmul.f32 1.442695, %v1593_v59  ;;  %v2721_v15 = vunpack.c.l.b16 %v2086_v53 }
 0x2b4   :  { %v3638_v38 = vpop.eup %3637  ;;  %v2722_v10 = vunpack.c.h.b16 %v2086_v53  ;;  %v2099_v35 = vpack.c.bf16 %v3636_v37, %v3634_v52  ;;  %v1561_v33 = vsub.f32 %v5498_v41, %v4869_v49  ;;  %v1562_v30 = vsub.f32 %v5499_v6, %v4867_v44 }
 0x2b5   :  { %3649 = vpow2.f32 %v1982_v20  ;;  %v3640_v29 = vpop.eup %3639  ;;  %v2761_v55 = vpack.c.b16 %v2721_v15, %v2719_v22  ;;  %v1563_v57 = vsub.f32 %v5500_v26, %v4869_v49  ;;  %v1918_v5 = vmul.f32 1.442695, %v1560_v19 }
 0x2b6   :  { %3651 = vpow2.f32 %v1984_v14  ;;  %v3642_v31 = vpop.eup %3641  ;;  %v2762_v27 = vpack.c.b16 %v2722_v10, %v2720_v54  ;;  %v2100_v63 = vpack.c.bf16 %v3640_v29, %v3638_v38  ;;  %v2747_v61 = vunpack.c.l.b16 %v2099_v35  ;;  %v5505_v14 = vld [vmem:[#allocation74_spill] sm:$0xff] }
 0x2b7   :  { %v3644_v23 = vpop.eup %3643  ;;  %v2748_v51 = vunpack.c.h.b16 %v2099_v35  ;;  %3653 = vpow2.f32 %v1986_v46  ;;  %2814 = vmatpush.bf16.msrb.mxu3 %v2761_v55  ;;  %v1920_v16 = vmul.f32 1.442695, %v1561_v33  ;;  %v1922_v3 = vmul.f32 1.442695, %v1562_v30  ;;  %v5507_v38 = vld [vmem:[#allocation22_spill] sm:$0xff] }
 0x2b8   :  { %v3646_v0 = vpop.eup %3645  ;;  %2840 = vmatpush.bf16.msrb.mxu2 %v2762_v27  ;;  %v2749_v11 = vunpack.c.l.b16 %v2100_v63  ;;  %v2750_v39 = vunpack.c.h.b16 %v2100_v63  ;;  %v2083_v18 = vpack.c.bf16 %v3644_v23, %v3642_v31  ;;  %3655 = vpow2.f32 %v1988_v50  ;;  %v5508_v50 = vld [vmem:[#allocation25_spill] sm:$0xff] }
 0x2b9   :  { %v3648_v34 = vpop.eup %3647  ;;  %3657 = vpow2.f32 %v1918_v5  ;;  %v1924_v45 = vmul.f32 1.442695, %v1563_v57  ;;  %v1588_v8 = vsub.f32 %v5501_v32, %v4867_v44  ;;  %v1589_v4 = vsub.f32 %v5502_v12, %v4869_v49 }
 0x2ba   :  { %v2775_v17 = vpack.c.b16 %v2749_v11, %v2747_v61  ;;  %v2776_v13 = vpack.c.b16 %v2750_v39, %v2748_v51  ;;  %v2084_v9 = vpack.c.bf16 %v3648_v34, %v3646_v0  ;;  %v2715_v60 = vunpack.c.l.b16 %v2083_v18  ;;  %v5509_v0 = vld [vmem:[#allocation54_spill] sm:$0xff]  ;;  %v5510_v39 = vld [vmem:[#allocation55_spill] sm:$0xff] }
 0x2bb   :  { %v3650_v28 = vpop.eup %3649  ;;  %v2716_v7 = vunpack.c.h.b16 %v2083_v18  ;;  %3659 = vpow2.f32 %v1920_v16  ;;  %v1590_v21 = vsub.f32 %v5503_v47, %v4867_v44  ;;  %v1591_v59 = vsub.f32 %v5504_v36, %v4869_v49 }
 0x2bc   :  { %v3652_v43 = vpop.eup %3651  ;;  %2828 = vmatpush.bf16.msrb.mxu1 %v2775_v17  ;;  %2854 = vmatpush.bf16.msrb.mxu0 %v2776_v13  ;;  %v2717_v1 = vunpack.c.l.b16 %v2084_v9  ;;  %v2718_v2 = vunpack.c.h.b16 %v2084_v9  ;;  %3661 = vpow2.f32 %v1922_v3  ;;  %v1974_v25 = vmul.f32 1.442695, %v1588_v8  ;;  %v5511_v3 = vld [vmem:[#allocation37_spill] sm:$0xff]  ;;  %v5512_v17 = vld [vmem:[#allocation38_spill] sm:$0xff] }
 0x2bd   :  { %v2097_v56 = vpack.c.bf16 %v3652_v43, %v3650_v28  ;;  %v3654_v42 = vpop.eup %3653  ;;  %3663 = vpow2.f32 %v1924_v45  ;;  %v1976_v62 = vmul.f32 1.442695, %v1589_v4  ;;  %v1978_v20 = vmul.f32 1.442695, %v1590_v21  ;;  %v2250_v4 = vpop.f32.mrf.mxu0  ;;  %v5514_v21 = vld [vmem:[#allocation67_spill] sm:$0xff] }
 0x2be   :  { %v3656_v22 = vpop.eup %3655  ;;  %v2759_v54 = vpack.c.b16 %v2717_v1, %v2715_v60  ;;  %v2760_v40 = vpack.c.b16 %v2718_v2, %v2716_v7  ;;  %3665 = vpow2.f32 %v1974_v25  ;;  %v1980_v37 = vmul.f32 1.442695, %v1591_v59  ;;  %v2263_v1 = vpop.f32.mrf.mxu1 }
 0x2bf   :  { %v2743_v48 = vunpack.c.l.b16 %v2097_v56  ;;  %v2744_v52 = vunpack.c.h.b16 %v2097_v56  ;;  %v3658_v53 = vpop.eup %3657  ;;  %v2098_v24 = vpack.c.bf16 %v3656_v22, %v3654_v42  ;;  %v1556_v46 = vsub.f32 %v5505_v14, %v4867_v44  ;;  %v5513_v42 = vld [vmem:[#allocation66_spill] sm:$0xff] }
 0x2c0   :  { %2815 = vmatpush.bf16.msrb.mxu3 %v2759_v54  ;;  %2841 = vmatpush.bf16.msrb.mxu2 %v2760_v40  ;;  %v1557_v19 = vsub.f32 %v5506_v58, %v4869_v49  ;;  %v1558_v15 = vsub.f32 %v5507_v38, %v4867_v44  ;;  %3667 = vpow2.f32 %v1976_v62  ;;  %v1559_v41 = vsub.f32 %v5508_v50, %v4869_v49 }
 0x2c1   :  { %v3660_v10 = vpop.eup %3659  ;;  %v2745_v35 = vunpack.c.l.b16 %v2098_v24  ;;  %v2746_v29 = vunpack.c.h.b16 %v2098_v24  ;;  %3669 = vpow2.f32 %v1978_v20  ;;  %v1910_v30 = vmul.f32 1.442695, %v1556_v46 }
 0x2c2   :  { %v3662_v33 = vpop.eup %3661  ;;  %v2081_v6 = vpack.c.bf16 %v3660_v10, %v3658_v53  ;;  %v1912_v31 = vmul.f32 1.442695, %v1557_v19  ;;  %3671 = vpow2.f32 %v1980_v37  ;;  %v1914_v61 = vmul.f32 1.442695, %v1558_v15  ;;  %v5516_v53 = vld [vmem:[#allocation71_spill] sm:$0xff]  ;;  %v2276_v10 = vpop.f32.mrf.mxu2 }
 0x2c3   :  { %v3664_v55 = vpop.eup %3663  ;;  %v2773_v27 = vpack.c.b16 %v2745_v35, %v2743_v48  ;;  %v2774_v63 = vpack.c.b16 %v2746_v29, %v2744_v52  ;;  %3673 = vpow2.f32 %v1910_v30  ;;  %v1916_v5 = vmul.f32 1.442695, %v1559_v41  ;;  %v5515_v48 = vld [vmem:[#allocation70_spill] sm:$0xff]  ;;  %v2289_v35 = vpop.f32.mrf.mxu3 }
 0x2c4   :  { %v2082_v23 = vpack.c.bf16 %v3664_v55, %v3662_v33  ;;  %v2711_v51 = vunpack.c.l.b16 %v2081_v6  ;;  %v2712_v26 = vunpack.c.h.b16 %v2081_v6  ;;  %v3666_v57 = vpop.eup %3665  ;;  %3675 = vpow2.f32 %v1912_v31 }
 0x2c5   :  { %2829 = vmatpush.bf16.msrb.mxu1 %v2773_v27  ;;  %2855 = vmatpush.bf16.msrb.mxu0 %v2774_v63  ;;  %v1584_v11 = vsub.f32 %v5509_v0, %v4867_v44  ;;  %v1585_v18 = vsub.f32 %v5510_v39, %v4869_v49  ;;  %3677 = vpow2.f32 %v1914_v61  ;;  %v1586_v45 = vsub.f32 %v5511_v3, %v4867_v44  ;;  %v2252_v63 = vpop.f32.mrf.mxu0 }
 0x2c6   :  { %v2713_v34 = vunpack.c.l.b16 %v2082_v23  ;;  %v2714_v16 = vunpack.c.h.b16 %v2082_v23  ;;  %v3668_v28 = vpop.eup %3667  ;;  %3679 = vpow2.f32 %v1916_v5  ;;  %v1587_v13 = vsub.f32 %v5512_v17, %v4869_v49  ;;  %v2265_v61 = vpop.f32.mrf.mxu1 }
 0x2c7   :  { %v1966_v9 = vmul.f32 1.442695, %v1584_v11  ;;  %v1968_v60 = vmul.f32 1.442695, %v1585_v18  ;;  %v3670_v43 = vpop.eup %3669  ;;  %v2095_v8 = vpack.c.bf16 %v3668_v28, %v3666_v57  ;;  %v1970_v12 = vmul.f32 1.442695, %v1586_v45 }
 0x2c8   :  { %v2757_v7 = vpack.c.b16 %v2713_v34, %v2711_v51  ;;  %v2758_v32 = vpack.c.b16 %v2714_v16, %v2712_v26  ;;  %v3672_v2 = vpop.eup %3671  ;;  %v1972_v56 = vmul.f32 1.442695, %v1587_v13  ;;  %v1552_v47 = vsub.f32 %v5513_v42, %v4867_v44 }
 0x2c9   :  { %3681 = vpow2.f32 %v1966_v9  ;;  %v1553_v36 = vsub.f32 %v5514_v21, %v4869_v49  ;;  %v3674_v59 = vpop.eup %3673  ;;  %v2096_v25 = vpack.c.bf16 %v3672_v2, %v3670_v43  ;;  %v2739_v22 = vunpack.c.l.b16 %v2095_v8  ;;  %v2676_v2 = vld [vmem:[#allocation1 + $0x9] sm:$0xff] }
 0x2ca   :  { %2816 = vmatpush.bf16.msrb.mxu3 %v2757_v7  ;;  %2842 = vmatpush.bf16.msrb.mxu2 %v2758_v32  ;;  %v2740_v54 = vunpack.c.h.b16 %v2095_v8  ;;  %3683 = vpow2.f32 %v1968_v60  ;;  %v3676_v40 = vpop.eup %3675  ;;  %v1554_v52 = vsub.f32 %v5515_v48, %v4867_v44  ;;  %v1555_v24 = vsub.f32 %v5516_v53, %v4869_v49  ;;  %v2278_v45 = vpop.f32.mrf.mxu2 }
 0x2cb   :  { %3685 = vpow2.f32 %v1970_v12  ;;  %v1902_v62 = vmul.f32 1.442695, %v1552_v47  ;;  %v3678_v20 = vpop.eup %3677  ;;  %v2741_v37 = vunpack.c.l.b16 %v2096_v25  ;;  %v2742_v14 = vunpack.c.h.b16 %v2096_v25  ;;  %v2291_v28 = vpop.f32.mrf.mxu3 }
 0x2cc   :  { %v2079_v46 = vpack.c.bf16 %v3676_v40, %v3674_v59  ;;  %3687 = vpow2.f32 %v1972_v56  ;;  %v3680_v58 = vpop.eup %3679  ;;  %v1904_v19 = vmul.f32 1.442695, %v1553_v36  ;;  %v1906_v38 = vmul.f32 1.442695, %v1554_v52  ;;  %v2675_v40 = vld [vmem:[#allocation1] sm:$0xff] }
 0x2cd   :  { %3689 = vpow2.f32 %v1902_v62  ;;  %v1908_v15 = vmul.f32 1.442695, %v1555_v24  ;;  %v2771_v29 = vpack.c.b16 %v2741_v37, %v2739_v22  ;;  %v2772_v50 = vpack.c.b16 %v2742_v14, %v2740_v54  ;;  %v2440_v12 = vpop.f32.mrf.mxu0 }
 0x2ce   :  { %v2080_v41 = vpack.c.bf16 %v3680_v58, %v3678_v20  ;;  %v2707_v44 = vunpack.c.l.b16 %v2079_v46  ;;  %v2708_v6 = vunpack.c.h.b16 %v2079_v46  ;;  %3691 = vpow2.f32 %v1904_v19 }
 0x2cf   :  { %v3682_v33 = vpop.eup %3681  ;;  %v2264_v49 = vadd.f32 %v2263_v1, %v2250_v4  ;;  %2830 = vmatpush.bf16.msrb.mxu1 %v2771_v29  ;;  %2856 = vmatpush.bf16.msrb.mxu0 %v2772_v50  ;;  %3693 = vpow2.f32 %v1906_v38  ;;  %v5074_v27 = vadd.f32 %v2289_v35, %v2276_v10  ;;  %v2453_v4 = vpop.f32.mrf.mxu1 }
 0x2d0   :  { %v3684_v30 = vpop.eup %3683  ;;  %v2709_v31 = vunpack.c.l.b16 %v2080_v41  ;;  %v2710_v55 = vunpack.c.h.b16 %v2080_v41  ;;  %3695 = vpow2.f32 %v1908_v15  ;;  %v2454_v56 = vadd.f32 %v2453_v4, %v2440_v12 }
 0x2d1   :  { %v3686_v23 = vpop.eup %3685  ;;  %v2093_v51 = vpack.c.bf16 %v3684_v30, %v3682_v33  ;;  %3697 = vrcp.f32 %v2264_v49 }
 0x2d2   :  { %v3688_v26 = vpop.eup %3687  ;;  %v2755_v57 = vpack.c.b16 %v2709_v31, %v2707_v44  ;;  %v2756_v5 = vpack.c.b16 %v2710_v55, %v2708_v6  ;;  %3699 = vrcp.f32 %v5074_v27  ;;  %v2466_v25 = vpop.f32.mrf.mxu2 }
 0x2d3   :  { %v3690_v0 = vpop.eup %3689  ;;  %v2094_v11 = vpack.c.bf16 %v3688_v26, %v3686_v23  ;;  %v2735_v39 = vunpack.c.l.b16 %v2093_v51  ;;  %v2736_v18 = vunpack.c.h.b16 %v2093_v51  ;;  %3701 = vrcp.f32 %v2454_v56  ;;  %v2479_v22 = vpop.f32.mrf.mxu3 }
 0x2d4   :  { %2817 = vmatpush.bf16.msrb.mxu3 %v2755_v57  ;;  %2843 = vmatpush.bf16.msrb.mxu2 %v2756_v5  ;;  %v3692_v34 = vpop.eup %3691  ;;  %v2480_v48 = vadd.f32 %v2479_v22, %v2466_v25 }
 0x2d5   :  { %v2737_v16 = vunpack.c.l.b16 %v2094_v11  ;;  %v2738_v3 = vunpack.c.h.b16 %v2094_v11  ;;  %v3694_v17 = vpop.eup %3693  ;;  %v2077_v13 = vpack.c.bf16 %v3692_v34, %v3690_v0  ;;  %v2442_v53 = vpop.f32.mrf.mxu0 }
 0x2d6   :  { %v3696_v9 = vpop.eup %3695  ;;  %3703 = vrcp.f32 %v2480_v48 }
 0x2d7   :  { %v2769_v60 = vpack.c.b16 %v2737_v16, %v2735_v39  ;;  %v2770_v43 = vpack.c.b16 %v2738_v3, %v2736_v18  ;;  %v2078_v7 = vpack.c.bf16 %v3696_v9, %v3694_v17  ;;  %v2703_v32 = vunpack.c.l.b16 %v2077_v13  ;;  %v3698_v1 = vpop.eup %3697  ;;  %v2455_v24 = vpop.f32.mrf.mxu1 }
 0x2d8   :  { %v2704_v8 = vunpack.c.h.b16 %v2077_v13  ;;  %v2879_v59 = vrot.slane %v3698_v1, 1  ;;  %v3700_v54 = vpop.eup %3699 }
 0x2d9   :  { %2831 = vmatpush.bf16.msrb.mxu1 %v2769_v60  ;;  %2857 = vmatpush.bf16.msrb.mxu0 %v2770_v43  ;;  %v2705_v42 = vunpack.c.l.b16 %v2078_v7  ;;  %v2706_v47 = vunpack.c.h.b16 %v2078_v7  ;;  %v3702_v62 = vpop.eup %3701  ;;  %v2880_v20 = vrot.slane %v3700_v54, 1 }
 0x2da   :  { %v2895_v52 = vmul.f32 %v2879_v59, %v2264_v49  ;;  %v2881_v37 = vrot.slane %v3702_v62, 1  ;;  %v2468_v19 = vpop.f32.mrf.mxu2 }
 0x2db   :  { %v2753_v21 = vpack.c.b16 %v2705_v42, %v2703_v32  ;;  %v2754_v36 = vpack.c.b16 %v2706_v47, %v2704_v8  ;;  %v2896_v58 = vmul.f32 %v2880_v20, %v5074_v27  ;;  %v2481_v38 = vpop.f32.mrf.mxu3  ;;  %v2923_v47 = vlaneseq }
 0x2dc   :  { %3247 = vmatmul.msk.bf16.vlgmr.msrb.gmra.mxu0 %vm2232_vm2, %v2676_v2  ;;  %3246 = vmatmul.msk.bf16.vlgmr.msrb.gmra.mxu1 %vm2232_vm2, %v2676_v2  ;;  %v2904_v14 = vsel %vm2903_vm3, %v2895_v52, 0.0  ;;  %v2897_v46 = vmul.f32 %v2881_v37, %v2454_v56  ;;  %v3704_v15 = vpop.eup %3703 }
 0x2dd   :  { %2818 = vmatpush.bf16.msrb.mxu3 %v2753_v21  ;;  %2844 = vmatpush.bf16.msrb.mxu2 %v2754_v36  ;;  %v2882_v29 = vrot.slane %v3704_v15, 1  ;;  %v2911_v50 = vsel %vm2903_vm3, %v2896_v58, 0.0  ;;  %vm2925_vm4 = vcmp.lt.s32.totalorder %v2923_v47, 256 }
 0x2de   :  { %v2905_v10 = vsel %vm2903_vm3, %v2897_v46, 0.0 }
 0x2df   :  { %v2906_v35 = vadd.f32 %v2905_v10, %v2904_v14  ;;  %v2898_v41 = vmul.f32 %v2882_v29, %v2480_v48 }
 0x2e0   :  { %2819 = vmatmul.bf16.vlgmr.msrb.gmra.mxu3 %v2675_v40  ;;  %2845 = vmatmul.bf16.vlgmr.msrb.gmra.mxu2 %v2675_v40 }
 0x2e1   :  { %v2912_v44 = vsel %vm2903_vm3, %v2898_v41, 0.0 }
 0x2e2   :  { %v2913_v33 = vadd.f32 %v2912_v44, %v2911_v50 }
 0x317   :  { %v2643_v6 = vpop.f32.mrf.mxu3  ;;  %v2669_v49 = vpop.f32.mrf.mxu2 }
 0x31f   :  { %v2645_v30 = vpop.f32.mrf.mxu3  ;;  %v2671_v31 = vpop.f32.mrf.mxu2 }
 0x32f   :  { %v2630_v55 = vpop.f32.mrf.mxu1  ;;  %v2656_v63 = vpop.f32.mrf.mxu0 }
 0x330   :  { %v2644_v27 = vadd.f32 %v2643_v6, %v2630_v55  ;;  %v2670_v61 = vadd.f32 %v2669_v49, %v2656_v63 }
 0x332   :  { %3705 = vrcp.f32 %v2644_v27 }
 0x333   :  { %3707 = vrcp.f32 %v2670_v61 }
 0x337   :  { %v2658_v23 = vpop.f32.mrf.mxu0  ;;  %v2632_v51 = vpop.f32.mrf.mxu1 }
 0x338   :  { %v3706_v26 = vpop.eup %3705 }
 0x339   :  { %v3708_v57 = vpop.eup %3707  ;;  %v2883_v5 = vrot.slane %v3706_v26, 1 }
 0x33a   :  { %v2884_v0 = vrot.slane %v3708_v57, 1 }
 0x33b   :  { %v2899_v11 = vmul.f32 %v2883_v5, %v2644_v27 }
 0x33c   :  { %v2900_v39 = vmul.f32 %v2884_v0, %v2670_v61 }
 0x33d   :  { %v2907_v18 = vsel %vm2903_vm3, %v2899_v11, 0.0 }
 0x33e   :  { %v2908_v34 = vadd.f32 %v2907_v18, %v2906_v35  ;;  %v2914_v16 = vsel %vm2903_vm3, %v2900_v39, 0.0 }
 0x33f   :  { %v2915_v3 = vadd.f32 %v2914_v16, %v2913_v33 }
 0x359   :  { %v2859_v45 = vpop.f32.mrf.mxu0  ;;  %v2833_v28 = vpop.f32.mrf.mxu1 }
 0x361   :  { %v2861_v17 = vpop.f32.mrf.mxu0  ;;  %v2835_v13 = vpop.f32.mrf.mxu1 }
 0x363   :  { %v2820_v9 = vpop.f32.mrf.mxu3  ;;  %v2846_v60 = vpop.f32.mrf.mxu2 }
 0x364   :  { %v2834_v43 = vadd.f32 %v2833_v28, %v2820_v9  ;;  %v2860_v7 = vadd.f32 %v2859_v45, %v2846_v60 }
 0x366   :  { %3709 = vrcp.f32 %v2834_v43 }
 0x367   :  { %3711 = vrcp.f32 %v2860_v7 }
 0x36b   :  { %v2822_v32 = vpop.f32.mrf.mxu3  ;;  %v2848_v8 = vpop.f32.mrf.mxu2 }
 0x36c   :  { %v3710_v12 = vpop.eup %3709 }
 0x36d   :  { %v3712_v4 = vpop.eup %3711  ;;  %v2885_v1 = vrot.slane %v3710_v12, 1 }
 0x36e   :  { %v2886_v2 = vrot.slane %v3712_v4, 1 }
 0x36f   :  { %v2901_v56 = vmul.f32 %v2885_v1, %v2834_v43 }
 0x370   :  { %v2902_v42 = vmul.f32 %v2886_v2, %v2860_v7 }
 0x371   :  { %v2909_v21 = vsel %vm2903_vm3, %v2901_v56, 0.0 }
 0x372   :  { %v2916_v36 = vsel %vm2903_vm3, %v2902_v42, 0.0  ;;  %v2910_v25 = vadd.f32 %v2909_v21, %v2908_v34 }
 0x373   :  { %v2917_v59 = vadd.f32 %v2916_v36, %v2915_v3 }
 0x375   :  { %v2920_v22 = vrot.slane %v2917_v59, 7 }
 0x377   :  { %v2921_v54 = vsel %vm2903_vm3, %v2910_v25, %v2920_v22 }
 0x378   :  { %2927 = vst.msk [vmem:[#allocation2] sm:$0x3] %vm2925_vm4, %v2921_v54 }
 0x379   :  { %2938 = dma.vmem_to_hbm [thread:$0]  %s2934_s19, 32, %s2936_s21, [#allocation3]  }
 0x37a   :  { %3737 = dma.done.wait [#allocation3], 32  }
 0x37b   :  { %3738 = vsyncadd [#allocation3], 4294967264 }
 0x37c   :  { %2943 = vsyncpa [#allocation3], 1 }

</bundles_post_ra>
